<compile_context>
chip_gen: v6e
topology: v6e:2x2x1
jax: 0.10.0
libtpu: 0.0.40
codegen_flags: <defaults>
</compile_context>

<pallas_src>
import jax
import jax.numpy as jnp
from jax.experimental import pallas as pl
from jax.experimental.pallas import tpu as pltpu


def _head_kernel(x_ref, w_ref, b_ref, o_ref):
    # x_ref: (TB, HW, C)   w_ref: (C, Npad) bf16   b_ref: (1, Npad) f32   o_ref: (TB, Npad)
    x = x_ref[...]
    hw = x.shape[1]
    # Global average pool over the spatial (sublane) axis, accumulated in f32.
    pooled = jnp.sum(x, axis=1, dtype=jnp.float32) * jnp.float32(1.0 / hw)   # (TB, C)
    # Linear: (TB, C) @ (C, Npad) on the MXU — bf16 operands, f32 accumulation.
    out = jnp.dot(pooled.astype(w_ref.dtype), w_ref[...],
                  preferred_element_type=jnp.float32)
    o_ref[...] = (out + b_ref[...]).astype(o_ref.dtype)


def _physical_vmem_bytes():
    try:
        info = pltpu.get_tpu_info()
        for name in ("vmem_capacity_bytes", "vmem_size_bytes", "vmem_bytes"):
            val = getattr(info, name, None)
            if val:
                return int(val)
    except Exception:
        pass
    return 64 << 20  # conservative fallback: v7x per-TensorCore VMEM


def _resident_spec(block_shape, index_map):
    """Constant-index operand: it never changes block, so one pipeline buffer suffices."""
    try:
        return pl.BlockSpec(block_shape, index_map, pipeline_mode=pl.Buffered(1))
    except TypeError:  # older jax without pipeline_mode on BlockSpec
        return pl.BlockSpec(block_shape, index_map)


def _choose_tile_b(B, HW, C, Npad, x_item, out_item, w_bytes):
    phys = _physical_vmem_bytes()
    # x-pipeline budget: safe on both 64 MiB (v7x) and 128 MiB (v5e/v6e) parts.
    budget = min(phys // 2, 48 << 20)
    per_row = 2 * HW * C * x_item + 2 * Npad * out_item      # dbl-buffered x + out per batch row
    reserve = 2 * w_bytes + 2 * Npad * 4 + (2 << 20)         # resident weight/bias + headroom
    tb = max(1, (budget - reserve) // per_row)
    tb = int(min(tb, 128, B))        # 128 rows fill the MXU M dimension on every generation
    if B >= 16:
        tb = min(tb, -(-B // 2))     # >=2 grid steps so "parallel" can use both TensorCores
    if tb >= 8:
        tb = (tb // 8) * 8           # keep the pooled/out sublane dimension aligned
    return max(1, int(tb))


def prepare_classifier_params(weight, bias, *, weight_dtype=jnp.bfloat16):
    """Pad/transpose/cast the nn.Linear(1280, n_classes) params ONCE at model init."""
    n_classes, C = weight.shape
    n_pad = max(128, ((n_classes + 127) // 128) * 128)
    w_t = jnp.zeros((C, n_pad), dtype=weight_dtype).at[:, :n_classes].set(
        weight.T.astype(weight_dtype))
    b_pad = jnp.zeros((1, n_pad), dtype=jnp.float32).at[0, :n_classes].set(
        bias.astype(jnp.float32))
    return w_t, b_pad


def efficientnet_classifier_head(x_nchw, w_t, b_pad, n_classes, *, tile_b=None):
    """x_nchw: (B, C, H, W); w_t: (C, Npad) prepared weight; b_pad: (1, Npad) prepared bias."""
    B, C, H, W = x_nchw.shape
    HW = H * W
    Cw, Npad = w_t.shape
    assert Cw == C, "weight was prepared for a different channel count"

    # Lane-dense layout: (B, HW, C) puts C=1280 on lanes, HW on sublanes.  The minor-dim
    # transpose is a cheap XLA op inside the jitted wrapper (the reshape itself is free).
    x_bhwc = jnp.transpose(x_nchw.reshape(B, C, HW), (0, 2, 1))

    x_item = jnp.dtype(x_nchw.dtype).itemsize
    out_item = x_item
    w_bytes = Cw * Npad * jnp.dtype(w_t.dtype).itemsize

    TB = tile_b if tile_b is not None else _choose_tile_b(
        B, HW, C, Npad, x_item, out_item, w_bytes)
    TB = int(min(TB, B))
    grid = (pl.cdiv(B, TB),)

    # Explicit VMEM budget (the default scoped VMEM differs per generation).
    vmem_need = (2 * TB * HW * C * x_item        # double-buffered x blocks
                 + 2 * w_bytes + 2 * Npad * 4    # weight/bias (counted double for safety)
                 + 2 * TB * Npad * out_item      # double-buffered out blocks
                 + (4 << 20))                    # headroom for temporaries
    phys = _physical_vmem_bytes()
    vmem_limit = int(min(max(vmem_need, 32 << 20), phys - (4 << 20)))

    cost = pl.CostEstimate(
        flops=int(B * HW * C + 2 * B * C * Npad),
        transcendentals=0,
        bytes_accessed=int(B * HW * C * x_item + w_bytes + Npad * 4
                           + B * Npad * out_item),
    )

    out = pl.pallas_call(
        _head_kernel,
        out_shape=jax.ShapeDtypeStruct((B, Npad), x_nchw.dtype),
        grid=grid,
        in_specs=[
            pl.BlockSpec((TB, HW, C), lambda b: (b, 0, 0)),
            _resident_spec((C, Npad), lambda b: (0, 0)),   # constant -> stays resident
            _resident_spec((1, Npad), lambda b: (0, 0)),   # constant -> stays resident
        ],
        out_specs=pl.BlockSpec((TB, Npad), lambda b: (b, 0)),
        compiler_params=pltpu.CompilerParams(
            dimension_semantics=("parallel",),
            vmem_limit_bytes=vmem_limit,
        ),
        cost_estimate=cost,
    )(x_bhwc, w_t, b_pad)

    return out[:, :n_classes]


def _reference(x_nchw, weight, bias):
    pooled = jnp.mean(x_nchw, axis=(2, 3))   # AdaptiveAvgPool2d(1) + flatten
    return pooled @ weight.T + bias          # Dropout(eval) = identity, then Linear


if __name__ == "__main__":
    key = jax.random.PRNGKey(0)
    k_x, k_w, k_b = jax.random.split(key, 3)

    B, C, H, W = 16, 1280, 8, 8          # C must be 1280 to match Linear(1280, n_classes)
    n_classes = 10

    x = jax.random.normal(k_x, (B, C, H, W), dtype=jnp.float32)
    # Deterministic Linear params (mimic PyTorch uniform(-1/sqrt(fan_in), 1/sqrt(fan_in)))
    bound = 1.0 / jnp.sqrt(jnp.float32(C))
    weight = jax.random.uniform(k_w, (n_classes, C), minval=-bound, maxval=bound,
                                dtype=jnp.float32)
    bias = jax.random.uniform(k_b, (n_classes,), minval=-bound, maxval=bound,
                              dtype=jnp.float32)

    # Pad / transpose / bf16-cast the classifier params once ("model init"),
    # not inside the per-forward wrapper.
    w_t, b_pad = prepare_classifier_params(weight, bias)

    head = jax.jit(lambda xx: efficientnet_classifier_head(xx, w_t, b_pad, n_classes))
    out = jax.block_until_ready(head(x))

    ref = _reference(x, weight, bias)
    assert out.shape == (B, n_classes)
    # bf16 weights / bf16 pooled LHS on the MXU (f32 accumulation) -> looser tolerance
    # than a pure-f32 path; observed error is ~1e-3 on these magnitudes.
    assert bool(jnp.allclose(out, ref, atol=5e-3, rtol=5e-2)), "mismatch vs reference"

    print("KERNEL_OK")
</pallas_src>

<mosaic_0001>
module attributes {stable_mosaic.version = 11 : i64} {
  func.func @_head_kernel(%arg0: i32, %arg1: memref<8x64x1280xf32, #tpu.memory_space<vmem>>, %arg2: memref<1280x128xbf16, #tpu.memory_space<vmem>>, %arg3: memref<1x128xf32, #tpu.memory_space<vmem>>, %arg4: memref<8x128xf32, #tpu.memory_space<vmem>>) attributes {dimension_semantics = [#tpu.dimension_semantics<parallel>], iteration_bounds = array<i64: 2>, scalar_prefetch = 0 : i64, scratch_operands = 0 : i64, tpu.core_type = #tpu.core_type<tc>, window_params = [{transform_indices = @transform_0, window_bounds = array<i64: 8, 64, 1280>}, {pipeline_mode = #tpu.pipeline_mode<synchronous>, transform_indices = @transform_1, window_bounds = array<i64: 1280, 128>}, {pipeline_mode = #tpu.pipeline_mode<synchronous>, transform_indices = @transform_2, window_bounds = array<i64: 1, 128>}, {transform_indices = @transform_3, window_bounds = array<i64: 8, 128>}]} {
    %c0 = arith.constant 0 : index
    %c0_0 = arith.constant 0 : index
    %c0_1 = arith.constant 0 : index
    %0 = vector.load %arg1[%c0, %c0_0, %c0_1] : memref<8x64x1280xf32, #tpu.memory_space<vmem>>, vector<8x64x1280xf32>
    %cst = arith.constant dense<0.000000e+00> : vector<8x1280xf32>
    %1 = vector.multi_reduction <add>, %0, %cst [1] : vector<8x64x1280xf32> to vector<8x1280xf32>
    %cst_2 = arith.constant 1.562500e-02 : f32
    %2 = vector.broadcast %cst_2 : f32 to vector<8x1280xf32>
    %3 = arith.mulf %1, %2 : vector<8x1280xf32>
    %4 = arith.truncf %3 : vector<8x1280xf32> to vector<8x1280xbf16>
    %c0_3 = arith.constant 0 : index
    %c0_4 = arith.constant 0 : index
    %5 = vector.load %arg2[%c0_3, %c0_4] : memref<1280x128xbf16, #tpu.memory_space<vmem>>, vector<1280x128xbf16>
    %cst_5 = arith.constant dense<0.000000e+00> : vector<8x128xf32>
    %6 = tpu.matmul %4, %5, %cst_5 {dimension_numbers = #tpu.dot_dimension_numbers<[1], [0], [0], [1], [0, 0, 1, 1], [], []>} : vector<8x1280xbf16>, vector<1280x128xbf16>, vector<8x128xf32> -> vector<8x128xf32>
    %c0_6 = arith.constant 0 : index
    %c0_7 = arith.constant 0 : index
    %7 = vector.load %arg3[%c0_6, %c0_7] : memref<1x128xf32, #tpu.memory_space<vmem>>, vector<1x128xf32>
    %8 = vector.broadcast %7 : vector<1x128xf32> to vector<8x128xf32>
    %9 = arith.addf %6, %8 : vector<8x128xf32>
    %c0_8 = arith.constant 0 : index
    %c0_9 = arith.constant 0 : index
    %10 = vector.load %arg4[%c0_8, %c0_9] : memref<8x128xf32, #tpu.memory_space<vmem>>, vector<8x128xf32>
    tpu.vector_store %arg4[%c0_8, %c0_9], %9 {strides = array<i32>} : memref<8x128xf32, #tpu.memory_space<vmem>>, vector<8x128xf32>,
    return
  }
  func.func @transform_0(%arg0: i32) -> (i32, i32, i32) {
    %c0_i32 = arith.constant 0 : i32
    %c0_i32_0 = arith.constant 0 : i32
    %c0_i32_1 = arith.constant 0 : i32
    return %arg0, %c0_i32, %c0_i32_0 : i32, i32, i32
  }
  func.func @transform_1(%arg0: i32) -> (i32, i32) {
    %c0_i32 = arith.constant 0 : i32
    %c0_i32_0 = arith.constant 0 : i32
    %c0_i32_1 = arith.constant 0 : i32
    return %c0_i32, %c0_i32_0 : i32, i32
  }
  func.func @transform_2(%arg0: i32) -> (i32, i32) {
    %c0_i32 = arith.constant 0 : i32
    %c0_i32_0 = arith.constant 0 : i32
    %c0_i32_1 = arith.constant 0 : i32
    return %c0_i32, %c0_i32_0 : i32, i32
  }
  func.func @transform_3(%arg0: i32) -> (i32, i32) {
    %c0_i32 = arith.constant 0 : i32
    %c0_i32_0 = arith.constant 0 : i32
    return %arg0, %c0_i32 : i32, i32
  }
}

</mosaic_0001>

<bundles_post_ra>
// kernel: _lambda_.1
= control target key start
LH: loop header
LB: loop body
LE: loop exit
PB: predicated region body
PF: predicated region fallthrough
CT: control target
= control target key end

     0   :  { %8 = vsyncpa [#allocation3], 0  ;;  %s4708_s0 = inlined_call_operand.hbm [shape: f32[16,64,1280], index: 0, kind: input, shape index: {}]   ;;  %s4709_s1 = inlined_call_operand.hbm [shape: bf16[1280,128], index: 1, kind: input, shape index: {}]   ;;  %s4710_s2 = inlined_call_operand.hbm [shape: f32[1,128], index: 2, kind: input, shape index: {}]   ;;  %s4711_s3 = inlined_call_operand.hbm [shape: f32[16,128], index: 3, kind: output, shape index: {}]  }
   0x1   :  { %10 = vsyncpa [#allocation3 + $0x1], 0 }
   0x2   :  { %11 = vsyncpa [#allocation6], 0 }
   0x3   :  { %12 = vsyncpa [#allocation4], 0 }
   0x4   :  { %14 = vsyncpa [#allocation4 + $0x1], 0  ;;  %s3806_s12 = smov 0   ;;  %s3808_s13 = smov 0  }
   0x5   :  { %s3810_s14 = smov 0   ;;  %s3812_s15 = smov 0  }
   0x6 LB: > { %s3827_s16 = sadd.s32 4294967295, %s3776_s15   ;;  %s3267_s17 = sadd.s32 4294967294, %s3776_s15   ;;  %s3776_s15 = sphi %s3812_s15, %s4733_s15   ;;  %s3772_s14 = sphi %s3810_s14, %s4732_s14   ;;  %s3768_s13 = sphi %s3808_s13, %s4731_s13   ;;  %s3764_s12 = sphi %s3806_s12, %s4730_s12  }
   0x7   : > { %p40_p0 = scmp.ne.s32.totalorder %s3768_s13, %s3764_s12  ;;  %p4712_p1 = scmp.eq.s32.totalorder %s3827_s16, 0 }
   0x8   : > { %p112_p3 = scmp.eq.s32.totalorder %s3267_s17, 1  ;;  %p3268_p5 = scmp.ge.s32.totalorder %s3776_s15, 1 }
   0x9   : > { %p3836_p4 = por %p4712_p1, %p40_p0  ;;  %p119_p7 = scmp.lt.s32.totalorder %s3776_s15, 3 }
   0xa   : > { %p3841_p6 = por %p112_p3, %p40_p0  ;;  %s3778_s21 = smov [#allocation5]  }
   0xb   : > { %s4716_s18 = scalar_select %p3836_p4, 1, 0 }
   0xc   : > { %s4717_s19 = scalar_select %p3841_p6, 1, 0 }
   0xd   : > { %p3846_p8 = pnand %p3268_p5, %p119_p7  ;;  %s131_s22 = sshll.u32 %s3778_s21, 4  ;;  %s132_s22 = int_to_ptr.vmem [resolvable:$true] %s131_s22 }
   0xe   : > { %s3779_s24 = smov [#allocation7]   ;;  %s3639_s26 = scalar_lea.vmem %s132_s22, 10240 }
   0xf   : > { %s4718_s20 = scalar_select %p3846_p8, 1, 0 }
  0x10   : > { %p3489_p9 = pneg %p3846_p8  ;;  %s145_s25 = sshll.u32 %s3779_s24, 4  ;;  %s146_s25 = int_to_ptr.vmem [resolvable:$true] %s145_s25 }
  0x11   : > { %p3640_p13 = scmp.ne.s32.totalorder %s132_s22, %s3639_s26  ;;  %p3647_p5 = scmp.lt.s32.totalorder %s132_s22, %s132_s22 }
  0x12   : > { %p3855_p11 = pnand %p3489_p9, %p4712_p1  ;;  %p3648_p7 = scmp.lt.s32.totalorder %s3639_s26, %s3639_s26 }
  0x14   : > { %p3630_p12 = pneg %p3855_p11  ;;  %p3649_p10 = por %p3648_p7, %p3647_p5 }
  0x16   : > { %p3642_p0 = pnand %p3640_p13, %p3630_p12 }
  0x18   : > { %p3643_p3 = pneg %p3642_p0 }
  0x1a   : > { %p3650_p9 = pnand %p3649_p10, %p3643_p3 }
  0x1c   : > { %3653 = shalt.err (!%p3650_p9)
}
  0x1d   : > { %s3780_s27 = smov 64   ;;  %s3781_s28 = smov 4  }
  0x1e   : > { %3492 = dma.hbm_to_vmem [thread:$0]  (!%p3855_p11), %s4709_s1, 10240, %s132_s22, [#allocation6], %s3780_s27, %s3780_s27, %s3781_s28  }
  0x1f   : > { %s3665_s4 = scalar_lea.vmem %s146_s25, 16  ;;  %s3672_s5 = scalar_lea.vmem %s146_s25, 32 }
  0x20   : > { %p3666_p1 = scmp.ne.s32.totalorder %s146_s25, %s3665_s4  ;;  %p3673_p2 = scmp.lt.s32.totalorder %s146_s25, %s146_s25 }
  0x21   : > { %p3674_p5 = scmp.lt.s32.totalorder %s3672_s5, %s3665_s4 }
  0x22   : > { %p3668_p13 = pnand %p3666_p1, %p3630_p12 }
  0x23   : > { %p3675_p10 = por %p3674_p5, %p3673_p2 }
  0x24   : > { %p3669_p0 = pneg %p3668_p13 }
  0x26   : > { %p3676_p3 = pnand %p3675_p10, %p3669_p0 }
  0x28   : > { %3679 = shalt.err (!%p3676_p3)
}
  0x29   : > { %3495 = dma.hbm_to_vmem [thread:$0]  (!%p3855_p11), %s4710_s2, 16, %s146_s25, [#allocation6]  }
  0x2a   : > { %s3878_s8 = sadd.s32 1, %s3776_s15   ;;  %s27_s9 = sadd.s32 1, %s3772_s14 }
  0x2b   : > { %s24_s10 = ssub.s32 %s3776_s15, %s3878_s8  ;;  %p34_p1 = scmp.ne.s32.totalorder %s3772_s14, %s3768_s13 }
  0x2c   : > { %p25_p2 = scmp.eq.s32.totalorder %s24_s10, 0  ;;  %p35_p12 = scmp.eq.s32.totalorder %s3776_s15, 0 }
  0x2d   : > { %p4720_p7 = scmp.eq.s32.totalorder %s3827_s16, 1  ;;  %p3506_p13 = scmp.lt.s32.totalorder %s3776_s15, 2 }
  0x2e   : > { %s3894_s17 = scalar_select %p25_p2, %s3772_s14, %s27_s9  }
  0x2f   : > { %p3888_p9 = por %p4720_p7, %p34_p1  ;;  %p36_p0 = por %p35_p12, %p34_p1 }
  0x30   : > { %s156_s21 = sand.u32 1, %s3772_s14   ;;  %s3475_s23 = smul.u32 81920, %s3776_s15 }
  0x31   : > { %s4721_s11 = scalar_select %p3888_p9, 1, 0 }
  0x32   : > { %s3474_s22 = smul.u32 5120, %s156_s21  ;;  %p3898_p11 = pnand %p3506_p13, %p36_p0 }
  0x33   : > { %s3905_s27 = scalar_lea.hbm %s4708_s0, %s3475_s23  ;;  %s3909_s30 = scalar_lea.sflag [#allocation3], %s156_s21 }
  0x34   : > { %s160_s28 = scalar_lea.vmem [#allocation2], %s3474_s22  ;;  %s3680_s4 = scalar_lea.hbm %s3905_s27, 81920 }
  0x35   : > { %s168_s29 = sshll.u32 %s160_s28, 4  ;;  %p3681_p5 = scmp.ne.s32.totalorder %s3905_s27, %s3680_s4  ;;  %s3907_s29 = int_to_ptr.vmem [resolvable:$true] %s168_s29 }
  0x36   : > { %p3682_p10 = pneg %p3898_p11  ;;  %s3685_s7 = scalar_lea.hbm %s4708_s0, 163840 }
  0x37   : > { %p3686_p2 = scmp.lt.s32.totalorder %s3905_s27, %s4708_s0  ;;  %p3687_p12 = scmp.lt.s32.totalorder %s3685_s7, %s3680_s4 }
  0x38   : > { %p3683_p3 = pnand %p3682_p10, %p3681_p5 }
  0x39   : > { %p3688_p7 = por %p3687_p12, %p3686_p2 }
  0x3a   : > { %p3684_p1 = pneg %p3683_p3 }
  0x3c   : > { %p3689_p13 = pnand %p3688_p7, %p3684_p1 }
  0x3e   : > { %3692 = shalt.err (!%p3689_p13)
}
  0x3f   : > { %s3693_s21 = scalar_lea.vmem %s3907_s29, 81920  ;;  %s3782_s22 = smov [#allocation2]  }
  0x40   : > { %p3694_p0 = scmp.ne.s32.totalorder %s3907_s29, %s3693_s21  ;;  %s3698_s23 = sshll.u32 %s3782_s22, 4  ;;  %s3699_s23 = int_to_ptr.vmem [resolvable:$false] %s3698_s23 }
  0x41   : > { %s3700_s25 = scalar_lea.vmem %s3699_s23, 163840  ;;  %p3701_p3 = scmp.lt.s32.totalorder %s3907_s29, %s3699_s23 }
  0x42   : > { %p3696_p6 = pnand %p3694_p0, %p3682_p10  ;;  %p3702_p9 = scmp.lt.s32.totalorder %s3700_s25, %s3693_s21 }
  0x44   : > { %p3697_p5 = pneg %p3696_p6  ;;  %p3703_p4 = por %p3702_p9, %p3701_p3 }
  0x46   : > { %p3704_p8 = pnand %p3703_p4, %p3697_p5 }
  0x48   : > { %3707 = shalt.err (!%p3704_p8)
}
  0x49   : > { %s3783_s26 = smov 1280   ;;  %s3784_s28 = smov 80  }
  0x4a   : > { %3499 = dma.hbm_to_vmem [thread:$0]  (!%p3898_p11), %s3905_s27, 81920, %s3907_s29, %s3909_s30, %s3783_s26, %s3783_s26, %s3784_s28  }
  0x4b   : > { %p4723_p10 = scmp.ne.s32.totalorder %s4718_s20, 0 }
  0x4c   : > { %s3933_s4 = sand.u32 (!%p4723_p10), 1, %s3768_s13   ;;  %p4724_p4 = scmp.ne.s32.totalorder (!%p4723_p10), %s4716_s18, 0 }
  0x4d   : > { %180 = sbr.rel (%p4723_p10) target bundleno = 674 (0x2a2), region = 32  ;;  %s183_s6 = scalar_lea.sflag (!%p4723_p10), [#allocation3], %s3933_s4 }
  0x4e   : > { %s3476_s5 = smul.u32 (!%p4723_p10), 5120, %s3933_s4 }
  0x50   : > { %s3937_s7 = scalar_lea.vmem (!%p4723_p10), [#allocation2], %s3476_s5 }
  0x52   : > { %3751 = dma.done.wait (%p4724_p4), %s183_s6, 81920  }
  0x53   : > { %3753 = vsyncadd (%p4724_p4), %s183_s6, 4294885376  ;;  %p4725_p6 = scmp.eq.s32.totalorder %s3827_s16, 0 }
  0x55   : > { %3755 = dma.done.wait (%p4725_p6), [#allocation6], 10256   ;;  %p4726_p8 = pmov %p4725_p6 }
  0x56   : > { %v3548_v0 = vld [vmem:[#allocation5 + $0x78] sm:$0xff]   ;;  %v3552_v4 = vld [vmem:[#allocation5 + $0x70] sm:$0xff]   ;;  %v3556_v8 = vld [vmem:[#allocation5 + $0x68] sm:$0xff]   ;;  %vm2386_vm0 = vcmask 1041409   ;;  %vm2388_vm1 = vcmask 1042434   ;;  %vm2390_vm2 = vcmask 1043459  }
  0x57   : > { %3757 = vsyncadd (%p4726_p8), [#allocation6], 4294957040  ;;  %v3549_v1 = vld [vmem:[#allocation5 + $0x38] sm:$0xff]   ;;  %3364 = vmatprep.subr.bf16.mxu0 %v3548_v0  ;;  %v3553_v5 = vld [vmem:[#allocation5 + $0x30] sm:$0xff]   ;;  %vm2392_vm3 = vcmask 1044484   ;;  %vm2394_vm4 = vcmask 1045509  }
  0x58   : > { %v3550_v2 = vld [vmem:[#allocation5 + $0xf8] sm:$0xff]   ;;  %3365 = vmatpush3.bf16.msra.mxu0 %v3549_v1  ;;  %v3554_v6 = vld [vmem:[#allocation5 + $0xf0] sm:$0xff]   ;;  %v3557_v9 = vld [vmem:[#allocation5 + $0x28] sm:$0xff]   ;;  %vm2396_vm5 = vcmask 1046534   ;;  %vm2398_vm6 = vcmask 1047559   ;;  %s3278_s18 = sshll.u32 %s3933_s4, 3 }
  0x59   : > { %v3551_v3 = vld [vmem:[#allocation5 + $0xb8] sm:$0xff]   ;;  %3386 = vmatprep.subr.bf16.mxu1 %v3550_v2  ;;  %3366 = vmatprep.subr.bf16.mxu0 %v3552_v4  ;;  %v3555_v7 = vld [vmem:[#allocation5 + $0xb0] sm:$0xff]   ;;  %v3558_v10 = vld [vmem:[#allocation5 + $0xe8] sm:$0xff]   ;;  %s3361_s20 = sshll.u32 %s3827_s16, 7  ;;  %s216_s24 = scalar_lea.vmem [#allocation8], %s3278_s18 }
  0x5a   : > { %3387 = vmatpush3.bf16.msra.mxu1 %v3551_v3  ;;  %v3559_v11 = vld [vmem:[#allocation5 + $0xa8] sm:$0xff]   ;;  %v3560_v12 = vld [vmem:[#allocation5 + $0x60] sm:$0xff]   ;;  %v3564_v16 = vld [vmem:[#allocation5 + $0x58] sm:$0xff]   ;;  %s3178_s27 = sshll.u32 %s216_s24, 4  ;;  %s4671_s9 = scalar_lea.hbm %s4711_s3, %s3361_s20  ;;  %s3179_s27 = int_to_ptr.vmem [resolvable:$true] %s3178_s27 }
  0x5b   : > { %3388 = vmatprep.subr.bf16.mxu1 %v3554_v6  ;;  %v3561_v13 = vld [vmem:[#allocation5 + $0x20] sm:$0xff]   ;;  %v3565_v17 = vld [vmem:[#allocation5 + $0x18] sm:$0xff]   ;;  %v3568_v20 = vld [vmem:[#allocation5 + $0x50] sm:$0xff]   ;;  %s3165_s10 = scalar_lea.sflag [#allocation4], %s3933_s4  ;;  %s3708_s21 = scalar_lea.vmem %s3179_s27, 128 }
  0x5c   : > { %3367 = vmatpush3.bf16.msra.mxu0 %v3553_v5  ;;  %v3562_v14 = vld [vmem:[#allocation5 + $0xe0] sm:$0xff]   ;;  %v3566_v18 = vld [vmem:[#allocation5 + $0xd8] sm:$0xff]   ;;  %v3569_v21 = vld [vmem:[#allocation5 + $0x10] sm:$0xff]   ;;  %p3709_p9 = scmp.ne.s32.totalorder %s3179_s27, %s3708_s21  ;;  %p4727_p11 = scmp.ne.s32.totalorder %s4721_s11, 0 }
  0x5d   : > { %3368 = vmatprep.subr.bf16.mxu0 %v3556_v8  ;;  %v3563_v15 = vld [vmem:[#allocation5 + $0xa0] sm:$0xff]   ;;  %v3567_v19 = vld [vmem:[#allocation5 + $0x98] sm:$0xff]   ;;  %v3570_v22 = vld [vmem:[#allocation5 + $0xd0] sm:$0xff]   ;;  %s3785_s16 = smov [#allocation8]  }
  0x5e   : > { %3389 = vmatpush3.bf16.msra.mxu1 %v3555_v7  ;;  %v3571_v23 = vld [vmem:[#allocation5 + $0x90] sm:$0xff]   ;;  %v3572_v24 = vld [vmem:[#allocation5 + $0x48] sm:$0xff]   ;;  %v3576_v28 = vld [vmem:[#allocation5 + $0x40] sm:$0xff]   ;;  %p3710_p1 = pnand %p3709_p9, %p4727_p11  ;;  %s3712_s22 = sshll.u32 %s3785_s16, 4  ;;  %s3713_s22 = int_to_ptr.vmem [resolvable:$false] %s3712_s22 }
  0x5f   : > { %3390 = vmatprep.subr.bf16.mxu1 %v3558_v10  ;;  %v3573_v25 = vld [vmem:[#allocation5 + $0x8] sm:$0xff]   ;;  %v3577_v29 = vld [vmem:[#allocation5] sm:$0xff]   ;;  %v230_v33 = vld [vmem:[%s3937_s7 + $0x58] sm:$0xff]  ;;  %s3714_s23 = scalar_lea.vmem %s3713_s22, 256  ;;  %p3715_p12 = scmp.lt.s32.totalorder %s3179_s27, %s3713_s22 }
  0x60   : > { %3369 = vmatpush3.bf16.msra.mxu0 %v3557_v9  ;;  %v3574_v26 = vld [vmem:[#allocation5 + $0xc8] sm:$0xff]   ;;  %v3578_v30 = vld [vmem:[#allocation5 + $0xc0] sm:$0xff]   ;;  %v250_v36 = vld [vmem:[%s3937_s7 + $0xf8] sm:$0xff]  ;;  %p3711_p2 = pneg %p3710_p1  ;;  %p3716_p7 = scmp.lt.s32.totalorder %s3714_s23, %s3708_s21 }
  0x61   : > { %3370 = vmatprep.subr.bf16.mxu0 %v3560_v12  ;;  %v3575_v27 = vld [vmem:[#allocation5 + $0x88] sm:$0xff]   ;;  %v3579_v31 = vld [vmem:[#allocation5 + $0x80] sm:$0xff]   ;;  %v310_v38 = vld [vmem:[%s3937_s7 + $0x2d8] sm:$0xff] }
  0x62   : > { %3391 = vmatpush3.bf16.msra.mxu1 %v3559_v11  ;;  %v220_v32 = vld [vmem:[%s3937_s7 + $0x8] sm:$0xff]  ;;  %v330_v43 = vld [vmem:[%s3937_s7 + $0x378] sm:$0xff]  ;;  %p3717_p13 = por %p3716_p7, %p3715_p12 }
  0x63   : > { %3392 = vmatprep.subr.bf16.mxu1 %v3562_v14  ;;  %v240_v34 = vld [vmem:[%s3937_s7 + $0xa8] sm:$0xff]  ;;  %v872_v35 = vadd.f32 %v230_v33, %v220_v32  ;;  %v390_v45 = vld [vmem:[%s3937_s7 + $0x558] sm:$0xff] }
  0x64   : > { %3371 = vmatpush3.bf16.msra.mxu0 %v3561_v13  ;;  %v300_v37 = vld [vmem:[%s3937_s7 + $0x288] sm:$0xff]  ;;  %v270_v47 = vld [vmem:[%s3937_s7 + $0x198] sm:$0xff]  ;;  %p3718_p0 = pnand %p3717_p13, %p3711_p2 }
  0x65   : > { %3372 = vmatprep.subr.bf16.mxu0 %v3564_v16  ;;  %v320_v39 = vld [vmem:[%s3937_s7 + $0x328] sm:$0xff]  ;;  %v873_v40 = vadd.f32 %v872_v35, %v240_v34  ;;  %v1002_v42 = vadd.f32 %v310_v38, %v300_v37  ;;  %v410_v53 = vld [vmem:[%s3937_s7 + $0x5f8] sm:$0xff] }
  0x66   : > { %3393 = vmatpush3.bf16.msra.mxu1 %v3563_v15  ;;  %v260_v41 = vld [vmem:[%s3937_s7 + $0x148] sm:$0xff]  ;;  %v470_v56 = vld [vmem:[%s3937_s7 + $0x7d8] sm:$0xff] }
  0x67   : > { %3394 = vmatprep.subr.bf16.mxu1 %v3566_v18  ;;  %v380_v44 = vld [vmem:[%s3937_s7 + $0x508] sm:$0xff]  ;;  %v874_v46 = vadd.f32 %v873_v40, %v250_v36  ;;  %v1003_v49 = vadd.f32 %v1002_v42, %v320_v39  ;;  %v290_v60 = vld [vmem:[%s3937_s7 + $0x238] sm:$0xff] }
  0x68   : > { %3373 = vmatpush3.bf16.msra.mxu0 %v3565_v17  ;;  %v400_v48 = vld [vmem:[%s3937_s7 + $0x5a8] sm:$0xff]  ;;  %v1132_v50 = vadd.f32 %v390_v45, %v380_v44  ;;  %v350_v61 = vld [vmem:[%s3937_s7 + $0x418] sm:$0xff] }
  0x69   : > { %3374 = vmatprep.subr.bf16.mxu0 %v3568_v20  ;;  %v280_v51 = vld [vmem:[%s3937_s7 + $0x1e8] sm:$0xff]  ;;  %v875_v54 = vadd.f32 %v874_v46, %v260_v41  ;;  %v1004_v58 = vadd.f32 %v1003_v49, %v330_v43  ;;  %v490_v2 = vld [vmem:[%s3937_s7 + $0x878] sm:$0xff] }
  0x6a   : > { %3395 = vmatpush3.bf16.msra.mxu1 %v3567_v19  ;;  %v340_v52 = vld [vmem:[%s3937_s7 + $0x3c8] sm:$0xff]  ;;  %v1133_v59 = vadd.f32 %v1132_v50, %v400_v48  ;;  %v430_v6 = vld [vmem:[%s3937_s7 + $0x698] sm:$0xff] }
  0x6b   : > { %3396 = vmatprep.subr.bf16.mxu1 %v3570_v22  ;;  %v460_v55 = vld [vmem:[%s3937_s7 + $0x788] sm:$0xff]  ;;  %v876_v63 = vadd.f32 %v875_v54, %v270_v47  ;;  %v1005_v4 = vadd.f32 %v1004_v58, %v340_v52  ;;  %v550_v7 = vld [vmem:[%s3937_s7 + $0xa58] sm:$0xff] }
  0x6c   : > { %3375 = vmatpush3.bf16.msra.mxu0 %v3569_v21  ;;  %v480_v57 = vld [vmem:[%s3937_s7 + $0x828] sm:$0xff]  ;;  %v1262_v0 = vadd.f32 %v470_v56, %v460_v55  ;;  %v1134_v5 = vadd.f32 %v1133_v59, %v410_v53  ;;  %v370_v11 = vld [vmem:[%s3937_s7 + $0x4b8] sm:$0xff] }
  0x6d   : > { %3376 = vmatprep.subr.bf16.mxu0 %v3572_v24  ;;  %v420_v62 = vld [vmem:[%s3937_s7 + $0x648] sm:$0xff]  ;;  %v877_v9 = vadd.f32 %v876_v63, %v280_v51  ;;  %v1006_v14 = vadd.f32 %v1005_v4, %v350_v61  ;;  %v570_v17 = vld [vmem:[%s3937_s7 + $0xaf8] sm:$0xff] }
  0x6e   : > { %3397 = vmatpush3.bf16.msra.mxu1 %v3571_v23  ;;  %v360_v1 = vld [vmem:[%s3937_s7 + $0x468] sm:$0xff]  ;;  %v1263_v10 = vadd.f32 %v1262_v0, %v480_v57  ;;  %v1135_v15 = vadd.f32 %v1134_v5, %v420_v62  ;;  %v630_v19 = vld [vmem:[%s3937_s7 + $0xcd8] sm:$0xff] }
  0x6f   : > { %3398 = vmatprep.subr.bf16.mxu1 %v3574_v26  ;;  %v540_v3 = vld [vmem:[%s3937_s7 + $0xa08] sm:$0xff]  ;;  %v878_v20 = vadd.f32 %v877_v9, %v290_v60  ;;  %v450_v22 = vld [vmem:[%s3937_s7 + $0x738] sm:$0xff] }
  0x70   : > { %3377 = vmatpush3.bf16.msra.mxu0 %v3573_v25  ;;  %v560_v8 = vld [vmem:[%s3937_s7 + $0xaa8] sm:$0xff]  ;;  %v1392_v16 = vadd.f32 %v550_v7, %v540_v3  ;;  %v1264_v21 = vadd.f32 %v1263_v10, %v490_v2  ;;  %v510_v23 = vld [vmem:[%s3937_s7 + $0x918] sm:$0xff]  ;;  %v1007_v25 = vadd.f32 %v1006_v14, %v360_v1  ;;  %v1136_v26 = vadd.f32 %v1135_v15, %v430_v6 }
  0x71   : > { %3378 = vmatprep.subr.bf16.mxu0 %v3576_v28  ;;  %v440_v12 = vld [vmem:[%s3937_s7 + $0x6e8] sm:$0xff]  ;;  %v879_v32 = vrot.slane %v878_v20, 4  ;;  %v710_v35 = vld [vmem:[%s3937_s7 + $0xf58] sm:$0xff] }
  0x72   : > { %3399 = vmatpush3.bf16.msra.mxu1 %v3575_v27  ;;  %v500_v13 = vld [vmem:[%s3937_s7 + $0x8c8] sm:$0xff]  ;;  %v1393_v27 = vadd.f32 %v1392_v16, %v560_v8  ;;  %v1008_v37 = vadd.f32 %v1007_v25, %v370_v11  ;;  %v1137_v38 = vadd.f32 %v1136_v26, %v440_v12  ;;  %v590_v41 = vld [vmem:[%s3937_s7 + $0xb98] sm:$0xff] }
  0x73   : > { %3400 = vmatprep.subr.bf16.mxu1 %v3578_v30  ;;  %v620_v18 = vld [vmem:[%s3937_s7 + $0xc88] sm:$0xff]  ;;  %v1265_v33 = vadd.f32 %v1264_v21, %v500_v13  ;;  %v880_v43 = vadd.f32 %v879_v32, %v878_v20  ;;  %v530_v46 = vld [vmem:[%s3937_s7 + $0x9b8] sm:$0xff] }
  0x74   : > { %3379 = vmatpush3.bf16.msra.mxu0 %v3577_v29  ;;  %v640_v24 = vld [vmem:[%s3937_s7 + $0xd28] sm:$0xff]  ;;  %v1522_v28 = vadd.f32 %v630_v19, %v620_v18  ;;  %v1394_v39 = vadd.f32 %v1393_v27, %v570_v17  ;;  %v730_v47 = vld [vmem:[%s3937_s7 + $0xff8] sm:$0xff]  ;;  %v1009_v49 = vrot.slane %v1008_v37, 4  ;;  %v1138_v50 = vadd.f32 %v1137_v38, %v450_v22 }
  0x75   : > { %v520_v29 = vld [vmem:[%s3937_s7 + $0x968] sm:$0xff]  ;;  %v1266_v44 = vadd.f32 %v1265_v33, %v510_v23  ;;  %v670_v54 = vld [vmem:[%s3937_s7 + $0xe18] sm:$0xff]  ;;  %v881_v56 = vrot.slane %v880_v43, 2 }
  0x76   : > { %3401 = vmatpush3.bf16.msra.mxu1 %v3579_v31  ;;  %v580_v30 = vld [vmem:[%s3937_s7 + $0xb48] sm:$0xff]  ;;  %v650_v31 = vld [vmem:[%s3937_s7 + $0xd78] sm:$0xff]  ;;  %v1523_v40 = vadd.f32 %v1522_v28, %v640_v24  ;;  %v1010_v62 = vadd.f32 %v1009_v49, %v1008_v37  ;;  %v1139_v63 = vrot.slane %v1138_v50, 4 }
  0x77   : > { %v700_v34 = vld [vmem:[%s3937_s7 + $0xf08] sm:$0xff]  ;;  %v1395_v51 = vadd.f32 %v1394_v39, %v580_v30  ;;  %v790_v55 = vld [vmem:[%s3937_s7 + $0x11d8] sm:$0xff]  ;;  %v1267_v57 = vadd.f32 %v1266_v44, %v520_v29  ;;  %v882_v3 = vadd.f32 %v881_v56, %v880_v43 }
  0x78   : > { %v720_v36 = vld [vmem:[%s3937_s7 + $0xfa8] sm:$0xff]  ;;  %v1652_v45 = vadd.f32 %v710_v35, %v700_v34  ;;  %v1524_v52 = vadd.f32 %v1523_v40, %v650_v31  ;;  %v610_v59 = vld [vmem:[%s3937_s7 + $0xc38] sm:$0xff]  ;;  %v1011_v9 = vrot.slane %v1010_v62, 2  ;;  %v1140_v10 = vadd.f32 %v1139_v63, %v1138_v50  ;;  %v239_v63 = vld [vmem:[%s3937_s7 + $0xa0] sm:$0xff] }
  0x79   : > { %v660_v42 = vld [vmem:[%s3937_s7 + $0xdc8] sm:$0xff]  ;;  %v1396_v0 = vadd.f32 %v1395_v51, %v590_v41  ;;  %v1268_v4 = vadd.f32 %v1267_v57, %v530_v46  ;;  %v750_v7 = vld [vmem:[%s3937_s7 + $0x1098] sm:$0xff]  ;;  %v883_v15 = vrot.slane %v882_v3, 1 }
  0x7a   : > { %v780_v48 = vld [vmem:[%s3937_s7 + $0x1188] sm:$0xff]  ;;  %v1653_v58 = vadd.f32 %v1652_v45, %v720_v36  ;;  %v1525_v1 = vadd.f32 %v1524_v52, %v660_v42  ;;  %v810_v8 = vld [vmem:[%s3937_s7 + $0x1278] sm:$0xff]  ;;  %v1012_v21 = vadd.f32 %v1011_v9, %v1010_v62  ;;  %v1141_v22 = vrot.slane %v1140_v10, 2 }
  0x7b   : > { %v600_v53 = vld [vmem:[%s3937_s7 + $0xbe8] sm:$0xff]  ;;  %v1782_v6 = vadd.f32 %v790_v55, %v780_v48  ;;  %v3580_v13 = vld [vmem:[#allocation5 + $0x178] sm:$0xff]   ;;  %v1269_v16 = vrot.slane %v1268_v4, 4  ;;  %v884_v25 = vadd.f32 %v883_v15, %v882_v3 }
  0x7c   : > { %v740_v60 = vld [vmem:[%s3937_s7 + $0x1048] sm:$0xff]  ;;  %v1654_v5 = vadd.f32 %v1653_v58, %v730_v47  ;;  %v1397_v11 = vadd.f32 %v1396_v0, %v600_v53  ;;  %v1526_v12 = vadd.f32 %v1525_v1, %v670_v54  ;;  %v690_v14 = vld [vmem:[%s3937_s7 + $0xeb8] sm:$0xff]  ;;  %3408 = vmatprep.subr.bf16.mxu0 %v3580_v13  ;;  %v1013_v31 = vrot.slane %v1012_v21, 1  ;;  %v219_v53 = vld [vmem:[%s3937_s7] sm:$0xff] }
  0x7d   : > { %v800_v61 = vld [vmem:[%s3937_s7 + $0x1228] sm:$0xff]  ;;  %v1270_v26 = vadd.f32 %v1269_v16, %v1268_v4  ;;  %v770_v29 = vld [vmem:[%s3937_s7 + $0x1138] sm:$0xff]  ;;  %v1142_v32 = vadd.f32 %v1141_v22, %v1140_v10  ;;  %v1900_v38 = vmul.f32 0.015625, %v884_v25  ;;  %v229_v54 = vld [vmem:[%s3937_s7 + $0x50] sm:$0xff] }
  0x7e   : > { %v680_v2 = vld [vmem:[%s3937_s7 + $0xe68] sm:$0xff]  ;;  %v1655_v17 = vadd.f32 %v1654_v5, %v740_v60  ;;  %v1783_v18 = vadd.f32 %v1782_v6, %v800_v61  ;;  %v1398_v23 = vadd.f32 %v1397_v11, %v610_v59  ;;  %v830_v30 = vld [vmem:[%s3937_s7 + $0x1318] sm:$0xff]  ;;  %v1014_v40 = vadd.f32 %v1013_v31, %v1012_v21  ;;  %v309_v13 = vld [vmem:[%s3937_s7 + $0x2d0] sm:$0xff] }
  0x7f   : > { %v760_v19 = vld [vmem:[%s3937_s7 + $0x10e8] sm:$0xff]  ;;  %v1527_v24 = vadd.f32 %v1526_v12, %v680_v2  ;;  %v1271_v35 = vrot.slane %v1270_v26, 2  ;;  %v1143_v41 = vrot.slane %v1142_v32, 1  ;;  %v1980_v47 = vpack.c.bf16 %v1900_v38, %v1900_v38  ;;  %v850_v48 = vld [vmem:[%s3937_s7 + $0x13b8] sm:$0xff]  ;;  %v299_v12 = vld [vmem:[%s3937_s7 + $0x280] sm:$0xff] }
  0x80   : > { %v820_v20 = vld [vmem:[%s3937_s7 + $0x12c8] sm:$0xff]  ;;  %v1656_v27 = vadd.f32 %v1655_v17, %v750_v7  ;;  %v1784_v28 = vadd.f32 %v1783_v18, %v810_v8  ;;  %v1399_v33 = vrot.slane %v1398_v23, 4  ;;  %v1910_v52 = vmul.f32 0.015625, %v1014_v40  ;;  %v249_v8 = vld [vmem:[%s3937_s7 + $0xf0] sm:$0xff]  ;;  %v279_v40 = vld [vmem:[%s3937_s7 + $0x1e0] sm:$0xff] }
  0x81   : > { %v1528_v34 = vadd.f32 %v1527_v24, %v690_v14  ;;  %v840_v39 = vld [vmem:[%s3937_s7 + $0x1368] sm:$0xff]  ;;  %v1272_v44 = vadd.f32 %v1271_v35, %v1270_v26  ;;  %v1144_v49 = vadd.f32 %v1143_v41, %v1142_v32  ;;  %v2307_v58 = vunpack.c.l.b16 %v1980_v47  ;;  %v379_v24 = vld [vmem:[%s3937_s7 + $0x500] sm:$0xff]  ;;  %v389_v25 = vld [vmem:[%s3937_s7 + $0x550] sm:$0xff] }
  0x82   : > { %v1657_v36 = vadd.f32 %v1656_v27, %v760_v19  ;;  %v1785_v37 = vadd.f32 %v1784_v28, %v820_v20  ;;  %v1400_v42 = vadd.f32 %v1399_v33, %v1398_v23  ;;  %v1990_v62 = vpack.c.bf16 %v1910_v52, %v1910_v52  ;;  %v259_v19 = vld [vmem:[%s3937_s7 + $0x140] sm:$0xff]  ;;  %v329_v35 = vld [vmem:[%s3937_s7 + $0x370] sm:$0xff] }
  0x83   : > { %v1529_v43 = vrot.slane %v1528_v34, 4  ;;  %v1273_v55 = vrot.slane %v1272_v44, 1  ;;  %v1920_v61 = vmul.f32 0.015625, %v1144_v49  ;;  %v859_v3 = vadd.f32 %v229_v54, %v219_v53  ;;  %v319_v23 = vld [vmem:[%s3937_s7 + $0x320] sm:$0xff]  ;;  %v349_v54 = vld [vmem:[%s3937_s7 + $0x410] sm:$0xff] }
  0x84   : > { %v1658_v45 = vadd.f32 %v1657_v36, %v770_v29  ;;  %v1786_v46 = vadd.f32 %v1785_v37, %v830_v30  ;;  %v1401_v50 = vrot.slane %v1400_v42, 2  ;;  %v2317_v7 = vunpack.c.l.b16 %v1990_v62  ;;  %v269_v30 = vld [vmem:[%s3937_s7 + $0x190] sm:$0xff]  ;;  %v399_v36 = vld [vmem:[%s3937_s7 + $0x5a0] sm:$0xff] }
  0x85   : > { %v1530_v51 = vadd.f32 %v1529_v43, %v1528_v34  ;;  %v1274_v0 = vadd.f32 %v1273_v55, %v1272_v44  ;;  %v2000_v6 = vpack.c.bf16 %v1920_v61, %v1920_v61  ;;  %v860_v14 = vadd.f32 %v859_v3, %v239_v63  ;;  %v459_v41 = vld [vmem:[%s3937_s7 + $0x780] sm:$0xff]  ;;  %v549_v63 = vld [vmem:[%s3937_s7 + $0xa50] sm:$0xff] }
  0x86   : > { %v1659_v56 = vrot.slane %v1658_v45, 4  ;;  %v1787_v57 = vadd.f32 %v1786_v46, %v840_v39  ;;  %v1402_v59 = vadd.f32 %v1401_v50, %v1400_v42  ;;  %v2400_v18 = vsel %vm2386_vm0, %v2317_v7, %v2307_v58  ;;  %v469_v42 = vld [vmem:[%s3937_s7 + $0x7d0] sm:$0xff]  ;;  %v339_v49 = vld [vmem:[%s3937_s7 + $0x3c0] sm:$0xff] }
  0x87   : > { %v1531_v60 = vrot.slane %v1530_v51, 2  ;;  %v1930_v11 = vmul.f32 0.015625, %v1274_v0  ;;  %v2327_v17 = vunpack.c.l.b16 %v2000_v6  ;;  %v861_v26 = vadd.f32 %v860_v14, %v249_v8  ;;  %v409_v50 = vld [vmem:[%s3937_s7 + $0x5f0] sm:$0xff]  ;;  %v419_v55 = vld [vmem:[%s3937_s7 + $0x640] sm:$0xff] }
  0x88   : > { %v1660_v1 = vadd.f32 %v1659_v56, %v1658_v45  ;;  %v1788_v2 = vadd.f32 %v1787_v57, %v850_v48  ;;  %v1403_v4 = vrot.slane %v1402_v59, 1  ;;  %v989_v31 = vadd.f32 %v309_v13, %v299_v12  ;;  %v289_v48 = vld [vmem:[%s3937_s7 + $0x230] sm:$0xff]  ;;  %v479_v56 = vld [vmem:[%s3937_s7 + $0x820] sm:$0xff] }
  0x89   : > { %v1532_v5 = vadd.f32 %v1531_v60, %v1530_v51  ;;  %v2010_v22 = vpack.c.bf16 %v1930_v11, %v1930_v11  ;;  %v2401_v29 = vsel %vm2388_vm1, %v2327_v17, %v2400_v18  ;;  %v862_v37 = vadd.f32 %v861_v26, %v259_v19  ;;  %v359_v61 = vld [vmem:[%s3937_s7 + $0x460] sm:$0xff]  ;;  %v629_v12 = vld [vmem:[%s3937_s7 + $0xcd0] sm:$0xff] }
  0x8a   : > { %v1661_v9 = vrot.slane %v1660_v1, 2  ;;  %v1789_v10 = vrot.slane %v1788_v2, 4  ;;  %v1404_v15 = vadd.f32 %v1403_v4, %v1402_v59  ;;  %v990_v43 = vadd.f32 %v989_v31, %v319_v23  ;;  %v539_v62 = vld [vmem:[%s3937_s7 + $0xa00] sm:$0xff]  ;;  %v429_v4 = vld [vmem:[%s3937_s7 + $0x690] sm:$0xff] }
  0x8b   : > { %v1533_v16 = vrot.slane %v1532_v5, 1  ;;  %v2337_v34 = vunpack.c.l.b16 %v2010_v22  ;;  %v1119_v44 = vadd.f32 %v389_v25, %v379_v24  ;;  %v863_v51 = vadd.f32 %v862_v37, %v269_v30  ;;  %v619_v11 = vld [vmem:[%s3937_s7 + $0xc80] sm:$0xff]  ;;  %v569_v24 = vld [vmem:[%s3937_s7 + $0xaf0] sm:$0xff] }
  0x8c   : > { %v1662_v20 = vadd.f32 %v1661_v9, %v1660_v1  ;;  %v1790_v21 = vadd.f32 %v1789_v10, %v1788_v2  ;;  %v1940_v28 = vmul.f32 0.015625, %v1404_v15  ;;  %v991_v57 = vadd.f32 %v990_v43, %v329_v35  ;;  %v559_v10 = vld [vmem:[%s3937_s7 + $0xaa0] sm:$0xff]  ;;  %v709_v30 = vld [vmem:[%s3937_s7 + $0xf50] sm:$0xff] }
  0x8d   : > { %v1534_v27 = vadd.f32 %v1533_v16, %v1532_v5  ;;  %v2402_v47 = vsel %vm2390_vm2, %v2337_v34, %v2401_v29  ;;  %v1120_v58 = vadd.f32 %v1119_v44, %v399_v36  ;;  %v864_v0 = vadd.f32 %v863_v51, %v279_v40  ;;  %v489_v5 = vld [vmem:[%s3937_s7 + $0x870] sm:$0xff]  ;;  %v499_v17 = vld [vmem:[%s3937_s7 + $0x8c0] sm:$0xff] }
  0x8e   : > { %v1663_v32 = vrot.slane %v1662_v20, 1  ;;  %v1791_v33 = vrot.slane %v1790_v21, 2  ;;  %v2020_v39 = vpack.c.bf16 %v1940_v28, %v1940_v28  ;;  %v1249_v1 = vadd.f32 %v469_v42, %v459_v41  ;;  %v369_v16 = vld [vmem:[%s3937_s7 + $0x4b0] sm:$0xff]  ;;  %v439_v23 = vld [vmem:[%s3937_s7 + $0x6e0] sm:$0xff] }
  0x8f   : > { %v1950_v38 = vmul.f32 0.015625, %v1534_v27  ;;  %v992_v6 = vadd.f32 %v991_v57, %v339_v49  ;;  %v1121_v7 = vadd.f32 %v1120_v58, %v409_v50  ;;  %v865_v13 = vadd.f32 %v864_v0, %v289_v48  ;;  %v639_v25 = vld [vmem:[%s3937_s7 + $0xd20] sm:$0xff]  ;;  %v509_v28 = vld [vmem:[%s3937_s7 + $0x910] sm:$0xff] }
  0x90   : > { %v1664_v45 = vadd.f32 %v1663_v32, %v1662_v20  ;;  %v1792_v46 = vadd.f32 %v1791_v33, %v1790_v21  ;;  %v2347_v53 = vunpack.c.l.b16 %v2020_v39  ;;  %v1250_v14 = vadd.f32 %v1249_v1, %v479_v56  ;;  %v699_v29 = vld [vmem:[%s3937_s7 + $0xf00] sm:$0xff]  ;;  %v449_v37 = vld [vmem:[%s3937_s7 + $0x730] sm:$0xff] }
  0x91   : > { %v2030_v52 = vpack.c.bf16 %v1950_v38, %v1950_v38  ;;  %v993_v18 = vadd.f32 %v992_v6, %v349_v54  ;;  %v1122_v19 = vadd.f32 %v1121_v7, %v419_v55  ;;  %v1379_v20 = vadd.f32 %v549_v63, %v539_v62  ;;  %v579_v38 = vld [vmem:[%s3937_s7 + $0xb40] sm:$0xff]  ;;  %v649_v39 = vld [vmem:[%s3937_s7 + $0xd70] sm:$0xff] }
  0x92   : > { %v1793_v59 = vrot.slane %v1792_v46, 1  ;;  %v1960_v60 = vmul.f32 0.015625, %v1664_v45  ;;  %v2403_v3 = vsel %vm2392_vm3, %v2347_v53, %v2402_v47  ;;  %v866_v26 = vrot.slane %v865_v13, 4  ;;  %v519_v42 = vld [vmem:[%s3937_s7 + $0x960] sm:$0xff]  ;;  %v589_v49 = vld [vmem:[%s3937_s7 + $0xb90] sm:$0xff] }
  0x93   : > { %v2357_v2 = vunpack.c.l.b16 %v2030_v52  ;;  %v1251_v27 = vadd.f32 %v1250_v14, %v489_v5  ;;  %v994_v31 = vadd.f32 %v993_v18, %v359_v61  ;;  %v1123_v32 = vadd.f32 %v1122_v19, %v429_v4  ;;  %v719_v43 = vld [vmem:[%s3937_s7 + $0xfa0] sm:$0xff]  ;;  %v529_v53 = vld [vmem:[%s3937_s7 + $0x9b0] sm:$0xff] }
  0x94   : > { %v1794_v8 = vadd.f32 %v1793_v59, %v1792_v46  ;;  %v2040_v9 = vpack.c.bf16 %v1960_v60, %v1960_v60  ;;  %v1380_v33 = vadd.f32 %v1379_v20, %v559_v10  ;;  %v1509_v34 = vadd.f32 %v629_v12, %v619_v11  ;;  %v659_v54 = vld [vmem:[%s3937_s7 + $0xdc0] sm:$0xff]  ;;  %v729_v55 = vld [vmem:[%s3937_s7 + $0xff0] sm:$0xff] }
  0x95   : > { %v2404_v15 = vsel %vm2394_vm4, %v2357_v2, %v2403_v3  ;;  %v867_v40 = vadd.f32 %v866_v26, %v865_v13  ;;  %v1252_v41 = vadd.f32 %v1251_v27, %v499_v17  ;;  %v995_v44 = vadd.f32 %v994_v31, %v369_v16  ;;  %v599_v61 = vld [vmem:[%s3937_s7 + $0xbe0] sm:$0xff]  ;;  %v789_v63 = vld [vmem:[%s3937_s7 + $0x11d0] sm:$0xff] }
  0x96   : > { %v1970_v21 = vmul.f32 0.015625, %v1794_v8  ;;  %v2367_v22 = vunpack.c.l.b16 %v2040_v9  ;;  %v1124_v45 = vadd.f32 %v1123_v32, %v439_v23  ;;  %v1381_v46 = vadd.f32 %v1380_v33, %v569_v24  ;;  %v779_v62 = vld [vmem:[%s3937_s7 + $0x1180] sm:$0xff]  ;;  %v669_v4 = vld [vmem:[%s3937_s7 + $0xe10] sm:$0xff] }
  0x97   : > { %v1510_v47 = vadd.f32 %v1509_v34, %v639_v25  ;;  %v868_v50 = vrot.slane %v867_v40, 2  ;;  %v1253_v51 = vadd.f32 %v1252_v41, %v509_v28  ;;  %v1639_v52 = vadd.f32 %v709_v30, %v699_v29  ;;  %v739_v5 = vld [vmem:[%s3937_s7 + $0x1040] sm:$0xff]  ;;  %v609_v9 = vld [vmem:[%s3937_s7 + $0xc30] sm:$0xff] }
  0x98   : > { %v2050_v35 = vpack.c.bf16 %v1970_v21, %v1970_v21  ;;  %v2405_v36 = vsel %vm2396_vm5, %v2367_v22, %v2404_v15  ;;  %v996_v56 = vrot.slane %v995_v44, 4  ;;  %v1125_v57 = vadd.f32 %v1124_v45, %v449_v37  ;;  %v799_v10 = vld [vmem:[%s3937_s7 + $0x1220] sm:$0xff]  ;;  %v749_v16 = vld [vmem:[%s3937_s7 + $0x1090] sm:$0xff] }
  0x99   : > { %v1382_v58 = vadd.f32 %v1381_v46, %v579_v38  ;;  %v1511_v59 = vadd.f32 %v1510_v47, %v649_v39  ;;  %v869_v0 = vadd.f32 %v868_v50, %v867_v40  ;;  %v1254_v1 = vadd.f32 %v1253_v51, %v519_v42  ;;  %v679_v15 = vld [vmem:[%s3937_s7 + $0xe60] sm:$0xff]  ;;  %v809_v21 = vld [vmem:[%s3937_s7 + $0x1270] sm:$0xff]  ;;  %v222_v51 = vld [vmem:[%s3937_s7 + $0x18] sm:$0xff] }
  0x9a   : > { %v2377_v48 = vunpack.c.l.b16 %v2050_v35  ;;  %v1640_v2 = vadd.f32 %v1639_v52, %v719_v43  ;;  %v997_v6 = vadd.f32 %v996_v56, %v995_v44  ;;  %v1126_v7 = vrot.slane %v1125_v57, 4  ;;  %v689_v26 = vld [vmem:[%s3937_s7 + $0xeb0] sm:$0xff]  ;;  %v759_v27 = vld [vmem:[%s3937_s7 + $0x10e0] sm:$0xff]  ;;  %v232_v52 = vld [vmem:[%s3937_s7 + $0x68] sm:$0xff] }
  0x9b   : > { %v1383_v8 = vadd.f32 %v1382_v58, %v589_v49  ;;  %v870_v11 = vrot.slane %v869_v0, 1  ;;  %v1255_v12 = vadd.f32 %v1254_v1, %v529_v53  ;;  %v1512_v13 = vadd.f32 %v1511_v59, %v659_v54  ;;  %v819_v32 = vld [vmem:[%s3937_s7 + $0x12c0] sm:$0xff]  ;;  %v769_v37 = vld [vmem:[%s3937_s7 + $0x1130] sm:$0xff] }
  0x9c   : > { %v2406_v60 = vsel %vm2398_vm6, %v2377_v48, %v2405_v36  ;;  %v1641_v14 = vadd.f32 %v1640_v2, %v729_v55  ;;  %v998_v17 = vrot.slane %v997_v6, 2  ;;  %v1127_v18 = vadd.f32 %v1126_v7, %v1125_v57  ;;  %v829_v42 = vld [vmem:[%s3937_s7 + $0x1310] sm:$0xff]  ;;  %v839_v53 = vld [vmem:[%s3937_s7 + $0x1360] sm:$0xff] }
  0x9d   : > { %v2464_v3 = vpack.c.b16 %v2406_v60, %v2406_v60  ;;  %v1384_v19 = vadd.f32 %v1383_v8, %v599_v61  ;;  %v1769_v20 = vadd.f32 %v789_v63, %v779_v62  ;;  %v871_v22 = vadd.f32 %v870_v11, %v869_v0  ;;  %v242_v62 = vld [vmem:[%s3937_s7 + $0xb8] sm:$0xff]  ;;  %v849_v63 = vld [vmem:[%s3937_s7 + $0x13b0] sm:$0xff] }
  0x9e   : > { %v1256_v23 = vrot.slane %v1255_v12, 4  ;;  %v1513_v24 = vadd.f32 %v1512_v13, %v669_v4  ;;  %v1642_v25 = vadd.f32 %v1641_v14, %v739_v5  ;;  %v999_v28 = vadd.f32 %v998_v17, %v997_v6 }
  0x9f   : > { %2995 = vmatprep.mubr.bf16.mxu0 %v2464_v3  ;;  %v1128_v29 = vrot.slane %v1127_v18, 2  ;;  %v1385_v30 = vadd.f32 %v1384_v19, %v609_v9  ;;  %v1770_v31 = vadd.f32 %v1769_v20, %v799_v10  ;;  %v1899_v36 = vmul.f32 0.015625, %v871_v22  ;;  %v252_v3 = vld [vmem:[%s3937_s7 + $0x108] sm:$0xff]  ;;  %v3582_v9 = vld [vmem:[#allocation5 + $0x1f8] sm:$0xff]  }
  0xa0   : > { %v1257_v33 = vadd.f32 %v1256_v23, %v1255_v12  ;;  %v1514_v34 = vadd.f32 %v1513_v24, %v679_v15  ;;  %v1643_v35 = vadd.f32 %v1642_v25, %v749_v16  ;;  %v1000_v38 = vrot.slane %v999_v28, 1  ;;  %3430 = vmatprep.subr.bf16.mxu1 %v3582_v9  ;;  %v302_v22 = vld [vmem:[%s3937_s7 + $0x298] sm:$0xff]  ;;  %v312_v23 = vld [vmem:[%s3937_s7 + $0x2e8] sm:$0xff] }
  0xa1   : > { %v1129_v39 = vadd.f32 %v1128_v29, %v1127_v18  ;;  %v1386_v40 = vrot.slane %v1385_v30, 4  ;;  %v1771_v41 = vadd.f32 %v1770_v31, %v809_v21  ;;  %v1979_v46 = vpack.c.bf16 %v1899_v36, %v1899_v36  ;;  %v262_v18 = vld [vmem:[%s3937_s7 + $0x158] sm:$0xff]  ;;  %v272_v29 = vld [vmem:[%s3937_s7 + $0x1a8] sm:$0xff] }
  0xa2   : > { %v1258_v43 = vrot.slane %v1257_v33, 2  ;;  %v1515_v44 = vadd.f32 %v1514_v34, %v689_v26  ;;  %v1644_v45 = vadd.f32 %v1643_v35, %v759_v27  ;;  %v1001_v47 = vadd.f32 %v1000_v38, %v999_v28  ;;  %v382_v34 = vld [vmem:[%s3937_s7 + $0x518] sm:$0xff]  ;;  %v392_v35 = vld [vmem:[%s3937_s7 + $0x568] sm:$0xff] }
  0xa3   : > { %v1130_v48 = vrot.slane %v1129_v39, 1  ;;  %v1387_v49 = vadd.f32 %v1386_v40, %v1385_v30  ;;  %v1772_v50 = vadd.f32 %v1771_v41, %v819_v32  ;;  %v2306_v57 = vunpack.c.l.b16 %v1979_v46  ;;  %v282_v40 = vld [vmem:[%s3937_s7 + $0x1f8] sm:$0xff] }
  0xa4   : > { %v1259_v54 = vadd.f32 %v1258_v43, %v1257_v33  ;;  %v1516_v55 = vrot.slane %v1515_v44, 4  ;;  %v1645_v56 = vadd.f32 %v1644_v45, %v769_v37  ;;  %v1909_v61 = vmul.f32 0.015625, %v1001_v47  ;;  %v322_v33 = vld [vmem:[%s3937_s7 + $0x338] sm:$0xff]  ;;  %v332_v45 = vld [vmem:[%s3937_s7 + $0x388] sm:$0xff] }
  0xa5   : > { %v1131_v58 = vadd.f32 %v1130_v48, %v1129_v39  ;;  %v1388_v59 = vrot.slane %v1387_v49, 2  ;;  %v1773_v60 = vadd.f32 %v1772_v50, %v829_v42  ;;  %v898_v4 = vadd.f32 %v232_v52, %v222_v51  ;;  %v402_v46 = vld [vmem:[%s3937_s7 + $0x5b8] sm:$0xff]  ;;  %v292_v50 = vld [vmem:[%s3937_s7 + $0x248] sm:$0xff] }
  0xa6   : > { %v1260_v0 = vrot.slane %v1259_v54, 1  ;;  %v1517_v1 = vadd.f32 %v1516_v55, %v1515_v44  ;;  %v1646_v2 = vrot.slane %v1645_v56, 4  ;;  %v1989_v8 = vpack.c.bf16 %v1909_v61, %v1909_v61  ;;  %v462_v51 = vld [vmem:[%s3937_s7 + $0x798] sm:$0xff]  ;;  %v472_v52 = vld [vmem:[%s3937_s7 + $0x7e8] sm:$0xff] }
  0xa7   : > { %v1389_v5 = vadd.f32 %v1388_v59, %v1387_v49  ;;  %v1774_v6 = vadd.f32 %v1773_v60, %v839_v53  ;;  %v1919_v7 = vmul.f32 0.015625, %v1131_v58  ;;  %v899_v13 = vadd.f32 %v898_v4, %v242_v62  ;;  %v342_v58 = vld [vmem:[%s3937_s7 + $0x3d8] sm:$0xff]  ;;  %v412_v59 = vld [vmem:[%s3937_s7 + $0x608] sm:$0xff] }
  0xa8   : > { %v1261_v10 = vadd.f32 %v1260_v0, %v1259_v54  ;;  %v1518_v11 = vrot.slane %v1517_v1, 2  ;;  %v1647_v12 = vadd.f32 %v1646_v2, %v1645_v56  ;;  %v2316_v17 = vunpack.c.l.b16 %v1989_v8  ;;  %v482_v0 = vld [vmem:[%s3937_s7 + $0x838] sm:$0xff] }
  0xa9   : > { %v1390_v14 = vrot.slane %v1389_v5, 1  ;;  %v1775_v15 = vadd.f32 %v1774_v6, %v849_v63  ;;  %v1999_v16 = vpack.c.bf16 %v1919_v7, %v1919_v7  ;;  %v900_v24 = vadd.f32 %v899_v13, %v252_v3  ;;  %v352_v63 = vld [vmem:[%s3937_s7 + $0x428] sm:$0xff]  ;;  %v542_v6 = vld [vmem:[%s3937_s7 + $0xa18] sm:$0xff] }
  0xaa   : > { %v1519_v19 = vadd.f32 %v1518_v11, %v1517_v1  ;;  %v1648_v20 = vrot.slane %v1647_v12, 2  ;;  %v1929_v21 = vmul.f32 0.015625, %v1261_v10  ;;  %v2387_v28 = vsel %vm2386_vm0, %v2316_v17, %v2306_v57  ;;  %v552_v7 = vld [vmem:[%s3937_s7 + $0xa68] sm:$0xff] }
  0xab   : > { %v1391_v25 = vadd.f32 %v1390_v14, %v1389_v5  ;;  %v1776_v26 = vrot.slane %v1775_v15, 4  ;;  %v2326_v27 = vunpack.c.l.b16 %v1999_v16  ;;  %v901_v36 = vadd.f32 %v900_v24, %v262_v18  ;;  %v422_v5 = vld [vmem:[%s3937_s7 + $0x658] sm:$0xff]  ;;  %v492_v13 = vld [vmem:[%s3937_s7 + $0x888] sm:$0xff] }
  0xac   : > { %v1520_v30 = vrot.slane %v1519_v19, 1  ;;  %v1649_v31 = vadd.f32 %v1648_v20, %v1647_v12  ;;  %v2009_v32 = vpack.c.bf16 %v1929_v21, %v1929_v21  ;;  %v1028_v41 = vadd.f32 %v312_v23, %v302_v22  ;;  %v362_v12 = vld [vmem:[%s3937_s7 + $0x478] sm:$0xff]  ;;  %v372_v18 = vld [vmem:[%s3937_s7 + $0x4c8] sm:$0xff] }
  0xad   : > { %v1777_v37 = vadd.f32 %v1776_v26, %v1775_v15  ;;  %v1939_v38 = vmul.f32 0.015625, %v1391_v25  ;;  %v2389_v39 = vsel %vm2388_vm1, %v2326_v27, %v2387_v28  ;;  %v902_v47 = vadd.f32 %v901_v36, %v272_v29  ;;  %v562_v20 = vld [vmem:[%s3937_s7 + $0xab8] sm:$0xff]  ;;  %v632_v26 = vld [vmem:[%s3937_s7 + $0xce8] sm:$0xff] }
  0xae   : > { %v1521_v42 = vadd.f32 %v1520_v30, %v1519_v19  ;;  %v1650_v43 = vrot.slane %v1649_v31, 1  ;;  %v2336_v44 = vunpack.c.l.b16 %v2009_v32  ;;  %v1029_v53 = vadd.f32 %v1028_v41, %v322_v33  ;;  %v432_v19 = vld [vmem:[%s3937_s7 + $0x6a8] sm:$0xff]  ;;  %v502_v24 = vld [vmem:[%s3937_s7 + $0x8d8] sm:$0xff] }
  0xaf   : > { %v1778_v48 = vrot.slane %v1777_v37, 2  ;;  %v2019_v49 = vpack.c.bf16 %v1939_v38, %v1939_v38  ;;  %v1158_v54 = vadd.f32 %v392_v35, %v382_v34  ;;  %v903_v60 = vadd.f32 %v902_v47, %v282_v40  ;;  %v622_v25 = vld [vmem:[%s3937_s7 + $0xc98] sm:$0xff]  ;;  %v512_v33 = vld [vmem:[%s3937_s7 + $0x928] sm:$0xff] }
  0xb0   : > { %v1651_v55 = vadd.f32 %v1650_v43, %v1649_v31  ;;  %v1949_v56 = vmul.f32 0.015625, %v1521_v42  ;;  %v2391_v57 = vsel %vm2390_vm2, %v2336_v44, %v2389_v39  ;;  %v1030_v1 = vadd.f32 %v1029_v53, %v332_v45  ;;  %v442_v32 = vld [vmem:[%s3937_s7 + $0x6f8] sm:$0xff]  ;;  %v572_v34 = vld [vmem:[%s3937_s7 + $0xb08] sm:$0xff] }
  0xb1   : > { %v1779_v61 = vadd.f32 %v1778_v48, %v1777_v37  ;;  %v2346_v62 = vunpack.c.l.b16 %v2019_v49  ;;  %v1159_v2 = vadd.f32 %v1158_v54, %v402_v46  ;;  %v904_v8 = vadd.f32 %v903_v60, %v292_v50  ;;  %v642_v38 = vld [vmem:[%s3937_s7 + $0xd38] sm:$0xff]  ;;  %v712_v40 = vld [vmem:[%s3937_s7 + $0xf68] sm:$0xff] }
  0xb2   : > { %v1959_v3 = vmul.f32 0.015625, %v1651_v55  ;;  %v2029_v4 = vpack.c.bf16 %v1949_v56, %v1949_v56  ;;  %v1288_v9 = vadd.f32 %v472_v52, %v462_v51  ;;  %v1031_v14 = vadd.f32 %v1030_v1, %v342_v58  ;;  %v702_v39 = vld [vmem:[%s3937_s7 + $0xf18] sm:$0xff]  ;;  %v452_v45 = vld [vmem:[%s3937_s7 + $0x748] sm:$0xff] }
  0xb3   : > { %v1780_v10 = vrot.slane %v1779_v61, 1  ;;  %v2393_v11 = vsel %vm2392_vm3, %v2346_v62, %v2391_v57  ;;  %v1160_v15 = vadd.f32 %v1159_v2, %v412_v59  ;;  %v905_v21 = vrot.slane %v904_v8, 4  ;;  %v582_v46 = vld [vmem:[%s3937_s7 + $0xb58] sm:$0xff]  ;;  %v652_v52 = vld [vmem:[%s3937_s7 + $0xd88] sm:$0xff] }
  0xb4   : > { %v2039_v16 = vpack.c.bf16 %v1959_v3, %v1959_v3  ;;  %v2356_v17 = vunpack.c.l.b16 %v2029_v4  ;;  %v1289_v22 = vadd.f32 %v1288_v9, %v482_v0  ;;  %v1032_v27 = vadd.f32 %v1031_v14, %v352_v63  ;;  %v522_v51 = vld [vmem:[%s3937_s7 + $0x978] sm:$0xff]  ;;  %v532_v57 = vld [vmem:[%s3937_s7 + $0x9c8] sm:$0xff] }
  0xb5   : > { %v1781_v23 = vadd.f32 %v1780_v10, %v1779_v61  ;;  %v1161_v28 = vadd.f32 %v1160_v15, %v422_v5  ;;  %v1418_v29 = vadd.f32 %v552_v7, %v542_v6  ;;  %v906_v35 = vadd.f32 %v905_v21, %v904_v8  ;;  %v722_v53 = vld [vmem:[%s3937_s7 + $0xfb8] sm:$0xff]  ;;  %v592_v58 = vld [vmem:[%s3937_s7 + $0xba8] sm:$0xff] }
  0xb6   : > { %v2366_v30 = vunpack.c.l.b16 %v2039_v16  ;;  %v2395_v31 = vsel %vm2394_vm4, %v2356_v17, %v2393_v11  ;;  %v1290_v36 = vadd.f32 %v1289_v22, %v492_v13  ;;  %v1033_v41 = vadd.f32 %v1032_v27, %v362_v12  ;;  %v3581_v0 = vld [vmem:[#allocation5 + $0x138] sm:$0xff]   ;;  %v672_v3 = vld [vmem:[%s3937_s7 + $0xe28] sm:$0xff] }
  0xb7   : > { %v1969_v37 = vmul.f32 0.015625, %v1781_v23  ;;  %v1162_v42 = vadd.f32 %v1161_v28, %v432_v19  ;;  %v1419_v43 = vadd.f32 %v1418_v29, %v562_v20  ;;  %v907_v47 = vrot.slane %v906_v35, 2  ;;  %v602_v1 = vld [vmem:[%s3937_s7 + $0xbf8] sm:$0xff]  ;;  %v612_v7 = vld [vmem:[%s3937_s7 + $0xc48] sm:$0xff] }
  0xb8   : > { %v2397_v44 = vsel %vm2396_vm5, %v2366_v30, %v2395_v31  ;;  %v1291_v48 = vadd.f32 %v1290_v36, %v502_v24  ;;  %v1548_v49 = vadd.f32 %v632_v26, %v622_v25  ;;  %v1034_v54 = vadd.f32 %v1033_v41, %v372_v18  ;;  %v662_v2 = vld [vmem:[%s3937_s7 + $0xdd8] sm:$0xff]  ;;  %v732_v8 = vld [vmem:[%s3937_s7 + $0x1008] sm:$0xff] }
  0xb9   : > { %v2049_v50 = vpack.c.bf16 %v1969_v37, %v1969_v37  ;;  %v1163_v55 = vadd.f32 %v1162_v42, %v442_v32  ;;  %v1420_v56 = vadd.f32 %v1419_v43, %v572_v34  ;;  %v908_v59 = vadd.f32 %v907_v47, %v906_v35  ;;  %v742_v9 = vld [vmem:[%s3937_s7 + $0x1058] sm:$0xff]  ;;  %v792_v17 = vld [vmem:[%s3937_s7 + $0x11e8] sm:$0xff]  ;;  %v3584_v32 = vld [vmem:[#allocation5 + $0x170] sm:$0xff]  }
  0xba   : > { %v1292_v60 = vadd.f32 %v1291_v48, %v512_v33  ;;  %v1549_v61 = vadd.f32 %v1548_v49, %v642_v38  ;;  %v1678_v62 = vadd.f32 %v712_v40, %v702_v39  ;;  %v1035_v4 = vrot.slane %v1034_v54, 4  ;;  %v782_v10 = vld [vmem:[%s3937_s7 + $0x1198] sm:$0xff]  ;;  %v752_v22 = vld [vmem:[%s3937_s7 + $0x10a8] sm:$0xff] }
  0xbb   : > { %v2376_v63 = vunpack.c.l.b16 %v2049_v50  ;;  %v1164_v5 = vadd.f32 %v1163_v55, %v452_v45  ;;  %v1421_v6 = vadd.f32 %v1420_v56, %v582_v46  ;;  %v909_v11 = vrot.slane %v908_v59, 1  ;;  %v682_v16 = vld [vmem:[%s3937_s7 + $0xe78] sm:$0xff]  ;;  %v692_v27 = vld [vmem:[%s3937_s7 + $0xec8] sm:$0xff]  ;;  %v3585_v45 = vld [vmem:[#allocation5 + $0x130] sm:$0xff]  }
  0xbc   : > { %v1293_v12 = vadd.f32 %v1292_v60, %v522_v51  ;;  %v1550_v13 = vadd.f32 %v1549_v61, %v652_v52  ;;  %v1679_v14 = vadd.f32 %v1678_v62, %v722_v53  ;;  %v1036_v18 = vadd.f32 %v1035_v4, %v1034_v54  ;;  %v802_v23 = vld [vmem:[%s3937_s7 + $0x1238] sm:$0xff]  ;;  %v812_v34 = vld [vmem:[%s3937_s7 + $0x1288] sm:$0xff]  ;;  %v231_v56 = vld [vmem:[%s3937_s7 + $0x60] sm:$0xff] }
  0xbd   : > { %v2399_v15 = vsel %vm2398_vm6, %v2376_v63, %v2397_v44  ;;  %v1165_v19 = vrot.slane %v1164_v5, 4  ;;  %v1422_v20 = vadd.f32 %v1421_v6, %v592_v58  ;;  %v910_v24 = vadd.f32 %v909_v11, %v908_v59  ;;  %v762_v33 = vld [vmem:[%s3937_s7 + $0x10f8] sm:$0xff]  ;;  %v221_v44 = vld [vmem:[%s3937_s7 + $0x10] sm:$0xff]  ;;  %v772_v46 = vld [vmem:[%s3937_s7 + $0x1148] sm:$0xff] }
  0xbe   : > { %v2463_v21 = vpack.c.b16 %v2399_v15, %v2399_v15  ;;  %v1294_v25 = vadd.f32 %v1293_v12, %v532_v57  ;;  %v1551_v26 = vadd.f32 %v1550_v13, %v662_v2  ;;  %v1037_v28 = vrot.slane %v1036_v18, 2  ;;  %v822_v39 = vld [vmem:[%s3937_s7 + $0x12d8] sm:$0xff]  ;;  %v832_v51 = vld [vmem:[%s3937_s7 + $0x1328] sm:$0xff]  ;;  %v241_v62 = vld [vmem:[%s3937_s7 + $0xb0] sm:$0xff] }
  0xbf   : > { %v1166_v29 = vadd.f32 %v1165_v19, %v1164_v5  ;;  %v1423_v30 = vadd.f32 %v1422_v20, %v602_v1  ;;  %v1680_v31 = vadd.f32 %v1679_v14, %v732_v8  ;;  %v1808_v37 = vadd.f32 %v792_v17, %v782_v10  ;;  %v3588_v57 = vld [vmem:[#allocation5 + $0x168] sm:$0xff]   ;;  %v842_v63 = vld [vmem:[%s3937_s7 + $0x1378] sm:$0xff]  ;;  %v251_v4 = vld [vmem:[%s3937_s7 + $0x100] sm:$0xff] }
  0xc0   : > { %2996 = vmatmul.mubr.bf16.vlgmr.msra.gmra.mxu0 %v2463_v21  ;;  %v1295_v35 = vrot.slane %v1294_v25, 4  ;;  %v1552_v36 = vadd.f32 %v1551_v26, %v672_v3  ;;  %v1902_v38 = vmul.f32 0.015625, %v910_v24  ;;  %v1038_v40 = vadd.f32 %v1037_v28, %v1036_v18  ;;  %v3589_v5 = vld [vmem:[#allocation5 + $0x128] sm:$0xff]   ;;  %v3592_v10 = vld [vmem:[#allocation5 + $0x160] sm:$0xff]   ;;  %v261_v19 = vld [vmem:[%s3937_s7 + $0x150] sm:$0xff] }
  0xc1   : > { %3409 = vmatpush3.bf16.msra.mxu0 %v3581_v0  ;;  %v1167_v41 = vrot.slane %v1166_v29, 2  ;;  %v1424_v42 = vadd.f32 %v1423_v30, %v612_v7  ;;  %v1681_v43 = vadd.f32 %v1680_v31, %v742_v9  ;;  %v1809_v49 = vadd.f32 %v1808_v37, %v802_v23  ;;  %v852_v11 = vld [vmem:[%s3937_s7 + $0x13c8] sm:$0xff]  ;;  %v3593_v26 = vld [vmem:[#allocation5 + $0x120] sm:$0xff]   ;;  %v301_v30 = vld [vmem:[%s3937_s7 + $0x290] sm:$0xff] }
  0xc2   : > { %v1296_v47 = vadd.f32 %v1295_v35, %v1294_v25  ;;  %v1553_v48 = vadd.f32 %v1552_v36, %v682_v16  ;;  %v1982_v50 = vpack.c.bf16 %v1902_v38, %v1902_v38  ;;  %3410 = vmatprep.subr.bf16.mxu0 %v3584_v32  ;;  %v1039_v52 = vrot.slane %v1038_v40, 1  ;;  %v271_v25 = vld [vmem:[%s3937_s7 + $0x1a0] sm:$0xff]  ;;  %v3596_v32 = vld [vmem:[#allocation5 + $0x158] sm:$0xff]   ;;  %v281_v37 = vld [vmem:[%s3937_s7 + $0x1f0] sm:$0xff] }
  0xc3   : > { %v1168_v53 = vadd.f32 %v1167_v41, %v1166_v29  ;;  %v1425_v54 = vrot.slane %v1424_v42, 4  ;;  %v1682_v55 = vadd.f32 %v1681_v43, %v752_v22  ;;  %v1810_v60 = vadd.f32 %v1809_v49, %v812_v34  ;;  %v311_v38 = vld [vmem:[%s3937_s7 + $0x2e0] sm:$0xff]  ;;  %v381_v43 = vld [vmem:[%s3937_s7 + $0x510] sm:$0xff] }
  0xc4   : > { %v1297_v58 = vrot.slane %v1296_v47, 2  ;;  %v1554_v59 = vadd.f32 %v1553_v48, %v692_v27  ;;  %v2309_v61 = vunpack.c.l.b16 %v1982_v50  ;;  %v1040_v0 = vadd.f32 %v1039_v52, %v1038_v40  ;;  %v291_v50 = vld [vmem:[%s3937_s7 + $0x240] sm:$0xff] }
  0xc5   : > { %v1169_v1 = vrot.slane %v1168_v53, 1  ;;  %v1426_v2 = vadd.f32 %v1425_v54, %v1424_v42  ;;  %v1683_v3 = vadd.f32 %v1682_v55, %v762_v33  ;;  %3411 = vmatpush3.bf16.msra.mxu0 %v3585_v45  ;;  %v1811_v8 = vadd.f32 %v1810_v60, %v822_v39  ;;  %v321_v42 = vld [vmem:[%s3937_s7 + $0x330] sm:$0xff]  ;;  %v331_v55 = vld [vmem:[%s3937_s7 + $0x380] sm:$0xff] }
  0xc6   : > { %v1298_v6 = vadd.f32 %v1297_v58, %v1296_v47  ;;  %v1555_v7 = vrot.slane %v1554_v59, 4  ;;  %v885_v9 = vadd.f32 %v231_v56, %v221_v44  ;;  %3412 = vmatprep.subr.bf16.mxu0 %v3588_v57  ;;  %v1912_v15 = vmul.f32 0.015625, %v1040_v0  ;;  %v391_v44 = vld [vmem:[%s3937_s7 + $0x560] sm:$0xff]  ;;  %v401_v56 = vld [vmem:[%s3937_s7 + $0x5b0] sm:$0xff] }
  0xc7   : > { %v1170_v12 = vadd.f32 %v1169_v1, %v1168_v53  ;;  %v1427_v13 = vrot.slane %v1426_v2, 2  ;;  %v1684_v14 = vadd.f32 %v1683_v3, %v772_v46  ;;  %v1812_v18 = vadd.f32 %v1811_v8, %v832_v51  ;;  %v3597_v51 = vld [vmem:[#allocation5 + $0x118] sm:$0xff]   ;;  %v341_v3 = vld [vmem:[%s3937_s7 + $0x3d0] sm:$0xff] }
  0xc8   : > { %v1299_v16 = vrot.slane %v1298_v6, 1  ;;  %v1556_v17 = vadd.f32 %v1555_v7, %v1554_v59  ;;  %v886_v20 = vadd.f32 %v885_v9, %v241_v62  ;;  %v1992_v24 = vpack.c.bf16 %v1912_v15, %v1912_v15  ;;  %v461_v62 = vld [vmem:[%s3937_s7 + $0x790] sm:$0xff] }
  0xc9   : > { %v1428_v21 = vadd.f32 %v1427_v13, %v1426_v2  ;;  %v1685_v22 = vrot.slane %v1684_v14, 4  ;;  %v1922_v23 = vmul.f32 0.015625, %v1170_v12  ;;  %3413 = vmatpush3.bf16.msra.mxu0 %v3589_v5  ;;  %v1813_v29 = vadd.f32 %v1812_v18, %v842_v63  ;;  %v3600_v63 = vld [vmem:[#allocation5 + $0x150] sm:$0xff]   ;;  %v471_v5 = vld [vmem:[%s3937_s7 + $0x7e0] sm:$0xff] }
  0xca   : > { %v1300_v27 = vadd.f32 %v1299_v16, %v1298_v6  ;;  %v1557_v28 = vrot.slane %v1556_v17, 2  ;;  %v887_v31 = vadd.f32 %v886_v20, %v251_v4  ;;  %3414 = vmatprep.subr.bf16.mxu0 %v3592_v10  ;;  %v2319_v36 = vunpack.c.l.b16 %v1992_v24  ;;  %v411_v4 = vld [vmem:[%s3937_s7 + $0x600] sm:$0xff]  ;;  %v481_v9 = vld [vmem:[%s3937_s7 + $0x830] sm:$0xff] }
  0xcb   : > { %v1429_v33 = vrot.slane %v1428_v21, 1  ;;  %v1686_v34 = vadd.f32 %v1685_v22, %v1684_v14  ;;  %v2002_v35 = vpack.c.bf16 %v1922_v23, %v1922_v23  ;;  %v1814_v40 = vadd.f32 %v1813_v29, %v852_v11  ;;  %v3601_v12 = vld [vmem:[#allocation5 + $0x110] sm:$0xff]   ;;  %v351_v16 = vld [vmem:[%s3937_s7 + $0x420] sm:$0xff] }
  0xcc   : > { %v1558_v39 = vadd.f32 %v1557_v28, %v1556_v17  ;;  %v1932_v41 = vmul.f32 0.015625, %v1300_v27  ;;  %v888_v45 = vadd.f32 %v887_v31, %v261_v19  ;;  %v2414_v49 = vsel %vm2386_vm0, %v2319_v36, %v2309_v61  ;;  %v421_v17 = vld [vmem:[%s3937_s7 + $0x650] sm:$0xff]  ;;  %v491_v22 = vld [vmem:[%s3937_s7 + $0x880] sm:$0xff] }
  0xcd   : > { %v1430_v46 = vadd.f32 %v1429_v33, %v1428_v21  ;;  %v1687_v47 = vrot.slane %v1686_v34, 2  ;;  %v2329_v48 = vunpack.c.l.b16 %v2002_v35  ;;  %3415 = vmatpush3.bf16.msra.mxu0 %v3593_v26  ;;  %v1815_v53 = vrot.slane %v1814_v40, 4  ;;  %v541_v18 = vld [vmem:[%s3937_s7 + $0xa10] sm:$0xff]  ;;  %v551_v23 = vld [vmem:[%s3937_s7 + $0xa60] sm:$0xff]  ;;  %v3604_v33 = vld [vmem:[#allocation5 + $0x148] sm:$0xff]  }
  0xce   : > { %v1559_v52 = vrot.slane %v1558_v39, 1  ;;  %v2012_v54 = vpack.c.bf16 %v1932_v41, %v1932_v41  ;;  %v889_v57 = vadd.f32 %v888_v45, %v271_v25  ;;  %3416 = vmatprep.subr.bf16.mxu0 %v3596_v32  ;;  %v1015_v61 = vadd.f32 %v311_v38, %v301_v30  ;;  %v361_v28 = vld [vmem:[%s3937_s7 + $0x470] sm:$0xff]  ;;  %v431_v29 = vld [vmem:[%s3937_s7 + $0x6a0] sm:$0xff] }
  0xcf   : > { %v1688_v58 = vadd.f32 %v1687_v47, %v1686_v34  ;;  %v1942_v59 = vmul.f32 0.015625, %v1430_v46  ;;  %v2415_v60 = vsel %vm2388_vm1, %v2329_v48, %v2414_v49  ;;  %v1816_v1 = vadd.f32 %v1815_v53, %v1814_v40  ;;  %v561_v30 = vld [vmem:[%s3937_s7 + $0xab0] sm:$0xff]  ;;  %v3605_v40 = vld [vmem:[#allocation5 + $0x108] sm:$0xff]   ;;  %v571_v45 = vld [vmem:[%s3937_s7 + $0xb00] sm:$0xff] }
  0xd0   : > { %v1560_v0 = vadd.f32 %v1559_v52, %v1558_v39  ;;  %v2339_v2 = vunpack.c.l.b16 %v2012_v54  ;;  %v890_v6 = vadd.f32 %v889_v57, %v281_v37  ;;  %v1016_v10 = vadd.f32 %v1015_v61, %v321_v42  ;;  %v501_v36 = vld [vmem:[%s3937_s7 + $0x8d0] sm:$0xff]  ;;  %v631_v46 = vld [vmem:[%s3937_s7 + $0xce0] sm:$0xff] }
  0xd1   : > { %v1689_v7 = vrot.slane %v1688_v58, 1  ;;  %v2022_v8 = vpack.c.bf16 %v1942_v59, %v1942_v59  ;;  %v1145_v11 = vadd.f32 %v391_v44, %v381_v43  ;;  %3417 = vmatpush3.bf16.msra.mxu0 %v3597_v51  ;;  %v1817_v13 = vrot.slane %v1816_v1, 2  ;;  %v621_v37 = vld [vmem:[%s3937_s7 + $0xc90] sm:$0xff]  ;;  %v371_v43 = vld [vmem:[%s3937_s7 + $0x4c0] sm:$0xff] }
  0xd2   : > { %v1952_v14 = vmul.f32 0.015625, %v1560_v0  ;;  %v2416_v15 = vsel %vm2390_vm2, %v2339_v2, %v2415_v60  ;;  %v891_v19 = vadd.f32 %v890_v6, %v291_v50  ;;  %3418 = vmatprep.subr.bf16.mxu0 %v3600_v63  ;;  %v1017_v24 = vadd.f32 %v1016_v10, %v331_v55  ;;  %v441_v44 = vld [vmem:[%s3937_s7 + $0x6f0] sm:$0xff]  ;;  %v511_v50 = vld [vmem:[%s3937_s7 + $0x920] sm:$0xff] }
  0xd3   : > { %v1690_v20 = vadd.f32 %v1689_v7, %v1688_v58  ;;  %v2349_v21 = vunpack.c.l.b16 %v2022_v8  ;;  %v1146_v25 = vadd.f32 %v1145_v11, %v401_v56  ;;  %v1818_v26 = vadd.f32 %v1817_v13, %v1816_v1  ;;  %v641_v51 = vld [vmem:[%s3937_s7 + $0xd30] sm:$0xff]  ;;  %v451_v57 = vld [vmem:[%s3937_s7 + $0x740] sm:$0xff] }
  0xd4   : > { %v2032_v27 = vpack.c.bf16 %v1952_v14, %v1952_v14  ;;  %v892_v31 = vrot.slane %v891_v19, 4  ;;  %v1275_v32 = vadd.f32 %v471_v5, %v461_v62  ;;  %v1018_v38 = vadd.f32 %v1017_v24, %v341_v3  ;;  %v3608_v60 = vld [vmem:[#allocation5 + $0x140] sm:$0xff]   ;;  %v581_v3 = vld [vmem:[%s3937_s7 + $0xb50] sm:$0xff] }
  0xd5   : > { %v1962_v34 = vmul.f32 0.015625, %v1690_v20  ;;  %v2417_v35 = vsel %vm2392_vm3, %v2349_v21, %v2416_v15  ;;  %v1147_v39 = vadd.f32 %v1146_v25, %v411_v4  ;;  %3419 = vmatpush3.bf16.msra.mxu0 %v3601_v12  ;;  %v1819_v41 = vrot.slane %v1818_v26, 1  ;;  %v3609_v1 = vld [vmem:[#allocation5 + $0x100] sm:$0xff]   ;;  %v701_v4 = vld [vmem:[%s3937_s7 + $0xf10] sm:$0xff] }
  0xd6   : > { %v2359_v42 = vunpack.c.l.b16 %v2032_v27  ;;  %v893_v47 = vadd.f32 %v892_v31, %v891_v19  ;;  %v1276_v48 = vadd.f32 %v1275_v32, %v481_v9  ;;  %3420 = vmatprep.subr.bf16.mxu0 %v3604_v33  ;;  %v1019_v52 = vadd.f32 %v1018_v38, %v351_v16  ;;  %v711_v5 = vld [vmem:[%s3937_s7 + $0xf60] sm:$0xff]  ;;  %v521_v10 = vld [vmem:[%s3937_s7 + $0x970] sm:$0xff] }
  0xd7   : > { %v2042_v49 = vpack.c.bf16 %v1962_v34, %v1962_v34  ;;  %v1148_v53 = vadd.f32 %v1147_v39, %v421_v17  ;;  %v1405_v54 = vadd.f32 %v551_v23, %v541_v18  ;;  %v1820_v55 = vadd.f32 %v1819_v41, %v1818_v26  ;;  %v651_v11 = vld [vmem:[%s3937_s7 + $0xd80] sm:$0xff]  ;;  %v721_v18 = vld [vmem:[%s3937_s7 + $0xfb0] sm:$0xff] }
  0xd8   : > { %v2418_v56 = vsel %vm2394_vm4, %v2359_v42, %v2417_v35  ;;  %v894_v58 = vrot.slane %v893_v47, 2  ;;  %v1277_v59 = vadd.f32 %v1276_v48, %v491_v22  ;;  %v1020_v61 = vadd.f32 %v1019_v52, %v361_v28  ;;  %v531_v16 = vld [vmem:[%s3937_s7 + $0x9c0] sm:$0xff]  ;;  %v661_v22 = vld [vmem:[%s3937_s7 + $0xdd0] sm:$0xff] }
  0xd9   : > { %v2369_v62 = vunpack.c.l.b16 %v2042_v49  ;;  %v1149_v63 = vadd.f32 %v1148_v53, %v431_v29  ;;  %v1406_v0 = vadd.f32 %v1405_v54, %v561_v30  ;;  %3421 = vmatpush3.bf16.msra.mxu0 %v3605_v40  ;;  %v1972_v2 = vmul.f32 0.015625, %v1820_v55  ;;  %v591_v17 = vld [vmem:[%s3937_s7 + $0xba0] sm:$0xff]  ;;  %v781_v23 = vld [vmem:[%s3937_s7 + $0x1190] sm:$0xff] }
  0xda   : > { %v895_v6 = vadd.f32 %v894_v58, %v893_v47  ;;  %v1278_v7 = vadd.f32 %v1277_v59, %v501_v36  ;;  %v1535_v8 = vadd.f32 %v631_v46, %v621_v37  ;;  %3422 = vmatprep.subr.bf16.mxu0 %v3608_v60  ;;  %v1021_v12 = vadd.f32 %v1020_v61, %v371_v43  ;;  %v791_v24 = vld [vmem:[%s3937_s7 + $0x11e0] sm:$0xff]  ;;  %v601_v30 = vld [vmem:[%s3937_s7 + $0xbf0] sm:$0xff] }
  0xdb   : > { %v2419_v9 = vsel %vm2396_vm5, %v2369_v62, %v2418_v56  ;;  %v1150_v13 = vadd.f32 %v1149_v63, %v441_v44  ;;  %v1407_v14 = vadd.f32 %v1406_v0, %v571_v45  ;;  %v2052_v15 = vpack.c.bf16 %v1972_v2, %v1972_v2  ;;  %v671_v34 = vld [vmem:[%s3937_s7 + $0xe20] sm:$0xff]  ;;  %v801_v36 = vld [vmem:[%s3937_s7 + $0x1230] sm:$0xff] }
  0xdc   : > { %v896_v19 = vrot.slane %v895_v6, 1  ;;  %v1279_v20 = vadd.f32 %v1278_v7, %v511_v50  ;;  %v1536_v21 = vadd.f32 %v1535_v8, %v641_v51  ;;  %v1022_v25 = vrot.slane %v1021_v12, 4  ;;  %v731_v35 = vld [vmem:[%s3937_s7 + $0x1000] sm:$0xff]  ;;  %v681_v47 = vld [vmem:[%s3937_s7 + $0xe70] sm:$0xff] }
  0xdd   : > { %v1151_v26 = vadd.f32 %v1150_v13, %v451_v57  ;;  %v1408_v27 = vadd.f32 %v1407_v14, %v581_v3  ;;  %v1665_v28 = vadd.f32 %v711_v5, %v701_v4  ;;  %3423 = vmatpush3.bf16.msra.mxu0 %v3609_v1  ;;  %v2379_v29 = vunpack.c.l.b16 %v2052_v15  ;;  %v611_v42 = vld [vmem:[%s3937_s7 + $0xc40] sm:$0xff]  ;;  %v741_v48 = vld [vmem:[%s3937_s7 + $0x1050] sm:$0xff]  ;;  %v224_v14 = vld [vmem:[%s3937_s7 + $0x28] sm:$0xff] }
  0xde   : > { %v897_v31 = vadd.f32 %v896_v19, %v895_v6  ;;  %v1280_v32 = vadd.f32 %v1279_v20, %v521_v10  ;;  %v1537_v33 = vadd.f32 %v1536_v21, %v651_v11  ;;  %v1023_v37 = vadd.f32 %v1022_v25, %v1021_v12  ;;  %v811_v49 = vld [vmem:[%s3937_s7 + $0x1280] sm:$0xff]  ;;  %v821_v59 = vld [vmem:[%s3937_s7 + $0x12d0] sm:$0xff]  ;;  %v234_v15 = vld [vmem:[%s3937_s7 + $0x78] sm:$0xff] }
  0xdf   : > { %v1152_v38 = vrot.slane %v1151_v26, 4  ;;  %v1409_v39 = vadd.f32 %v1408_v27, %v591_v17  ;;  %v1666_v40 = vadd.f32 %v1665_v28, %v721_v18  ;;  %v2420_v41 = vsel %vm2398_vm6, %v2379_v29, %v2419_v9  ;;  %v691_v57 = vld [vmem:[%s3937_s7 + $0xec0] sm:$0xff]  ;;  %v761_v4 = vld [vmem:[%s3937_s7 + $0x10f0] sm:$0xff] }
  0xe0   : > { %v1281_v43 = vadd.f32 %v1280_v32, %v531_v16  ;;  %v1538_v44 = vadd.f32 %v1537_v33, %v661_v22  ;;  %v1795_v45 = vadd.f32 %v791_v24, %v781_v23  ;;  %v2466_v46 = vpack.c.b16 %v2420_v41, %v2420_v41  ;;  %v751_v58 = vld [vmem:[%s3937_s7 + $0x10a0] sm:$0xff]  ;;  %v841_v17 = vld [vmem:[%s3937_s7 + $0x1370] sm:$0xff] }
  0xe1   : > { %v1024_v50 = vrot.slane %v1023_v37, 2  ;;  %v1153_v51 = vadd.f32 %v1152_v38, %v1151_v26  ;;  %v1410_v52 = vadd.f32 %v1409_v39, %v601_v30  ;;  %v1667_v55 = vadd.f32 %v1666_v40, %v731_v35  ;;  %v831_v5 = vld [vmem:[%s3937_s7 + $0x1320] sm:$0xff]  ;;  %v244_v26 = vld [vmem:[%s3937_s7 + $0xc8] sm:$0xff] }
  0xe2   : > { %v1282_v53 = vrot.slane %v1281_v43, 4  ;;  %v1539_v54 = vadd.f32 %v1538_v44, %v671_v34  ;;  %v1796_v56 = vadd.f32 %v1795_v45, %v801_v36  ;;  %3035 = vmatprep.mubr.bf16.mxu1 %v2466_v46  ;;  %v1901_v63 = vmul.f32 0.015625, %v897_v31  ;;  %v771_v16 = vld [vmem:[%s3937_s7 + $0x1140] sm:$0xff]  ;;  %v254_v36 = vld [vmem:[%s3937_s7 + $0x118] sm:$0xff]  ;;  %v264_v45 = vld [vmem:[%s3937_s7 + $0x168] sm:$0xff] }
  0xe3   : > { %v1025_v60 = vadd.f32 %v1024_v50, %v1023_v37  ;;  %v1154_v62 = vrot.slane %v1153_v51, 2  ;;  %v1411_v61 = vadd.f32 %v1410_v52, %v611_v42  ;;  %v1668_v2 = vadd.f32 %v1667_v55, %v741_v48  ;;  %v851_v27 = vld [vmem:[%s3937_s7 + $0x13c0] sm:$0xff]  ;;  %v304_v55 = vld [vmem:[%s3937_s7 + $0x2a8] sm:$0xff] }
  0xe4   : > { %v1283_v0 = vadd.f32 %v1282_v53, %v1281_v43  ;;  %v1540_v1 = vadd.f32 %v1539_v54, %v681_v47  ;;  %v1797_v3 = vadd.f32 %v1796_v56, %v811_v49  ;;  %v1981_v9 = vpack.c.bf16 %v1901_v63, %v1901_v63  ;;  %v274_v54 = vld [vmem:[%s3937_s7 + $0x1b8] sm:$0xff] }
  0xe5   : > { %v1026_v6 = vrot.slane %v1025_v60, 1  ;;  %v1155_v7 = vadd.f32 %v1154_v62, %v1153_v51  ;;  %v1412_v8 = vrot.slane %v1411_v61, 4  ;;  %v1669_v12 = vadd.f32 %v1668_v2, %v751_v58  ;;  %v314_v56 = vld [vmem:[%s3937_s7 + $0x2f8] sm:$0xff]  ;;  %v324_v62 = vld [vmem:[%s3937_s7 + $0x348] sm:$0xff] }
  0xe6   : > { %v1284_v10 = vrot.slane %v1283_v0, 2  ;;  %v1541_v11 = vadd.f32 %v1540_v1, %v691_v57  ;;  %v1798_v13 = vadd.f32 %v1797_v3, %v821_v59  ;;  %v2308_v21 = vunpack.c.l.b16 %v1981_v9  ;;  %v384_v3 = vld [vmem:[%s3937_s7 + $0x528] sm:$0xff] }
  0xe7   : > { %v1027_v18 = vadd.f32 %v1026_v6, %v1025_v60  ;;  %v1156_v19 = vrot.slane %v1155_v7, 1  ;;  %v1413_v20 = vadd.f32 %v1412_v8, %v1411_v61  ;;  %v1670_v24 = vadd.f32 %v1669_v12, %v761_v4  ;;  %v284_v60 = vld [vmem:[%s3937_s7 + $0x208] sm:$0xff]  ;;  %v394_v4 = vld [vmem:[%s3937_s7 + $0x578] sm:$0xff] }
  0xe8   : > { %v1285_v22 = vadd.f32 %v1284_v10, %v1283_v0  ;;  %v1542_v23 = vrot.slane %v1541_v11, 4  ;;  %v1799_v25 = vadd.f32 %v1798_v13, %v831_v5  ;;  %v924_v31 = vadd.f32 %v234_v15, %v224_v14  ;;  %v294_v13 = vld [vmem:[%s3937_s7 + $0x258] sm:$0xff]  ;;  %v404_v15 = vld [vmem:[%s3937_s7 + $0x5c8] sm:$0xff] }
  0xe9   : > { %v1157_v28 = vadd.f32 %v1156_v19, %v1155_v7  ;;  %v1414_v29 = vrot.slane %v1413_v20, 2  ;;  %v1911_v30 = vmul.f32 0.015625, %v1027_v18  ;;  %v1671_v34 = vadd.f32 %v1670_v24, %v771_v16  ;;  %v334_v14 = vld [vmem:[%s3937_s7 + $0x398] sm:$0xff] }
  0xea   : > { %v1286_v32 = vrot.slane %v1285_v22, 1  ;;  %v1543_v33 = vadd.f32 %v1542_v23, %v1541_v11  ;;  %v1800_v35 = vadd.f32 %v1799_v25, %v841_v17  ;;  %v925_v40 = vadd.f32 %v924_v31, %v244_v26  ;;  %v464_v17 = vld [vmem:[%s3937_s7 + $0x7a8] sm:$0xff]  ;;  %v474_v18 = vld [vmem:[%s3937_s7 + $0x7f8] sm:$0xff] }
  0xeb   : > { %v1415_v37 = vadd.f32 %v1414_v29, %v1413_v20  ;;  %v1921_v38 = vmul.f32 0.015625, %v1157_v28  ;;  %v1991_v39 = vpack.c.bf16 %v1911_v30, %v1911_v30  ;;  %v1672_v43 = vrot.slane %v1671_v34, 4  ;;  %v344_v26 = vld [vmem:[%s3937_s7 + $0x3e8] sm:$0xff]  ;;  %v354_v29 = vld [vmem:[%s3937_s7 + $0x438] sm:$0xff] }
  0xec   : > { %v1287_v41 = vadd.f32 %v1286_v32, %v1285_v22  ;;  %v1544_v42 = vrot.slane %v1543_v33, 2  ;;  %v1801_v44 = vadd.f32 %v1800_v35, %v851_v27  ;;  %v926_v49 = vadd.f32 %v925_v40, %v254_v36  ;;  %v414_v27 = vld [vmem:[%s3937_s7 + $0x618] sm:$0xff]  ;;  %v484_v30 = vld [vmem:[%s3937_s7 + $0x848] sm:$0xff] }
  0xed   : > { %v1416_v46 = vrot.slane %v1415_v37, 1  ;;  %v2001_v47 = vpack.c.bf16 %v1921_v38, %v1921_v38  ;;  %v2318_v48 = vunpack.c.l.b16 %v1991_v39  ;;  %v1673_v51 = vadd.f32 %v1672_v43, %v1671_v34  ;;  %v544_v38 = vld [vmem:[%s3937_s7 + $0xa28] sm:$0xff]  ;;  %v554_v39 = vld [vmem:[%s3937_s7 + $0xa78] sm:$0xff] }
  0xee   : > { %v1545_v50 = vadd.f32 %v1544_v42, %v1543_v33  ;;  %v1802_v52 = vrot.slane %v1801_v44, 4  ;;  %v1931_v53 = vmul.f32 0.015625, %v1287_v41  ;;  %v927_v61 = vadd.f32 %v926_v49, %v264_v45  ;;  %v494_v42 = vld [vmem:[%s3937_s7 + $0x898] sm:$0xff]  ;;  %v364_v49 = vld [vmem:[%s3937_s7 + $0x488] sm:$0xff] }
  0xef   : > { %v1417_v57 = vadd.f32 %v1416_v46, %v1415_v37  ;;  %v2328_v58 = vunpack.c.l.b16 %v2001_v47  ;;  %v2407_v59 = vsel %vm2386_vm0, %v2318_v48, %v2308_v21  ;;  %v1674_v0 = vrot.slane %v1673_v51, 2  ;;  %v424_v37 = vld [vmem:[%s3937_s7 + $0x668] sm:$0xff] }
  0xf0   : > { %v1546_v63 = vrot.slane %v1545_v50, 1  ;;  %v1803_v1 = vadd.f32 %v1802_v52, %v1801_v44  ;;  %v2011_v2 = vpack.c.bf16 %v1931_v53, %v1931_v53  ;;  %v928_v7 = vadd.f32 %v927_v61, %v274_v54  ;;  %v504_v53 = vld [vmem:[%s3937_s7 + $0x8e8] sm:$0xff] }
  0xf1   : > { %v1941_v5 = vmul.f32 0.015625, %v1417_v57  ;;  %v2408_v6 = vsel %vm2388_vm1, %v2328_v58, %v2407_v59  ;;  %v1054_v8 = vadd.f32 %v314_v56, %v304_v55  ;;  %v1675_v10 = vadd.f32 %v1674_v0, %v1673_v51  ;;  %v564_v51 = vld [vmem:[%s3937_s7 + $0xac8] sm:$0xff]  ;;  %v634_v55 = vld [vmem:[%s3937_s7 + $0xcf8] sm:$0xff] }
  0xf2   : > { %v1547_v9 = vadd.f32 %v1546_v63, %v1545_v50  ;;  %v1804_v11 = vrot.slane %v1803_v1, 2  ;;  %v2338_v12 = vunpack.c.l.b16 %v2011_v2  ;;  %v929_v19 = vadd.f32 %v928_v7, %v284_v60  ;;  %v434_v50 = vld [vmem:[%s3937_s7 + $0x6b8] sm:$0xff]  ;;  %v624_v54 = vld [vmem:[%s3937_s7 + $0xca8] sm:$0xff] }
  0xf3   : > { %v2021_v16 = vpack.c.bf16 %v1941_v5, %v1941_v5  ;;  %v1055_v20 = vadd.f32 %v1054_v8, %v324_v62  ;;  %v1184_v21 = vadd.f32 %v394_v4, %v384_v3  ;;  %v1676_v22 = vrot.slane %v1675_v10, 1  ;;  %v374_v63 = vld [vmem:[%s3937_s7 + $0x4d8] sm:$0xff]  ;;  %v444_v0 = vld [vmem:[%s3937_s7 + $0x708] sm:$0xff] }
  0xf4   : > { %v1805_v23 = vadd.f32 %v1804_v11, %v1803_v1  ;;  %v1951_v24 = vmul.f32 0.015625, %v1547_v9  ;;  %v2409_v25 = vsel %vm2390_vm2, %v2338_v12, %v2408_v6  ;;  %v930_v31 = vadd.f32 %v929_v19, %v294_v13  ;;  %v574_v1 = vld [vmem:[%s3937_s7 + $0xb18] sm:$0xff]  ;;  %v644_v4 = vld [vmem:[%s3937_s7 + $0xd48] sm:$0xff] }
  0xf5   : > { %v2348_v28 = vunpack.c.l.b16 %v2021_v16  ;;  %v1056_v32 = vadd.f32 %v1055_v20, %v334_v14  ;;  %v1185_v33 = vadd.f32 %v1184_v21, %v404_v15  ;;  %v1677_v34 = vadd.f32 %v1676_v22, %v1675_v10  ;;  %v514_v3 = vld [vmem:[%s3937_s7 + $0x938] sm:$0xff]  ;;  %v524_v12 = vld [vmem:[%s3937_s7 + $0x988] sm:$0xff] }
  0xf6   : > { %v1806_v35 = vrot.slane %v1805_v23, 1  ;;  %v2031_v36 = vpack.c.bf16 %v1951_v24, %v1951_v24  ;;  %v1314_v40 = vadd.f32 %v474_v18, %v464_v17  ;;  %v931_v43 = vrot.slane %v930_v31, 4  ;;  %v454_v11 = vld [vmem:[%s3937_s7 + $0x758] sm:$0xff]  ;;  %v584_v13 = vld [vmem:[%s3937_s7 + $0xb68] sm:$0xff] }
  0xf7   : > { %v2410_v41 = vsel %vm2392_vm3, %v2348_v28, %v2409_v25  ;;  %v1057_v44 = vadd.f32 %v1056_v32, %v344_v26  ;;  %v1186_v45 = vadd.f32 %v1185_v33, %v414_v27  ;;  %v1961_v47 = vmul.f32 0.015625, %v1677_v34  ;;  %v654_v16 = vld [vmem:[%s3937_s7 + $0xd98] sm:$0xff]  ;;  %v704_v17 = vld [vmem:[%s3937_s7 + $0xf28] sm:$0xff] }
  0xf8   : > { %v1807_v46 = vadd.f32 %v1806_v35, %v1805_v23  ;;  %v2358_v48 = vunpack.c.l.b16 %v2031_v36  ;;  %v1315_v52 = vadd.f32 %v1314_v40, %v484_v30  ;;  %v932_v56 = vadd.f32 %v931_v43, %v930_v31  ;;  %v714_v18 = vld [vmem:[%s3937_s7 + $0xf78] sm:$0xff]  ;;  %v664_v30 = vld [vmem:[%s3937_s7 + $0xde8] sm:$0xff] }
  0xf9   : > { %v1058_v57 = vadd.f32 %v1057_v44, %v354_v29  ;;  %v1187_v58 = vadd.f32 %v1186_v45, %v424_v37  ;;  %v1444_v59 = vadd.f32 %v554_v39, %v544_v38  ;;  %v2041_v62 = vpack.c.bf16 %v1961_v47, %v1961_v47  ;;  %v3583_v25 = vld [vmem:[#allocation5 + $0x1b8] sm:$0xff]   ;;  %v724_v31 = vld [vmem:[%s3937_s7 + $0xfc8] sm:$0xff]  ;;  %v3586_v37 = vld [vmem:[#allocation5 + $0x1f0] sm:$0xff]  }
  0xfa   : > { %v1971_v60 = vmul.f32 0.015625, %v1807_v46  ;;  %v2411_v61 = vsel %vm2394_vm4, %v2358_v48, %v2410_v41  ;;  %v1316_v2 = vadd.f32 %v1315_v52, %v494_v42  ;;  %v933_v5 = vrot.slane %v932_v56, 2  ;;  %v534_v26 = vld [vmem:[%s3937_s7 + $0x9d8] sm:$0xff]  ;;  %v784_v38 = vld [vmem:[%s3937_s7 + $0x11a8] sm:$0xff] }
  0xfb   : > { %v1059_v6 = vadd.f32 %v1058_v57, %v364_v49  ;;  %v1188_v7 = vadd.f32 %v1187_v58, %v434_v50  ;;  %v1445_v8 = vadd.f32 %v1444_v59, %v564_v51  ;;  %v2368_v10 = vunpack.c.l.b16 %v2041_v62  ;;  %v594_v29 = vld [vmem:[%s3937_s7 + $0xbb8] sm:$0xff]  ;;  %v604_v44 = vld [vmem:[%s3937_s7 + $0xc08] sm:$0xff]  ;;  %v3587_v50 = vld [vmem:[#allocation5 + $0x1b0] sm:$0xff]  }
  0xfc   : > { %v2051_v9 = vpack.c.bf16 %v1971_v60, %v1971_v60  ;;  %v1317_v14 = vadd.f32 %v1316_v2, %v504_v53  ;;  %v1574_v15 = vadd.f32 %v634_v55, %v624_v54  ;;  %v934_v19 = vadd.f32 %v933_v5, %v932_v56  ;;  %v794_v39 = vld [vmem:[%s3937_s7 + $0x11f8] sm:$0xff]  ;;  %v804_v51 = vld [vmem:[%s3937_s7 + $0x1248] sm:$0xff] }
  0xfd   : > { %v1060_v20 = vadd.f32 %v1059_v6, %v374_v63  ;;  %v1189_v21 = vadd.f32 %v1188_v7, %v444_v0  ;;  %v1446_v22 = vadd.f32 %v1445_v8, %v574_v1  ;;  %v2412_v24 = vsel %vm2396_vm5, %v2368_v10, %v2411_v61  ;;  %v674_v45 = vld [vmem:[%s3937_s7 + $0xe38] sm:$0xff]  ;;  %v3590_v56 = vld [vmem:[#allocation5 + $0x1e8] sm:$0xff]  }
  0xfe   : > { %v2378_v23 = vunpack.c.l.b16 %v2051_v9  ;;  %v1318_v27 = vadd.f32 %v1317_v14, %v514_v3  ;;  %v1575_v28 = vadd.f32 %v1574_v15, %v644_v4  ;;  %v935_v32 = vrot.slane %v934_v19, 1  ;;  %v734_v46 = vld [vmem:[%s3937_s7 + $0x1018] sm:$0xff]  ;;  %v684_v58 = vld [vmem:[%s3937_s7 + $0xe88] sm:$0xff] }
  0xff   : > { %v1061_v33 = vrot.slane %v1060_v20, 4  ;;  %v1190_v34 = vadd.f32 %v1189_v21, %v454_v11  ;;  %v1447_v35 = vadd.f32 %v1446_v22, %v584_v13  ;;  %v1704_v42 = vadd.f32 %v714_v18, %v704_v17  ;;  %v614_v57 = vld [vmem:[%s3937_s7 + $0xc58] sm:$0xff]  ;;  %v744_v59 = vld [vmem:[%s3937_s7 + $0x1068] sm:$0xff]  ;;  %v233_v13 = vld [vmem:[%s3937_s7 + $0x70] sm:$0xff] }
 0x100   : > { %v2413_v36 = vsel %vm2398_vm6, %v2378_v23, %v2412_v24  ;;  %v1319_v40 = vadd.f32 %v1318_v27, %v524_v12  ;;  %v1576_v41 = vadd.f32 %v1575_v28, %v654_v16  ;;  %v936_v47 = vadd.f32 %v935_v32, %v934_v19  ;;  %v694_v0 = vld [vmem:[%s3937_s7 + $0xed8] sm:$0xff]  ;;  %v824_v7 = vld [vmem:[%s3937_s7 + $0x12e8] sm:$0xff]  ;;  %v223_v12 = vld [vmem:[%s3937_s7 + $0x20] sm:$0xff] }
 0x101   : > { %v2465_v43 = vpack.c.b16 %v2413_v36, %v2413_v36  ;;  %v1062_v48 = vadd.f32 %v1061_v33, %v1060_v20  ;;  %v1191_v49 = vrot.slane %v1190_v34, 4  ;;  %v1448_v53 = vadd.f32 %v1447_v35, %v594_v29  ;;  %v754_v1 = vld [vmem:[%s3937_s7 + $0x10b8] sm:$0xff]  ;;  %v764_v19 = vld [vmem:[%s3937_s7 + $0x1108] sm:$0xff] }
 0x102   : > { %v1320_v52 = vadd.f32 %v1319_v40, %v534_v26  ;;  %v1577_v54 = vadd.f32 %v1576_v41, %v664_v30  ;;  %v1705_v55 = vadd.f32 %v1704_v42, %v724_v31  ;;  %v1834_v61 = vadd.f32 %v794_v39, %v784_v38  ;;  %v814_v2 = vld [vmem:[%s3937_s7 + $0x1298] sm:$0xff]  ;;  %v3591_v24 = vld [vmem:[#allocation5 + $0x1a8] sm:$0xff]   ;;  %v243_v30 = vld [vmem:[%s3937_s7 + $0xc0] sm:$0xff] }
 0x103   : > { %3036 = vmatmul.mubr.bf16.vlgmr.msra.gmra.mxu1 %v2465_v43  ;;  %v1063_v60 = vrot.slane %v1062_v48, 2  ;;  %v1192_v62 = vadd.f32 %v1191_v49, %v1190_v34  ;;  %v1904_v63 = vmul.f32 0.015625, %v936_v47  ;;  %v1449_v4 = vadd.f32 %v1448_v53, %v604_v44  ;;  %v3612_v18 = vld [vmem:[#allocation5 + $0x278] sm:$0xff]   ;;  %v3594_v31 = vld [vmem:[#allocation5 + $0x1e0] sm:$0xff]   ;;  %v253_v42 = vld [vmem:[%s3937_s7 + $0x110] sm:$0xff] }
 0x104   : > { %3431 = vmatpush3.bf16.msra.mxu1 %v3583_v25  ;;  %v1321_v3 = vrot.slane %v1320_v52, 4  ;;  %v1578_v5 = vadd.f32 %v1577_v54, %v674_v45  ;;  %v1706_v6 = vadd.f32 %v1705_v55, %v734_v46  ;;  %v1835_v10 = vadd.f32 %v1834_v61, %v804_v51  ;;  %v834_v25 = vld [vmem:[%s3937_s7 + $0x1338] sm:$0xff]  ;;  %3452 = vmatprep.subr.bf16.mxu0 %v3612_v18  ;;  %v3595_v47 = vld [vmem:[#allocation5 + $0x1a0] sm:$0xff]  }
 0x105   : > { %3432 = vmatprep.subr.bf16.mxu1 %v3586_v37  ;;  %v1064_v8 = vadd.f32 %v1063_v60, %v1062_v48  ;;  %v1193_v9 = vrot.slane %v1192_v62, 2  ;;  %v1984_v11 = vpack.c.bf16 %v1904_v63, %v1904_v63  ;;  %v1450_v15 = vadd.f32 %v1449_v4, %v614_v57  ;;  %v774_v32 = vld [vmem:[%s3937_s7 + $0x1158] sm:$0xff]  ;;  %v844_v37 = vld [vmem:[%s3937_s7 + $0x1388] sm:$0xff]  ;;  %v263_v53 = vld [vmem:[%s3937_s7 + $0x160] sm:$0xff] }
 0x106   : > { %v1322_v14 = vadd.f32 %v1321_v3, %v1320_v52  ;;  %v1579_v16 = vadd.f32 %v1578_v5, %v684_v58  ;;  %v1707_v17 = vadd.f32 %v1706_v6, %v744_v59  ;;  %v1836_v22 = vadd.f32 %v1835_v10, %v814_v2  ;;  %v854_v48 = vld [vmem:[%s3937_s7 + $0x13d8] sm:$0xff]  ;;  %v273_v63 = vld [vmem:[%s3937_s7 + $0x1b0] sm:$0xff]  ;;  %v303_v10 = vld [vmem:[%s3937_s7 + $0x2a0] sm:$0xff] }
 0x107   : > { %v1065_v20 = vrot.slane %v1064_v8, 1  ;;  %v1194_v21 = vadd.f32 %v1193_v9, %v1192_v62  ;;  %v4293_v23 = vunpack.c.l.b16 %v1984_v11  ;;  %v1451_v27 = vrot.slane %v1450_v15, 4  ;;  %v3598_v54 = vld [vmem:[#allocation5 + $0x1d8] sm:$0xff]   ;;  %v283_v9 = vld [vmem:[%s3937_s7 + $0x200] sm:$0xff]  ;;  %v313_v11 = vld [vmem:[%s3937_s7 + $0x2f0] sm:$0xff] }
 0x108   : > { %3433 = vmatpush3.bf16.msra.mxu1 %v3587_v50  ;;  %v1323_v26 = vrot.slane %v1322_v14, 2  ;;  %v1580_v28 = vadd.f32 %v1579_v16, %v694_v0  ;;  %v1708_v29 = vadd.f32 %v1707_v17, %v754_v1  ;;  %v1837_v35 = vadd.f32 %v1836_v22, %v824_v7  ;;  %v3599_v0 = vld [vmem:[#allocation5 + $0x198] sm:$0xff]   ;;  %v293_v16 = vld [vmem:[%s3937_s7 + $0x250] sm:$0xff]  ;;  %v323_v22 = vld [vmem:[%s3937_s7 + $0x340] sm:$0xff] }
 0x109   : > { %3434 = vmatprep.subr.bf16.mxu1 %v3590_v56  ;;  %v1066_v33 = vadd.f32 %v1065_v20, %v1064_v8  ;;  %v1195_v34 = vrot.slane %v1194_v21, 1  ;;  %v911_v36 = vadd.f32 %v233_v13, %v223_v12  ;;  %v1452_v39 = vadd.f32 %v1451_v27, %v1450_v15  ;;  %v3602_v12 = vld [vmem:[#allocation5 + $0x1d0] sm:$0xff]  }
 0x10a   : > { %v1324_v38 = vadd.f32 %v1323_v26, %v1322_v14  ;;  %v1581_v40 = vrot.slane %v1580_v28, 4  ;;  %v1709_v41 = vadd.f32 %v1708_v29, %v764_v19  ;;  %v1838_v44 = vadd.f32 %v1837_v35, %v834_v25  ;;  %v393_v25 = vld [vmem:[%s3937_s7 + $0x570] sm:$0xff]  ;;  %v403_v35 = vld [vmem:[%s3937_s7 + $0x5c0] sm:$0xff] }
 0x10b   : > { %v1196_v43 = vadd.f32 %v1195_v34, %v1194_v21  ;;  %v1914_v45 = vmul.f32 0.015625, %v1066_v33  ;;  %v912_v46 = vadd.f32 %v911_v36, %v243_v30  ;;  %v1453_v50 = vrot.slane %v1452_v39, 2  ;;  %v333_v34 = vld [vmem:[%s3937_s7 + $0x390] sm:$0xff]  ;;  %v3606_v36 = vld [vmem:[#allocation5 + $0x1c8] sm:$0xff]  }
 0x10c   : > { %3435 = vmatpush3.bf16.msra.mxu1 %v3591_v24  ;;  %v1325_v49 = vrot.slane %v1324_v38, 1  ;;  %v1582_v51 = vadd.f32 %v1581_v40, %v1580_v28  ;;  %v1710_v52 = vadd.f32 %v1709_v41, %v774_v32  ;;  %v1839_v55 = vadd.f32 %v1838_v44, %v844_v37  ;;  %v383_v24 = vld [vmem:[%s3937_s7 + $0x520] sm:$0xff] }
 0x10d   : > { %3436 = vmatprep.subr.bf16.mxu1 %v3594_v31  ;;  %v1924_v56 = vmul.f32 0.015625, %v1196_v43  ;;  %v1994_v57 = vpack.c.bf16 %v1914_v45, %v1914_v45  ;;  %v913_v58 = vadd.f32 %v912_v46, %v253_v42  ;;  %v1454_v60 = vadd.f32 %v1453_v50, %v1452_v39  ;;  %v473_v39 = vld [vmem:[%s3937_s7 + $0x7f0] sm:$0xff]  ;;  %v3610_v50 = vld [vmem:[#allocation5 + $0x1c0] sm:$0xff]  }
 0x10e   : > { %v1326_v59 = vadd.f32 %v1325_v49, %v1324_v38  ;;  %v1583_v62 = vrot.slane %v1582_v51, 2  ;;  %v1711_v61 = vrot.slane %v1710_v52, 4  ;;  %v1840_v1 = vadd.f32 %v1839_v55, %v854_v48  ;;  %v463_v38 = vld [vmem:[%s3937_s7 + $0x7a0] sm:$0xff]  ;;  %v413_v48 = vld [vmem:[%s3937_s7 + $0x610] sm:$0xff]  ;;  %v3607_v49 = vld [vmem:[#allocation5 + $0x188] sm:$0xff]  }
 0x10f   : > { %v2004_v2 = vpack.c.bf16 %v1924_v56, %v1924_v56  ;;  %v2321_v3 = vunpack.c.l.b16 %v1994_v57  ;;  %v914_v4 = vadd.f32 %v913_v58, %v263_v53  ;;  %v1455_v5 = vrot.slane %v1454_v60, 1 }
 0x110   : > { %3437 = vmatpush3.bf16.msra.mxu1 %v3595_v47  ;;  %v1584_v6 = vadd.f32 %v1583_v62, %v1582_v51  ;;  %v1712_v7 = vadd.f32 %v1711_v61, %v1710_v52  ;;  %v1934_v8 = vmul.f32 0.015625, %v1326_v59  ;;  %v1841_v13 = vrot.slane %v1840_v1, 4  ;;  %v343_v47 = vld [vmem:[%s3937_s7 + $0x3e0] sm:$0xff]  ;;  %v353_v59 = vld [vmem:[%s3937_s7 + $0x430] sm:$0xff] }
 0x111   : > { %3438 = vmatprep.subr.bf16.mxu1 %v3598_v54  ;;  %v2331_v14 = vunpack.c.l.b16 %v2004_v2  ;;  %v2428_v15 = vsel %vm2386_vm0, %v2321_v3, %v4293_v23  ;;  %v915_v17 = vadd.f32 %v914_v4, %v273_v63  ;;  %v1456_v18 = vadd.f32 %v1455_v5, %v1454_v60  ;;  %v3603_v23 = vld [vmem:[#allocation5 + $0x190] sm:$0xff]   ;;  %v483_v52 = vld [vmem:[%s3937_s7 + $0x840] sm:$0xff] }
 0x112   : > { %v1585_v19 = vrot.slane %v1584_v6, 1  ;;  %v1713_v20 = vrot.slane %v1712_v7, 2  ;;  %v2014_v21 = vpack.c.bf16 %v1934_v8, %v1934_v8  ;;  %v1842_v26 = vadd.f32 %v1841_v13, %v1840_v1  ;;  %v363_v60 = vld [vmem:[%s3937_s7 + $0x480] sm:$0xff]  ;;  %v553_v2 = vld [vmem:[%s3937_s7 + $0xa70] sm:$0xff] }
 0x113   : > { %v2429_v27 = vsel %vm2388_vm1, %v2331_v14, %v2428_v15  ;;  %v916_v28 = vadd.f32 %v915_v17, %v283_v9  ;;  %v1041_v29 = vadd.f32 %v313_v11, %v303_v10  ;;  %v1944_v32 = vmul.f32 0.015625, %v1456_v18  ;;  %v423_v62 = vld [vmem:[%s3937_s7 + $0x660] sm:$0xff]  ;;  %v373_v10 = vld [vmem:[%s3937_s7 + $0x4d0] sm:$0xff] }
 0x114   : > { %3439 = vmatpush3.bf16.msra.mxu1 %v3599_v0  ;;  %v1586_v30 = vadd.f32 %v1585_v19, %v1584_v6  ;;  %v1714_v31 = vadd.f32 %v1713_v20, %v1712_v7  ;;  %v2341_v33 = vunpack.c.l.b16 %v2014_v21  ;;  %v1843_v37 = vrot.slane %v1842_v26, 2  ;;  %v493_v0 = vld [vmem:[%s3937_s7 + $0x890] sm:$0xff]  ;;  %v543_v1 = vld [vmem:[%s3937_s7 + $0xa20] sm:$0xff] }
 0x115   : > { %3440 = vmatprep.subr.bf16.mxu1 %v3602_v12  ;;  %v917_v40 = vadd.f32 %v916_v28, %v293_v16  ;;  %v1042_v41 = vadd.f32 %v1041_v29, %v323_v22  ;;  %v1171_v42 = vadd.f32 %v393_v25, %v383_v24  ;;  %v2024_v45 = vpack.c.bf16 %v1944_v32, %v1944_v32  ;;  %v3611_v9 = vld [vmem:[#allocation5 + $0x180] sm:$0xff]   ;;  %v433_v11 = vld [vmem:[%s3937_s7 + $0x6b0] sm:$0xff] }
 0x116   : > { %v1715_v43 = vrot.slane %v1714_v31, 1  ;;  %v1954_v44 = vmul.f32 0.015625, %v1586_v30  ;;  %v2430_v46 = vsel %vm2390_vm2, %v2341_v33, %v2429_v27  ;;  %v1844_v51 = vadd.f32 %v1843_v37, %v1842_v26  ;;  %v503_v12 = vld [vmem:[%s3937_s7 + $0x8e0] sm:$0xff]  ;;  %v633_v17 = vld [vmem:[%s3937_s7 + $0xcf0] sm:$0xff] }
 0x117   : > { %v918_v53 = vrot.slane %v917_v40, 4  ;;  %v1043_v54 = vadd.f32 %v1042_v41, %v333_v34  ;;  %v1172_v55 = vadd.f32 %v1171_v42, %v403_v35  ;;  %v2351_v58 = vunpack.c.l.b16 %v2024_v45  ;;  %v563_v15 = vld [vmem:[%s3937_s7 + $0xac0] sm:$0xff]  ;;  %v513_v28 = vld [vmem:[%s3937_s7 + $0x930] sm:$0xff] }
 0x118   : > { %3441 = vmatpush3.bf16.msra.mxu1 %v3603_v23  ;;  %v1716_v56 = vadd.f32 %v1715_v43, %v1714_v31  ;;  %v2034_v57 = vpack.c.bf16 %v1954_v44, %v1954_v44  ;;  %v1301_v61 = vadd.f32 %v473_v39, %v463_v38  ;;  %v1845_v63 = vrot.slane %v1844_v51, 1  ;;  %v623_v16 = vld [vmem:[%s3937_s7 + $0xca0] sm:$0xff]  ;;  %v573_v29 = vld [vmem:[%s3937_s7 + $0xb10] sm:$0xff] }
 0x119   : > { %3442 = vmatprep.subr.bf16.mxu1 %v3606_v36  ;;  %v919_v3 = vadd.f32 %v918_v53, %v917_v40  ;;  %v1044_v4 = vadd.f32 %v1043_v54, %v343_v47  ;;  %v1173_v5 = vadd.f32 %v1172_v55, %v413_v48  ;;  %v2431_v8 = vsel %vm2392_vm3, %v2351_v58, %v2430_v46  ;;  %v443_v24 = vld [vmem:[%s3937_s7 + $0x700] sm:$0xff]  ;;  %v453_v34 = vld [vmem:[%s3937_s7 + $0x750] sm:$0xff] }
 0x11a   : > { %v1964_v6 = vmul.f32 0.015625, %v1716_v56  ;;  %v2361_v7 = vunpack.c.l.b16 %v2034_v57  ;;  %v1302_v13 = vadd.f32 %v1301_v61, %v483_v52  ;;  %v1846_v14 = vadd.f32 %v1845_v63, %v1844_v51  ;;  %v643_v23 = vld [vmem:[%s3937_s7 + $0xd40] sm:$0xff]  ;;  %v653_v41 = vld [vmem:[%s3937_s7 + $0xd90] sm:$0xff] }
 0x11b   : > { %v920_v18 = vrot.slane %v919_v3, 2  ;;  %v1045_v19 = vadd.f32 %v1044_v4, %v353_v59  ;;  %v1174_v20 = vadd.f32 %v1173_v5, %v423_v62  ;;  %v1431_v26 = vadd.f32 %v553_v2, %v543_v1  ;;  %v523_v35 = vld [vmem:[%s3937_s7 + $0x980] sm:$0xff]  ;;  %v713_v43 = vld [vmem:[%s3937_s7 + $0xf70] sm:$0xff] }
 0x11c   : > { %3443 = vmatpush3.bf16.msra.mxu1 %v3607_v49  ;;  %v2044_v21 = vpack.c.bf16 %v1964_v6, %v1964_v6  ;;  %v2432_v22 = vsel %vm2394_vm4, %v2361_v7, %v2431_v8  ;;  %v1303_v25 = vadd.f32 %v1302_v13, %v493_v0  ;;  %v1974_v27 = vmul.f32 0.015625, %v1846_v14  ;;  %v583_v36 = vld [vmem:[%s3937_s7 + $0xb60] sm:$0xff]  ;;  %v793_v49 = vld [vmem:[%s3937_s7 + $0x11f0] sm:$0xff] }
 0x11d   : > { %3444 = vmatprep.subr.bf16.mxu1 %v3610_v50  ;;  %v921_v30 = vadd.f32 %v920_v18, %v919_v3  ;;  %v1046_v31 = vadd.f32 %v1045_v19, %v363_v60  ;;  %v1175_v32 = vadd.f32 %v1174_v20, %v433_v11  ;;  %v1432_v38 = vadd.f32 %v1431_v26, %v563_v15  ;;  %v703_v42 = vld [vmem:[%s3937_s7 + $0xf20] sm:$0xff]  ;;  %v533_v54 = vld [vmem:[%s3937_s7 + $0x9d0] sm:$0xff] }
 0x11e   : > { %v2371_v33 = vunpack.c.l.b16 %v2044_v21  ;;  %v1304_v37 = vadd.f32 %v1303_v25, %v503_v12  ;;  %v1561_v39 = vadd.f32 %v633_v17, %v623_v16  ;;  %v2054_v40 = vpack.c.bf16 %v1974_v27, %v1974_v27  ;;  %v783_v48 = vld [vmem:[%s3937_s7 + $0x11a0] sm:$0xff]  ;;  %v593_v55 = vld [vmem:[%s3937_s7 + $0xbb0] sm:$0xff] }
 0x11f   : > { %v922_v44 = vrot.slane %v921_v30, 1  ;;  %v1047_v45 = vadd.f32 %v1046_v31, %v373_v10  ;;  %v1176_v46 = vadd.f32 %v1175_v32, %v443_v24  ;;  %v1433_v51 = vadd.f32 %v1432_v38, %v573_v29  ;;  %v663_v56 = vld [vmem:[%s3937_s7 + $0xde0] sm:$0xff]  ;;  %v673_v4 = vld [vmem:[%s3937_s7 + $0xe30] sm:$0xff] }
 0x120   : > { %v2433_v47 = vsel %vm2396_vm5, %v2371_v33, %v2432_v22  ;;  %3445 = vmatpush3.bf16.msra.mxu1 %v3611_v9  ;;  %v1305_v50 = vadd.f32 %v1304_v37, %v513_v28  ;;  %v1562_v52 = vadd.f32 %v1561_v39, %v643_v23  ;;  %v2381_v53 = vunpack.c.l.b16 %v2054_v40  ;;  %v723_v60 = vld [vmem:[%s3937_s7 + $0xfc0] sm:$0xff]  ;;  %v733_v9 = vld [vmem:[%s3937_s7 + $0x1010] sm:$0xff] }
 0x121   : > { %v923_v57 = vadd.f32 %v922_v44, %v921_v30  ;;  %v1048_v58 = vrot.slane %v1047_v45, 4  ;;  %v1177_v59 = vadd.f32 %v1176_v46, %v453_v34  ;;  %v803_v62 = vld [vmem:[%s3937_s7 + $0x1240] sm:$0xff]  ;;  %v1434_v63 = vadd.f32 %v1433_v51, %v583_v36  ;;  %v813_v10 = vld [vmem:[%s3937_s7 + $0x1290] sm:$0xff] }
 0x122   : > { %v1306_v61 = vadd.f32 %v1305_v50, %v523_v35  ;;  %v1563_v0 = vadd.f32 %v1562_v52, %v653_v41  ;;  %v1691_v1 = vadd.f32 %v713_v43, %v703_v42  ;;  %v2434_v2 = vsel %vm2398_vm6, %v2381_v53, %v2433_v47  ;;  %v603_v3 = vld [vmem:[%s3937_s7 + $0xc00] sm:$0xff]  ;;  %v613_v14 = vld [vmem:[%s3937_s7 + $0xc50] sm:$0xff]  ;;  %v226_v41 = vld [vmem:[%s3937_s7 + $0x38] sm:$0xff] }
 0x123   : > { %v1049_v5 = vadd.f32 %v1048_v58, %v1047_v45  ;;  %v1178_v6 = vrot.slane %v1177_v59, 4  ;;  %v1821_v7 = vadd.f32 %v793_v49, %v783_v48  ;;  %v2468_v8 = vpack.c.b16 %v2434_v2, %v2434_v2  ;;  %v683_v15 = vld [vmem:[%s3937_s7 + $0xe80] sm:$0xff]  ;;  %v693_v27 = vld [vmem:[%s3937_s7 + $0xed0] sm:$0xff]  ;;  %v236_v42 = vld [vmem:[%s3937_s7 + $0x88] sm:$0xff] }
 0x124   : > { %v1307_v11 = vadd.f32 %v1306_v61, %v533_v54  ;;  %v1435_v12 = vadd.f32 %v1434_v63, %v593_v55  ;;  %v1564_v13 = vadd.f32 %v1563_v0, %v663_v56  ;;  %v1692_v18 = vadd.f32 %v1691_v1, %v723_v60  ;;  %v743_v20 = vld [vmem:[%s3937_s7 + $0x1060] sm:$0xff]  ;;  %v753_v31 = vld [vmem:[%s3937_s7 + $0x10b0] sm:$0xff]  ;;  %v246_v53 = vld [vmem:[%s3937_s7 + $0xd8] sm:$0xff] }
 0x125   : > { %v1050_v16 = vrot.slane %v1049_v5, 2  ;;  %v1179_v17 = vadd.f32 %v1178_v6, %v1177_v59  ;;  %v1822_v19 = vadd.f32 %v1821_v7, %v803_v62  ;;  %3075 = vmatprep.mubr.bf16.mxu0 %v2468_v8  ;;  %v823_v21 = vld [vmem:[%s3937_s7 + $0x12e0] sm:$0xff]  ;;  %v1903_v26 = vmul.f32 0.015625, %v923_v57  ;;  %v833_v32 = vld [vmem:[%s3937_s7 + $0x1330] sm:$0xff]  ;;  %v256_v0 = vld [vmem:[%s3937_s7 + $0x128] sm:$0xff] }
 0x126   : > { %v1308_v22 = vrot.slane %v1307_v11, 4  ;;  %v1436_v24 = vadd.f32 %v1435_v12, %v603_v3  ;;  %v1565_v25 = vadd.f32 %v1564_v13, %v673_v4  ;;  %v1693_v23 = vadd.f32 %v1692_v18, %v733_v9  ;;  %v763_v43 = vld [vmem:[%s3937_s7 + $0x1100] sm:$0xff]  ;;  %v773_v54 = vld [vmem:[%s3937_s7 + $0x1150] sm:$0xff]  ;;  %v266_v9 = vld [vmem:[%s3937_s7 + $0x178] sm:$0xff] }
 0x127   : > { %v1051_v28 = vadd.f32 %v1050_v16, %v1049_v5  ;;  %v1180_v29 = vrot.slane %v1179_v17, 2  ;;  %v1823_v30 = vadd.f32 %v1822_v19, %v813_v10  ;;  %v1983_v36 = vpack.c.bf16 %v1903_v26, %v1903_v26  ;;  %v843_v44 = vld [vmem:[%s3937_s7 + $0x1380] sm:$0xff]  ;;  %v853_v55 = vld [vmem:[%s3937_s7 + $0x13d0] sm:$0xff]  ;;  %v276_v18 = vld [vmem:[%s3937_s7 + $0x1c8] sm:$0xff] }
 0x128   : > { %v1309_v33 = vadd.f32 %v1308_v22, %v1307_v11  ;;  %v1437_v34 = vadd.f32 %v1436_v24, %v613_v14  ;;  %v1566_v35 = vadd.f32 %v1565_v25, %v683_v15  ;;  %v1694_v39 = vadd.f32 %v1693_v23, %v743_v20  ;;  %v286_v19 = vld [vmem:[%s3937_s7 + $0x218] sm:$0xff]  ;;  %v316_v25 = vld [vmem:[%s3937_s7 + $0x308] sm:$0xff] }
 0x129   : > { %v1052_v37 = vrot.slane %v1051_v28, 1  ;;  %v1181_v38 = vadd.f32 %v1180_v29, %v1179_v17  ;;  %v1824_v40 = vadd.f32 %v1823_v30, %v823_v21  ;;  %v2310_v48 = vunpack.c.l.b16 %v1983_v36  ;;  %v306_v20 = vld [vmem:[%s3937_s7 + $0x2b8] sm:$0xff]  ;;  %v336_v36 = vld [vmem:[%s3937_s7 + $0x3a8] sm:$0xff] }
 0x12a   : > { %v1310_v45 = vrot.slane %v1309_v33, 2  ;;  %v1438_v46 = vrot.slane %v1437_v34, 4  ;;  %v1567_v47 = vadd.f32 %v1566_v35, %v693_v27  ;;  %v1695_v51 = vadd.f32 %v1694_v39, %v753_v31  ;;  %v326_v26 = vld [vmem:[%s3937_s7 + $0x358] sm:$0xff]  ;;  %v296_v31 = vld [vmem:[%s3937_s7 + $0x268] sm:$0xff] }
 0x12b   : > { %v1053_v49 = vadd.f32 %v1052_v37, %v1051_v28  ;;  %v1182_v50 = vrot.slane %v1181_v38, 1  ;;  %v1825_v52 = vadd.f32 %v1824_v40, %v833_v32  ;;  %v950_v59 = vadd.f32 %v236_v42, %v226_v41  ;;  %v386_v32 = vld [vmem:[%s3937_s7 + $0x538] sm:$0xff]  ;;  %v396_v37 = vld [vmem:[%s3937_s7 + $0x588] sm:$0xff] }
 0x12c   : > { %v1311_v56 = vadd.f32 %v1310_v45, %v1309_v33  ;;  %v1439_v57 = vadd.f32 %v1438_v46, %v1437_v34  ;;  %v1568_v58 = vrot.slane %v1567_v47, 4  ;;  %v1696_v62 = vadd.f32 %v1695_v51, %v763_v43  ;;  %v406_v42 = vld [vmem:[%s3937_s7 + $0x5d8] sm:$0xff] }
 0x12d   : > { %v1183_v60 = vadd.f32 %v1182_v50, %v1181_v38  ;;  %v1826_v61 = vadd.f32 %v1825_v52, %v843_v44  ;;  %v1913_v63 = vmul.f32 0.015625, %v1053_v49  ;;  %v951_v4 = vadd.f32 %v950_v59, %v246_v53  ;;  %v466_v43 = vld [vmem:[%s3937_s7 + $0x7b8] sm:$0xff]  ;;  %v416_v49 = vld [vmem:[%s3937_s7 + $0x628] sm:$0xff] }
 0x12e   : > { %v1312_v1 = vrot.slane %v1311_v56, 1  ;;  %v1440_v2 = vrot.slane %v1439_v57, 2  ;;  %v1569_v3 = vadd.f32 %v1568_v58, %v1567_v47  ;;  %v1697_v5 = vadd.f32 %v1696_v62, %v773_v54  ;;  %v476_v50 = vld [vmem:[%s3937_s7 + $0x808] sm:$0xff]  ;;  %v486_v62 = vld [vmem:[%s3937_s7 + $0x858] sm:$0xff] }
 0x12f   : > { %v1827_v6 = vadd.f32 %v1826_v61, %v853_v55  ;;  %v1923_v7 = vmul.f32 0.015625, %v1183_v60  ;;  %v1993_v8 = vpack.c.bf16 %v1913_v63, %v1913_v63  ;;  %v952_v13 = vadd.f32 %v951_v4, %v256_v0  ;;  %v356_v59 = vld [vmem:[%s3937_s7 + $0x448] sm:$0xff]  ;;  %v426_v60 = vld [vmem:[%s3937_s7 + $0x678] sm:$0xff] }
 0x130   : > { %v1313_v10 = vadd.f32 %v1312_v1, %v1311_v56  ;;  %v1441_v11 = vadd.f32 %v1440_v2, %v1439_v57  ;;  %v1570_v12 = vrot.slane %v1569_v3, 2  ;;  %v1698_v14 = vrot.slane %v1697_v5, 4  ;;  %v496_v1 = vld [vmem:[%s3937_s7 + $0x8a8] sm:$0xff]  ;;  %v546_v2 = vld [vmem:[%s3937_s7 + $0xa38] sm:$0xff] }
 0x131   : > { %v1828_v15 = vrot.slane %v1827_v6, 4  ;;  %v2003_v16 = vpack.c.bf16 %v1923_v7, %v1923_v7  ;;  %v2320_v17 = vunpack.c.l.b16 %v1993_v8  ;;  %v953_v27 = vadd.f32 %v952_v13, %v266_v9  ;;  %v366_v7 = vld [vmem:[%s3937_s7 + $0x498] sm:$0xff]  ;;  %v436_v8 = vld [vmem:[%s3937_s7 + $0x6c8] sm:$0xff] }
 0x132   : > { %v1442_v21 = vrot.slane %v1441_v11, 1  ;;  %v1571_v22 = vadd.f32 %v1570_v12, %v1569_v3  ;;  %v1933_v24 = vmul.f32 0.015625, %v1313_v10  ;;  %v1699_v28 = vadd.f32 %v1698_v14, %v1697_v5  ;;  %v556_v9 = vld [vmem:[%s3937_s7 + $0xa88] sm:$0xff]  ;;  %v506_v14 = vld [vmem:[%s3937_s7 + $0x8f8] sm:$0xff] }
 0x133   : > { %v1829_v29 = vadd.f32 %v1828_v15, %v1827_v6  ;;  %v2330_v23 = vunpack.c.l.b16 %v2003_v16  ;;  %v2421_v30 = vsel %vm2386_vm0, %v2320_v17, %v2310_v48  ;;  %v954_v38 = vadd.f32 %v953_v27, %v276_v18  ;;  %v346_v48 = vld [vmem:[%s3937_s7 + $0x3f8] sm:$0xff]  ;;  %v516_v27 = vld [vmem:[%s3937_s7 + $0x948] sm:$0xff] }
 0x134   : > { %v1443_v33 = vadd.f32 %v1442_v21, %v1441_v11  ;;  %v1572_v34 = vrot.slane %v1571_v22, 1  ;;  %v2013_v35 = vpack.c.bf16 %v1933_v24, %v1933_v24  ;;  %v1700_v39 = vrot.slane %v1699_v28, 2  ;;  %v566_v21 = vld [vmem:[%s3937_s7 + $0xad8] sm:$0xff] }
 0x135   : > { %v1830_v40 = vrot.slane %v1829_v29, 2  ;;  %v2422_v41 = vsel %vm2388_vm1, %v2330_v23, %v2421_v30  ;;  %v1080_v44 = vadd.f32 %v316_v25, %v306_v20  ;;  %v955_v51 = vadd.f32 %v954_v38, %v286_v19  ;;  %v376_v19 = vld [vmem:[%s3937_s7 + $0x4e8] sm:$0xff]  ;;  %v446_v20 = vld [vmem:[%s3937_s7 + $0x718] sm:$0xff] }
 0x136   : > { %v1573_v45 = vadd.f32 %v1572_v34, %v1571_v22  ;;  %v1943_v46 = vmul.f32 0.015625, %v1443_v33  ;;  %v2340_v47 = vunpack.c.l.b16 %v2013_v35  ;;  %v1701_v52 = vadd.f32 %v1700_v39, %v1699_v28  ;;  %v576_v28 = vld [vmem:[%s3937_s7 + $0xb28] sm:$0xff]  ;;  %v646_v34 = vld [vmem:[%s3937_s7 + $0xd58] sm:$0xff] }
 0x137   : > { %v1831_v53 = vadd.f32 %v1830_v40, %v1829_v29  ;;  %v1081_v54 = vadd.f32 %v1080_v44, %v326_v26  ;;  %v1210_v55 = vadd.f32 %v396_v37, %v386_v32  ;;  %v956_v61 = vadd.f32 %v955_v51, %v296_v31  ;;  %v626_v29 = vld [vmem:[%s3937_s7 + $0xcb8] sm:$0xff]  ;;  %v636_v23 = vld [vmem:[%s3937_s7 + $0xd08] sm:$0xff] }
 0x138   : > { %v1953_v56 = vmul.f32 0.015625, %v1573_v45  ;;  %v2023_v57 = vpack.c.bf16 %v1943_v46, %v1943_v46  ;;  %v2423_v58 = vsel %vm2390_vm2, %v2340_v47, %v2422_v41  ;;  %v1702_v63 = vrot.slane %v1701_v52, 1  ;;  %v456_v33 = vld [vmem:[%s3937_s7 + $0x768] sm:$0xff]  ;;  %v586_v51 = vld [vmem:[%s3937_s7 + $0xb78] sm:$0xff] }
 0x139   : > { %v1832_v0 = vrot.slane %v1831_v53, 1  ;;  %v1082_v3 = vadd.f32 %v1081_v54, %v336_v36  ;;  %v1211_v4 = vadd.f32 %v1210_v55, %v406_v42  ;;  %v957_v10 = vrot.slane %v956_v61, 4  ;;  %v706_v42 = vld [vmem:[%s3937_s7 + $0xf38] sm:$0xff]  ;;  %v536_v54 = vld [vmem:[%s3937_s7 + $0x9e8] sm:$0xff] }
 0x13a   : > { %v2033_v5 = vpack.c.bf16 %v1953_v56, %v1953_v56  ;;  %v2350_v6 = vunpack.c.l.b16 %v2023_v57  ;;  %v1340_v11 = vadd.f32 %v476_v50, %v466_v43  ;;  %v1703_v12 = vadd.f32 %v1702_v63, %v1701_v52  ;;  %v716_v43 = vld [vmem:[%s3937_s7 + $0xf88] sm:$0xff]  ;;  %v526_v50 = vld [vmem:[%s3937_s7 + $0x998] sm:$0xff] }
 0x13b   : > { %v1833_v13 = vadd.f32 %v1832_v0, %v1831_v53  ;;  %v1083_v15 = vadd.f32 %v1082_v3, %v346_v48  ;;  %v1212_v16 = vadd.f32 %v1211_v4, %v416_v49  ;;  %v958_v22 = vadd.f32 %v957_v10, %v956_v61  ;;  %v596_v55 = vld [vmem:[%s3937_s7 + $0xbc8] sm:$0xff]  ;;  %v726_v61 = vld [vmem:[%s3937_s7 + $0xfd8] sm:$0xff] }
 0x13c   : > { %v2360_v17 = vunpack.c.l.b16 %v2033_v5  ;;  %v2424_v18 = vsel %vm2392_vm3, %v2350_v6, %v2423_v58  ;;  %v1341_v24 = vadd.f32 %v1340_v11, %v486_v62  ;;  %v1963_v25 = vmul.f32 0.015625, %v1703_v12  ;;  %v656_v56 = vld [vmem:[%s3937_s7 + $0xda8] sm:$0xff]  ;;  %v786_v63 = vld [vmem:[%s3937_s7 + $0x11b8] sm:$0xff] }
 0x13d   : > { %v1973_v26 = vmul.f32 0.015625, %v1833_v13  ;;  %v1084_v30 = vadd.f32 %v1083_v15, %v356_v59  ;;  %v1213_v31 = vadd.f32 %v1212_v16, %v426_v60  ;;  %v959_v35 = vrot.slane %v958_v22, 2  ;;  %v796_v0 = vld [vmem:[%s3937_s7 + $0x1208] sm:$0xff]  ;;  %v606_v5 = vld [vmem:[%s3937_s7 + $0xc18] sm:$0xff] }
 0x13e   : > { %v2425_v32 = vsel %vm2394_vm4, %v2360_v17, %v2424_v18  ;;  %v1342_v36 = vadd.f32 %v1341_v24, %v496_v1  ;;  %v1470_v37 = vadd.f32 %v556_v9, %v546_v2  ;;  %v2043_v38 = vpack.c.bf16 %v1963_v25, %v1963_v25  ;;  %v666_v6 = vld [vmem:[%s3937_s7 + $0xdf8] sm:$0xff]  ;;  %v736_v12 = vld [vmem:[%s3937_s7 + $0x1028] sm:$0xff]  ;;  %v3614_v17 = vld [vmem:[#allocation5 + $0x270] sm:$0xff]  }
 0x13f   : > { %v2053_v39 = vpack.c.bf16 %v1973_v26, %v1973_v26  ;;  %v1085_v40 = vadd.f32 %v1084_v30, %v366_v7  ;;  %v1214_v41 = vadd.f32 %v1213_v31, %v436_v8  ;;  %v960_v44 = vadd.f32 %v959_v35, %v958_v22  ;;  %v3613_v10 = vld [vmem:[#allocation5 + $0x238] sm:$0xff]   ;;  %v676_v18 = vld [vmem:[%s3937_s7 + $0xe48] sm:$0xff]  ;;  %v3615_v35 = vld [vmem:[#allocation5 + $0x230] sm:$0xff]  }
 0x140   : > { %v1343_v45 = vadd.f32 %v1342_v36, %v506_v14  ;;  %v1471_v46 = vadd.f32 %v1470_v37, %v566_v21  ;;  %v1600_v47 = vadd.f32 %v636_v23, %v626_v29  ;;  %v2370_v48 = vunpack.c.l.b16 %v2043_v38  ;;  %v806_v13 = vld [vmem:[%s3937_s7 + $0x1258] sm:$0xff]  ;;  %v616_v24 = vld [vmem:[%s3937_s7 + $0xc68] sm:$0xff] }
 0x141   : > { %v2380_v49 = vunpack.c.l.b16 %v2053_v39  ;;  %v1086_v52 = vadd.f32 %v1085_v40, %v376_v19  ;;  %v1215_v53 = vadd.f32 %v1214_v41, %v446_v20  ;;  %v961_v57 = vrot.slane %v960_v44, 1  ;;  %v746_v25 = vld [vmem:[%s3937_s7 + $0x1078] sm:$0xff]  ;;  %v816_v26 = vld [vmem:[%s3937_s7 + $0x12a8] sm:$0xff] }
 0x142   : > { %v1344_v58 = vadd.f32 %v1343_v45, %v516_v27  ;;  %v1472_v59 = vadd.f32 %v1471_v46, %v576_v28  ;;  %v1601_v60 = vadd.f32 %v1600_v47, %v646_v34  ;;  %v2426_v62 = vsel %vm2396_vm5, %v2370_v48, %v2425_v32  ;;  %v686_v30 = vld [vmem:[%s3937_s7 + $0xe98] sm:$0xff]  ;;  %v756_v36 = vld [vmem:[%s3937_s7 + $0x10c8] sm:$0xff]  ;;  %v225_v48 = vld [vmem:[%s3937_s7 + $0x30] sm:$0xff] }
 0x143   : > { %v1087_v1 = vrot.slane %v1086_v52, 4  ;;  %v1216_v2 = vadd.f32 %v1215_v53, %v456_v33  ;;  %v1730_v3 = vadd.f32 %v716_v43, %v706_v42  ;;  %v2427_v4 = vsel %vm2398_vm6, %v2380_v49, %v2426_v62  ;;  %v826_v37 = vld [vmem:[%s3937_s7 + $0x12f8] sm:$0xff]  ;;  %v3616_v42 = vld [vmem:[#allocation5 + $0x268] sm:$0xff]   ;;  %v235_v49 = vld [vmem:[%s3937_s7 + $0x80] sm:$0xff] }
 0x144   : > { %v962_v7 = vadd.f32 %v961_v57, %v960_v44  ;;  %v1345_v8 = vadd.f32 %v1344_v58, %v526_v50  ;;  %v1473_v9 = vadd.f32 %v1472_v59, %v586_v51  ;;  %v2467_v11 = vpack.c.b16 %v2427_v4, %v2427_v4  ;;  %v696_v43 = vld [vmem:[%s3937_s7 + $0xee8] sm:$0xff]  ;;  %v766_v50 = vld [vmem:[%s3937_s7 + $0x1118] sm:$0xff]  ;;  %v3618_v4 = vld [vmem:[#allocation5 + $0x260] sm:$0xff]  }
 0x145   : > { %v1088_v14 = vadd.f32 %v1087_v1, %v1086_v52  ;;  %v1217_v15 = vrot.slane %v1216_v2, 4  ;;  %v1602_v16 = vadd.f32 %v1601_v60, %v656_v56  ;;  %v1731_v21 = vadd.f32 %v1730_v3, %v726_v61  ;;  %v836_v51 = vld [vmem:[%s3937_s7 + $0x1348] sm:$0xff]  ;;  %v245_v60 = vld [vmem:[%s3937_s7 + $0xd0] sm:$0xff] }
 0x146   : > { %v1346_v19 = vadd.f32 %v1345_v8, %v536_v54  ;;  %v1474_v20 = vadd.f32 %v1473_v9, %v596_v55  ;;  %v1860_v22 = vadd.f32 %v796_v0, %v786_v63  ;;  %3076 = vmatmul.mubr.bf16.vlgmr.msra.gmra.mxu0 %v2467_v11  ;;  %v1906_v23 = vmul.f32 0.015625, %v962_v7  ;;  %v3617_v62 = vld [vmem:[#allocation5 + $0x228] sm:$0xff]   ;;  %v846_v63 = vld [vmem:[%s3937_s7 + $0x1398] sm:$0xff]  ;;  %v255_v9 = vld [vmem:[%s3937_s7 + $0x120] sm:$0xff] }
 0x147   : > { %v1089_v27 = vrot.slane %v1088_v14, 2  ;;  %v1218_v28 = vadd.f32 %v1217_v15, %v1216_v2  ;;  %v1603_v29 = vadd.f32 %v1602_v16, %v666_v6  ;;  %v1732_v33 = vadd.f32 %v1731_v21, %v736_v12  ;;  %3453 = vmatpush3.bf16.msra.mxu0 %v3613_v10  ;;  %v776_v61 = vld [vmem:[%s3937_s7 + $0x1168] sm:$0xff] }
 0x148   : > { %v1347_v31 = vrot.slane %v1346_v19, 4  ;;  %v1475_v32 = vadd.f32 %v1474_v20, %v606_v5  ;;  %v1861_v34 = vadd.f32 %v1860_v22, %v806_v13  ;;  %v1986_v41 = vpack.c.bf16 %v1906_v23, %v1906_v23  ;;  %3454 = vmatprep.subr.bf16.mxu0 %v3614_v17  ;;  %v856_v10 = vld [vmem:[%s3937_s7 + $0x13e8] sm:$0xff]  ;;  %v3619_v20 = vld [vmem:[#allocation5 + $0x220] sm:$0xff]  }
 0x149   : > { %v1090_v38 = vadd.f32 %v1089_v27, %v1088_v14  ;;  %v1219_v39 = vrot.slane %v1218_v28, 2  ;;  %v1604_v40 = vadd.f32 %v1603_v29, %v676_v18  ;;  %v1733_v46 = vadd.f32 %v1732_v33, %v746_v25 }
 0x14a   : > { %v1348_v44 = vadd.f32 %v1347_v31, %v1346_v19  ;;  %v1476_v45 = vadd.f32 %v1475_v32, %v616_v24  ;;  %v1862_v47 = vadd.f32 %v1861_v34, %v816_v26  ;;  %v2313_v55 = vunpack.c.l.b16 %v1986_v41  ;;  %v265_v19 = vld [vmem:[%s3937_s7 + $0x170] sm:$0xff]  ;;  %v3620_v26 = vld [vmem:[#allocation5 + $0x258] sm:$0xff]   ;;  %v315_v41 = vld [vmem:[%s3937_s7 + $0x300] sm:$0xff] }
 0x14b   : > { %v1091_v52 = vrot.slane %v1090_v38, 1  ;;  %v1220_v53 = vadd.f32 %v1219_v39, %v1218_v28  ;;  %v1605_v54 = vadd.f32 %v1604_v40, %v686_v30  ;;  %v1734_v58 = vadd.f32 %v1733_v46, %v756_v36  ;;  %3455 = vmatpush3.bf16.msra.mxu0 %v3615_v35  ;;  %v275_v30 = vld [vmem:[%s3937_s7 + $0x1c0] sm:$0xff]  ;;  %v285_v34 = vld [vmem:[%s3937_s7 + $0x210] sm:$0xff] }
 0x14c   : > { %v1349_v56 = vrot.slane %v1348_v44, 2  ;;  %v1477_v57 = vrot.slane %v1476_v45, 4  ;;  %v1863_v59 = vadd.f32 %v1862_v47, %v826_v37  ;;  %v937_v3 = vadd.f32 %v235_v49, %v225_v48  ;;  %3456 = vmatprep.subr.bf16.mxu0 %v3616_v42  ;;  %v305_v40 = vld [vmem:[%s3937_s7 + $0x2b0] sm:$0xff]  ;;  %v3621_v42 = vld [vmem:[#allocation5 + $0x218] sm:$0xff]   ;;  %v295_v46 = vld [vmem:[%s3937_s7 + $0x260] sm:$0xff] }
 0x14d   : > { %v1092_v0 = vadd.f32 %v1091_v52, %v1090_v38  ;;  %v1221_v1 = vrot.slane %v1220_v53, 1  ;;  %v1606_v2 = vadd.f32 %v1605_v54, %v696_v43  ;;  %v1735_v7 = vadd.f32 %v1734_v58, %v766_v50  ;;  %v3622_v48 = vld [vmem:[#allocation5 + $0x250] sm:$0xff]  }
 0x14e   : > { %v1350_v5 = vadd.f32 %v1349_v56, %v1348_v44  ;;  %v1478_v6 = vadd.f32 %v1477_v57, %v1476_v45  ;;  %v1864_v8 = vadd.f32 %v1863_v59, %v836_v51  ;;  %v938_v14 = vadd.f32 %v937_v3, %v245_v60  ;;  %v385_v54 = vld [vmem:[%s3937_s7 + $0x530] sm:$0xff]  ;;  %v395_v56 = vld [vmem:[%s3937_s7 + $0x580] sm:$0xff] }
 0x14f   : > { %v1222_v11 = vadd.f32 %v1221_v1, %v1220_v53  ;;  %v1607_v12 = vrot.slane %v1606_v2, 4  ;;  %v1916_v13 = vmul.f32 0.015625, %v1092_v0  ;;  %v1736_v17 = vadd.f32 %v1735_v7, %v776_v61  ;;  %3457 = vmatpush3.bf16.msra.mxu0 %v3617_v62  ;;  %v325_v53 = vld [vmem:[%s3937_s7 + $0x350] sm:$0xff]  ;;  %v335_v0 = vld [vmem:[%s3937_s7 + $0x3a0] sm:$0xff] }
 0x150   : > { %v1351_v15 = vrot.slane %v1350_v5, 1  ;;  %v1479_v16 = vrot.slane %v1478_v6, 2  ;;  %v1865_v18 = vadd.f32 %v1864_v8, %v846_v63  ;;  %v939_v25 = vadd.f32 %v938_v14, %v255_v9  ;;  %3458 = vmatprep.subr.bf16.mxu0 %v3618_v4  ;;  %v405_v1 = vld [vmem:[%s3937_s7 + $0x5d0] sm:$0xff]  ;;  %v3624_v9 = vld [vmem:[#allocation5 + $0x248] sm:$0xff]  }
 0x151   : > { %v1608_v21 = vadd.f32 %v1607_v12, %v1606_v2  ;;  %v1926_v22 = vmul.f32 0.015625, %v1222_v11  ;;  %v1996_v24 = vpack.c.bf16 %v1916_v13, %v1916_v13  ;;  %v1737_v29 = vrot.slane %v1736_v17, 4  ;;  %v3623_v2 = vld [vmem:[#allocation5 + $0x210] sm:$0xff]  }
 0x152   : > { %v1352_v27 = vadd.f32 %v1351_v15, %v1350_v5  ;;  %v1480_v28 = vadd.f32 %v1479_v16, %v1478_v6  ;;  %v1866_v23 = vadd.f32 %v1865_v18, %v856_v10  ;;  %v940_v35 = vadd.f32 %v939_v25, %v265_v19  ;;  %v465_v4 = vld [vmem:[%s3937_s7 + $0x7b0] sm:$0xff]  ;;  %v475_v5 = vld [vmem:[%s3937_s7 + $0x800] sm:$0xff] }
 0x153   : > { %v1609_v31 = vrot.slane %v1608_v21, 2  ;;  %v2006_v32 = vpack.c.bf16 %v1926_v22, %v1926_v22  ;;  %v2323_v33 = vunpack.c.l.b16 %v1996_v24  ;;  %v1738_v37 = vadd.f32 %v1737_v29, %v1736_v17  ;;  %3459 = vmatpush3.bf16.msra.mxu0 %v3619_v20  ;;  %v345_v14 = vld [vmem:[%s3937_s7 + $0x3f0] sm:$0xff]  ;;  %v415_v15 = vld [vmem:[%s3937_s7 + $0x620] sm:$0xff]  ;;  %v3625_v29 = vld [vmem:[#allocation5 + $0x208] sm:$0xff]  }
 0x154   : > { %v1481_v36 = vrot.slane %v1480_v28, 1  ;;  %v1867_v38 = vrot.slane %v1866_v23, 4  ;;  %v1936_v39 = vmul.f32 0.015625, %v1352_v27  ;;  %v941_v47 = vadd.f32 %v940_v35, %v275_v30  ;;  %3460 = vmatprep.subr.bf16.mxu0 %v3620_v26  ;;  %v355_v17 = vld [vmem:[%s3937_s7 + $0x440] sm:$0xff]  ;;  %v485_v18 = vld [vmem:[%s3937_s7 + $0x850] sm:$0xff] }
 0x155   : > { %v1610_v43 = vadd.f32 %v1609_v31, %v1608_v21  ;;  %v2333_v44 = vunpack.c.l.b16 %v2006_v32  ;;  %v2442_v45 = vsel %vm2386_vm0, %v2323_v33, %v2313_v55  ;;  %v1739_v50 = vrot.slane %v1738_v37, 2  ;;  %v425_v26 = vld [vmem:[%s3937_s7 + $0x670] sm:$0xff]  ;;  %v495_v27 = vld [vmem:[%s3937_s7 + $0x8a0] sm:$0xff] }
 0x156   : > { %v1482_v49 = vadd.f32 %v1481_v36, %v1480_v28  ;;  %v1868_v51 = vadd.f32 %v1867_v38, %v1866_v23  ;;  %v2016_v52 = vpack.c.bf16 %v1936_v39, %v1936_v39  ;;  %v942_v59 = vadd.f32 %v941_v47, %v285_v34  ;;  %v545_v30 = vld [vmem:[%s3937_s7 + $0xa30] sm:$0xff]  ;;  %v555_v31 = vld [vmem:[%s3937_s7 + $0xa80] sm:$0xff] }
 0x157   : > { %v1611_v57 = vrot.slane %v1610_v43, 1  ;;  %v2443_v58 = vsel %vm2388_vm1, %v2333_v44, %v2442_v45  ;;  %v1067_v55 = vadd.f32 %v315_v41, %v305_v40  ;;  %v1740_v60 = vadd.f32 %v1739_v50, %v1738_v37  ;;  %3461 = vmatpush3.bf16.msra.mxu0 %v3621_v42  ;;  %v3626_v35 = vld [vmem:[#allocation5 + $0x240] sm:$0xff]   ;;  %v365_v39 = vld [vmem:[%s3937_s7 + $0x490] sm:$0xff] }
 0x158   : > { %v1869_v62 = vrot.slane %v1868_v51, 2  ;;  %v1946_v61 = vmul.f32 0.015625, %v1482_v49  ;;  %v2343_v63 = vunpack.c.l.b16 %v2016_v52  ;;  %v943_v6 = vadd.f32 %v942_v59, %v295_v46  ;;  %3462 = vmatprep.subr.bf16.mxu0 %v3622_v48  ;;  %v375_v40 = vld [vmem:[%s3937_s7 + $0x4e0] sm:$0xff]  ;;  %v445_v44 = vld [vmem:[%s3937_s7 + $0x710] sm:$0xff] }
 0x159   : > { %v1612_v3 = vadd.f32 %v1611_v57, %v1610_v43  ;;  %v1068_v7 = vadd.f32 %v1067_v55, %v325_v53  ;;  %v1197_v8 = vadd.f32 %v395_v56, %v385_v54  ;;  %v1741_v10 = vrot.slane %v1740_v60, 1  ;;  %v435_v41 = vld [vmem:[%s3937_s7 + $0x6c0] sm:$0xff]  ;;  %v505_v45 = vld [vmem:[%s3937_s7 + $0x8f0] sm:$0xff] }
 0x15a   : > { %v1870_v11 = vadd.f32 %v1869_v62, %v1868_v51  ;;  %v2026_v12 = vpack.c.bf16 %v1946_v61, %v1946_v61  ;;  %v2444_v13 = vsel %vm2390_vm2, %v2343_v63, %v2443_v58  ;;  %v944_v19 = vrot.slane %v943_v6, 4  ;;  %v565_v46 = vld [vmem:[%s3937_s7 + $0xad0] sm:$0xff]  ;;  %v635_v53 = vld [vmem:[%s3937_s7 + $0xd00] sm:$0xff] }
 0x15b   : > { %v1956_v16 = vmul.f32 0.015625, %v1612_v3  ;;  %v1069_v20 = vadd.f32 %v1068_v7, %v335_v0  ;;  %v1198_v21 = vadd.f32 %v1197_v8, %v405_v1  ;;  %v1742_v22 = vadd.f32 %v1741_v10, %v1740_v60  ;;  %3463 = vmatpush3.bf16.msra.mxu0 %v3623_v2  ;;  %v625_v52 = vld [vmem:[%s3937_s7 + $0xcb0] sm:$0xff]  ;;  %v3627_v57 = vld [vmem:[#allocation5 + $0x200] sm:$0xff]  }
 0x15c   : > { %v1871_v24 = vrot.slane %v1870_v11, 1  ;;  %v2353_v25 = vunpack.c.l.b16 %v2026_v12  ;;  %v1327_v28 = vadd.f32 %v475_v5, %v465_v4  ;;  %v945_v32 = vadd.f32 %v944_v19, %v943_v6  ;;  %3464 = vmatprep.subr.bf16.mxu0 %v3624_v9  ;;  %v515_v59 = vld [vmem:[%s3937_s7 + $0x940] sm:$0xff]  ;;  %v525_v2 = vld [vmem:[%s3937_s7 + $0x990] sm:$0xff] }
 0x15d   : > { %v2036_v23 = vpack.c.bf16 %v1956_v16, %v1956_v16  ;;  %v1070_v33 = vadd.f32 %v1069_v20, %v345_v14  ;;  %v1199_v34 = vadd.f32 %v1198_v21, %v415_v15  ;;  %v1966_v37 = vmul.f32 0.015625, %v1742_v22  ;;  %v575_v55 = vld [vmem:[%s3937_s7 + $0xb20] sm:$0xff]  ;;  %v645_v3 = vld [vmem:[%s3937_s7 + $0xd50] sm:$0xff] }
 0x15e   : > { %v1872_v36 = vadd.f32 %v1871_v24, %v1870_v11  ;;  %v2445_v38 = vsel %vm2392_vm3, %v2353_v25, %v2444_v13  ;;  %v1328_v42 = vadd.f32 %v1327_v28, %v485_v18  ;;  %v946_v47 = vrot.slane %v945_v32, 2  ;;  %v455_v1 = vld [vmem:[%s3937_s7 + $0x760] sm:$0xff]  ;;  %v585_v6 = vld [vmem:[%s3937_s7 + $0xb70] sm:$0xff] }
 0x15f   : > { %v2363_v43 = vunpack.c.l.b16 %v2036_v23  ;;  %v1071_v48 = vadd.f32 %v1070_v33, %v355_v17  ;;  %v1200_v49 = vadd.f32 %v1199_v34, %v425_v26  ;;  %v2046_v51 = vpack.c.bf16 %v1966_v37, %v1966_v37  ;;  %3465 = vmatpush3.bf16.msra.mxu0 %v3625_v29  ;;  %v705_v7 = vld [vmem:[%s3937_s7 + $0xf30] sm:$0xff]  ;;  %v715_v8 = vld [vmem:[%s3937_s7 + $0xf80] sm:$0xff] }
 0x160   : > { %v1976_v50 = vmul.f32 0.015625, %v1872_v36  ;;  %v1329_v54 = vadd.f32 %v1328_v42, %v495_v27  ;;  %v1457_v56 = vadd.f32 %v555_v31, %v545_v30  ;;  %v947_v60 = vadd.f32 %v946_v47, %v945_v32  ;;  %3466 = vmatprep.subr.bf16.mxu0 %v3626_v35  ;;  %v535_v15 = vld [vmem:[%s3937_s7 + $0x9e0] sm:$0xff]  ;;  %v725_v20 = vld [vmem:[%s3937_s7 + $0xfd0] sm:$0xff] }
 0x161   : > { %v2446_v58 = vsel %vm2394_vm4, %v2363_v43, %v2445_v38  ;;  %v1072_v62 = vadd.f32 %v1071_v48, %v365_v39  ;;  %v1201_v61 = vadd.f32 %v1200_v49, %v435_v41  ;;  %v2373_v0 = vunpack.c.l.b16 %v2046_v51  ;;  %v595_v16 = vld [vmem:[%s3937_s7 + $0xbc0] sm:$0xff]  ;;  %v785_v21 = vld [vmem:[%s3937_s7 + $0x11b0] sm:$0xff] }
 0x162   : > { %v2056_v63 = vpack.c.bf16 %v1976_v50, %v1976_v50  ;;  %v1330_v4 = vadd.f32 %v1329_v54, %v505_v45  ;;  %v1458_v5 = vadd.f32 %v1457_v56, %v565_v46  ;;  %v948_v9 = vrot.slane %v947_v60, 1  ;;  %v655_v17 = vld [vmem:[%s3937_s7 + $0xda0] sm:$0xff]  ;;  %v665_v29 = vld [vmem:[%s3937_s7 + $0xdf0] sm:$0xff] }
 0x163   : > { %v1073_v10 = vadd.f32 %v1072_v62, %v375_v40  ;;  %v1202_v11 = vadd.f32 %v1201_v61, %v445_v44  ;;  %v1587_v12 = vadd.f32 %v635_v53, %v625_v52  ;;  %v2447_v14 = vsel %vm2396_vm5, %v2373_v0, %v2446_v58  ;;  %3467 = vmatpush3.bf16.msra.mxu0 %v3627_v57  ;;  %v795_v22 = vld [vmem:[%s3937_s7 + $0x1200] sm:$0xff]  ;;  %v605_v33 = vld [vmem:[%s3937_s7 + $0xc10] sm:$0xff] }
 0x164   : > { %v2383_v13 = vunpack.c.l.b16 %v2056_v63  ;;  %v1331_v18 = vadd.f32 %v1330_v4, %v515_v59  ;;  %v1459_v19 = vadd.f32 %v1458_v5, %v575_v55  ;;  %v949_v24 = vadd.f32 %v948_v9, %v947_v60  ;;  %v735_v34 = vld [vmem:[%s3937_s7 + $0x1020] sm:$0xff]  ;;  %v805_v35 = vld [vmem:[%s3937_s7 + $0x1250] sm:$0xff]  ;;  %v238_v4 = vld [vmem:[%s3937_s7 + $0x98] sm:$0xff] }
 0x165   : > { %v1074_v25 = vrot.slane %v1073_v10, 4  ;;  %v1203_v26 = vadd.f32 %v1202_v11, %v455_v1  ;;  %v1588_v27 = vadd.f32 %v1587_v12, %v645_v3  ;;  %v1717_v31 = vadd.f32 %v715_v8, %v705_v7  ;;  %v675_v39 = vld [vmem:[%s3937_s7 + $0xe40] sm:$0xff]  ;;  %v745_v45 = vld [vmem:[%s3937_s7 + $0x1070] sm:$0xff]  ;;  %v228_v3 = vld [vmem:[%s3937_s7 + $0x48] sm:$0xff] }
 0x166   : > { %v2448_v28 = vsel %vm2398_vm6, %v2383_v13, %v2447_v14  ;;  %v1332_v23 = vadd.f32 %v1331_v18, %v525_v2  ;;  %v1460_v30 = vadd.f32 %v1459_v19, %v585_v6  ;;  %v1847_v43 = vadd.f32 %v795_v22, %v785_v21  ;;  %v615_v44 = vld [vmem:[%s3937_s7 + $0xc60] sm:$0xff]  ;;  %v685_v51 = vld [vmem:[%s3937_s7 + $0xe90] sm:$0xff] }
 0x167   : > { %v2470_v32 = vpack.c.b16 %v2448_v28, %v2448_v28  ;;  %v1075_v36 = vadd.f32 %v1074_v25, %v1073_v10  ;;  %v1204_v37 = vrot.slane %v1203_v26, 4  ;;  %v1589_v38 = vadd.f32 %v1588_v27, %v655_v17  ;;  %v815_v46 = vld [vmem:[%s3937_s7 + $0x12a0] sm:$0xff]  ;;  %v825_v58 = vld [vmem:[%s3937_s7 + $0x12f0] sm:$0xff]  ;;  %v258_v27 = vld [vmem:[%s3937_s7 + $0x138] sm:$0xff] }
 0x168   : > { %v1333_v40 = vadd.f32 %v1332_v23, %v535_v15  ;;  %v1461_v41 = vadd.f32 %v1460_v30, %v595_v16  ;;  %v1718_v42 = vadd.f32 %v1717_v31, %v725_v20  ;;  %v1905_v50 = vmul.f32 0.015625, %v949_v24  ;;  %v755_v57 = vld [vmem:[%s3937_s7 + $0x10c0] sm:$0xff]  ;;  %v765_v5 = vld [vmem:[%s3937_s7 + $0x1110] sm:$0xff]  ;;  %v248_v15 = vld [vmem:[%s3937_s7 + $0xe8] sm:$0xff] }
 0x169   : > { %3115 = vmatprep.mubr.bf16.mxu1 %v2470_v32  ;;  %v1076_v47 = vrot.slane %v1075_v36, 2  ;;  %v1205_v48 = vadd.f32 %v1204_v37, %v1203_v26  ;;  %v1590_v49 = vadd.f32 %v1589_v38, %v665_v29  ;;  %v1848_v56 = vadd.f32 %v1847_v43, %v805_v35  ;;  %v695_v61 = vld [vmem:[%s3937_s7 + $0xee0] sm:$0xff]  ;;  %v845_v17 = vld [vmem:[%s3937_s7 + $0x1390] sm:$0xff] }
 0x16a   : > { %v1334_v52 = vrot.slane %v1333_v40, 4  ;;  %v1462_v53 = vadd.f32 %v1461_v41, %v605_v33  ;;  %v1719_v54 = vadd.f32 %v1718_v42, %v735_v34  ;;  %v1985_v62 = vpack.c.bf16 %v1905_v50, %v1905_v50  ;;  %v835_v6 = vld [vmem:[%s3937_s7 + $0x1340] sm:$0xff] }
 0x16b   : > { %v1077_v59 = vadd.f32 %v1076_v47, %v1075_v36  ;;  %v1206_v55 = vrot.slane %v1205_v48, 2  ;;  %v1591_v60 = vadd.f32 %v1590_v49, %v675_v39  ;;  %v1849_v2 = vadd.f32 %v1848_v56, %v815_v46  ;;  %v775_v16 = vld [vmem:[%s3937_s7 + $0x1160] sm:$0xff]  ;;  %v268_v36 = vld [vmem:[%s3937_s7 + $0x188] sm:$0xff] }
 0x16c   : > { %v1335_v63 = vadd.f32 %v1334_v52, %v1333_v40  ;;  %v1463_v0 = vadd.f32 %v1462_v53, %v615_v44  ;;  %v1720_v1 = vadd.f32 %v1719_v54, %v745_v45  ;;  %v2312_v10 = vunpack.c.l.b16 %v1985_v62  ;;  %v855_v28 = vld [vmem:[%s3937_s7 + $0x13e0] sm:$0xff]  ;;  %v278_v45 = vld [vmem:[%s3937_s7 + $0x1d8] sm:$0xff]  ;;  %v288_v54 = vld [vmem:[%s3937_s7 + $0x228] sm:$0xff] }
 0x16d   : > { %v1078_v7 = vrot.slane %v1077_v59, 1  ;;  %v1207_v8 = vadd.f32 %v1206_v55, %v1205_v48  ;;  %v1592_v9 = vadd.f32 %v1591_v60, %v685_v51  ;;  %v1850_v14 = vadd.f32 %v1849_v2, %v825_v58  ;;  %v308_v56 = vld [vmem:[%s3937_s7 + $0x2c8] sm:$0xff]  ;;  %v298_v60 = vld [vmem:[%s3937_s7 + $0x278] sm:$0xff] }
 0x16e   : > { %v1336_v11 = vrot.slane %v1335_v63, 2  ;;  %v1464_v12 = vrot.slane %v1463_v0, 4  ;;  %v1721_v13 = vadd.f32 %v1720_v1, %v755_v57  ;;  %v976_v21 = vadd.f32 %v238_v4, %v228_v3  ;;  %v318_v57 = vld [vmem:[%s3937_s7 + $0x318] sm:$0xff]  ;;  %v328_v2 = vld [vmem:[%s3937_s7 + $0x368] sm:$0xff] }
 0x16f   : > { %v1079_v18 = vadd.f32 %v1078_v7, %v1077_v59  ;;  %v1208_v19 = vrot.slane %v1207_v8, 1  ;;  %v1593_v20 = vadd.f32 %v1592_v9, %v695_v61  ;;  %v1851_v26 = vadd.f32 %v1850_v14, %v835_v6  ;;  %v388_v3 = vld [vmem:[%s3937_s7 + $0x548] sm:$0xff]  ;;  %v398_v4 = vld [vmem:[%s3937_s7 + $0x598] sm:$0xff] }
 0x170   : > { %v1337_v22 = vadd.f32 %v1336_v11, %v1335_v63  ;;  %v1465_v24 = vadd.f32 %v1464_v12, %v1463_v0  ;;  %v1722_v25 = vadd.f32 %v1721_v13, %v765_v5  ;;  %v977_v31 = vadd.f32 %v976_v21, %v248_v15  ;;  %v338_v13 = vld [vmem:[%s3937_s7 + $0x3b8] sm:$0xff]  ;;  %v408_v14 = vld [vmem:[%s3937_s7 + $0x5e8] sm:$0xff] }
 0x171   : > { %v1209_v29 = vadd.f32 %v1208_v19, %v1207_v8  ;;  %v1594_v23 = vrot.slane %v1593_v20, 4  ;;  %v1915_v30 = vmul.f32 0.015625, %v1079_v18  ;;  %v1852_v35 = vadd.f32 %v1851_v26, %v845_v17  ;;  %v478_v17 = vld [vmem:[%s3937_s7 + $0x818] sm:$0xff]  ;;  %v348_v26 = vld [vmem:[%s3937_s7 + $0x408] sm:$0xff] }
 0x172   : > { %v1338_v32 = vrot.slane %v1337_v22, 1  ;;  %v1466_v33 = vrot.slane %v1465_v24, 2  ;;  %v1723_v34 = vadd.f32 %v1722_v25, %v775_v16  ;;  %v978_v40 = vadd.f32 %v977_v31, %v258_v27  ;;  %v468_v16 = vld [vmem:[%s3937_s7 + $0x7c8] sm:$0xff]  ;;  %v418_v27 = vld [vmem:[%s3937_s7 + $0x638] sm:$0xff] }
 0x173   : > { %v1595_v37 = vadd.f32 %v1594_v23, %v1593_v20  ;;  %v1925_v38 = vmul.f32 0.015625, %v1209_v29  ;;  %v1995_v39 = vpack.c.bf16 %v1915_v30, %v1915_v30  ;;  %v1853_v44 = vadd.f32 %v1852_v35, %v855_v28  ;;  %v488_v29 = vld [vmem:[%s3937_s7 + $0x868] sm:$0xff]  ;;  %v358_v35 = vld [vmem:[%s3937_s7 + $0x458] sm:$0xff] }
 0x174   : > { %v1339_v41 = vadd.f32 %v1338_v32, %v1337_v22  ;;  %v1467_v42 = vadd.f32 %v1466_v33, %v1465_v24  ;;  %v1724_v43 = vrot.slane %v1723_v34, 4  ;;  %v979_v49 = vadd.f32 %v978_v40, %v268_v36  ;;  %v428_v36 = vld [vmem:[%s3937_s7 + $0x688] sm:$0xff] }
 0x175   : > { %v1596_v46 = vrot.slane %v1595_v37, 2  ;;  %v2005_v47 = vpack.c.bf16 %v1925_v38, %v1925_v38  ;;  %v2322_v48 = vunpack.c.l.b16 %v1995_v39  ;;  %v1854_v52 = vrot.slane %v1853_v44, 4  ;;  %v498_v39 = vld [vmem:[%s3937_s7 + $0x8b8] sm:$0xff]  ;;  %v548_v40 = vld [vmem:[%s3937_s7 + $0xa48] sm:$0xff] }
 0x176   : > { %v1468_v50 = vrot.slane %v1467_v42, 1  ;;  %v1725_v51 = vadd.f32 %v1724_v43, %v1723_v34  ;;  %v1935_v53 = vmul.f32 0.015625, %v1339_v41  ;;  %v980_v62 = vadd.f32 %v979_v49, %v278_v45  ;;  %v558_v41 = vld [vmem:[%s3937_s7 + $0xa98] sm:$0xff] }
 0x177   : > { %v1597_v58 = vadd.f32 %v1596_v46, %v1595_v37  ;;  %v2332_v59 = vunpack.c.l.b16 %v2005_v47  ;;  %v2435_v55 = vsel %vm2386_vm0, %v2322_v48, %v2312_v10  ;;  %v1855_v0 = vadd.f32 %v1854_v52, %v1853_v44  ;;  %v368_v48 = vld [vmem:[%s3937_s7 + $0x4a8] sm:$0xff]  ;;  %v438_v49 = vld [vmem:[%s3937_s7 + $0x6d8] sm:$0xff] }
 0x178   : > { %v1469_v61 = vadd.f32 %v1468_v50, %v1467_v42  ;;  %v1726_v63 = vrot.slane %v1725_v51, 2  ;;  %v2015_v1 = vpack.c.bf16 %v1935_v53, %v1935_v53  ;;  %v981_v7 = vadd.f32 %v980_v62, %v288_v54  ;;  %v378_v53 = vld [vmem:[%s3937_s7 + $0x4f8] sm:$0xff]  ;;  %v508_v54 = vld [vmem:[%s3937_s7 + $0x908] sm:$0xff] }
 0x179   : > { %v1598_v5 = vrot.slane %v1597_v58, 1  ;;  %v2436_v6 = vsel %vm2388_vm1, %v2332_v59, %v2435_v55  ;;  %v1106_v8 = vadd.f32 %v318_v57, %v308_v56  ;;  %v1856_v10 = vrot.slane %v1855_v0, 2  ;;  %v568_v56 = vld [vmem:[%s3937_s7 + $0xae8] sm:$0xff] }
 0x17a   : > { %v1727_v9 = vadd.f32 %v1726_v63, %v1725_v51  ;;  %v1945_v11 = vmul.f32 0.015625, %v1469_v61  ;;  %v2342_v12 = vunpack.c.l.b16 %v2015_v1  ;;  %v982_v18 = vadd.f32 %v981_v7, %v298_v60  ;;  %v448_v62 = vld [vmem:[%s3937_s7 + $0x728] sm:$0xff]  ;;  %v638_v63 = vld [vmem:[%s3937_s7 + $0xd18] sm:$0xff] }
 0x17b   : > { %v1599_v15 = vadd.f32 %v1598_v5, %v1597_v58  ;;  %v1107_v19 = vadd.f32 %v1106_v8, %v328_v2  ;;  %v1236_v20 = vadd.f32 %v398_v4, %v388_v3  ;;  %v1857_v22 = vadd.f32 %v1856_v10, %v1855_v0  ;;  %v628_v61 = vld [vmem:[%s3937_s7 + $0xcc8] sm:$0xff]  ;;  %v518_v4 = vld [vmem:[%s3937_s7 + $0x958] sm:$0xff] }
 0x17c   : > { %v1728_v21 = vrot.slane %v1727_v9, 1  ;;  %v2025_v24 = vpack.c.bf16 %v1945_v11, %v1945_v11  ;;  %v2437_v25 = vsel %vm2390_vm2, %v2342_v12, %v2436_v6  ;;  %v983_v23 = vrot.slane %v982_v18, 4  ;;  %v578_v5 = vld [vmem:[%s3937_s7 + $0xb38] sm:$0xff]  ;;  %v528_v12 = vld [vmem:[%s3937_s7 + $0x9a8] sm:$0xff] }
 0x17d   : > { %v1955_v28 = vmul.f32 0.015625, %v1599_v15  ;;  %v1108_v30 = vadd.f32 %v1107_v19, %v338_v13  ;;  %v1237_v31 = vadd.f32 %v1236_v20, %v408_v14  ;;  %v1858_v33 = vrot.slane %v1857_v22, 1  ;;  %v458_v11 = vld [vmem:[%s3937_s7 + $0x778] sm:$0xff]  ;;  %v648_v13 = vld [vmem:[%s3937_s7 + $0xd68] sm:$0xff] }
 0x17e   : > { %v1729_v32 = vadd.f32 %v1728_v21, %v1727_v9  ;;  %v2352_v34 = vunpack.c.l.b16 %v2025_v24  ;;  %v1366_v37 = vadd.f32 %v478_v17, %v468_v16  ;;  %v984_v42 = vadd.f32 %v983_v23, %v982_v18  ;;  %v588_v17 = vld [vmem:[%s3937_s7 + $0xb88] sm:$0xff]  ;;  %v718_v19 = vld [vmem:[%s3937_s7 + $0xf98] sm:$0xff] }
 0x17f   : > { %v2035_v38 = vpack.c.bf16 %v1955_v28, %v1955_v28  ;;  %v1109_v43 = vadd.f32 %v1108_v30, %v348_v26  ;;  %v1238_v44 = vadd.f32 %v1237_v31, %v418_v27  ;;  %v1859_v45 = vadd.f32 %v1858_v33, %v1857_v22  ;;  %v708_v18 = vld [vmem:[%s3937_s7 + $0xf48] sm:$0xff]  ;;  %v538_v27 = vld [vmem:[%s3937_s7 + $0x9f8] sm:$0xff] }
 0x180   : > { %v1965_v46 = vmul.f32 0.015625, %v1729_v32  ;;  %v2438_v47 = vsel %vm2392_vm3, %v2352_v34, %v2437_v25  ;;  %v1367_v50 = vadd.f32 %v1366_v37, %v488_v29  ;;  %v4542_v51 = vpop.f32.mrf.mxu0  ;;  %v985_v57 = vrot.slane %v984_v42, 2  ;;  %v598_v28 = vld [vmem:[%s3937_s7 + $0xbd8] sm:$0xff]  ;;  %v728_v32 = vld [vmem:[%s3937_s7 + $0xfe8] sm:$0xff] }
 0x181   : > { %v2362_v52 = vunpack.c.l.b16 %v2035_v38  ;;  %v1110_v58 = vadd.f32 %v1109_v43, %v358_v35  ;;  %v1239_v59 = vadd.f32 %v1238_v44, %v428_v36  ;;  %v1975_v55 = vmul.f32 0.015625, %v1859_v45  ;;  %v658_v29 = vld [vmem:[%s3937_s7 + $0xdb8] sm:$0xff]  ;;  %v788_v33 = vld [vmem:[%s3937_s7 + $0x11c8] sm:$0xff] }
 0x182   : > { %v2045_v60 = vpack.c.bf16 %v1965_v46, %v1965_v46  ;;  %v1368_v0 = vadd.f32 %v1367_v50, %v498_v39  ;;  %v1496_v1 = vadd.f32 %v558_v41, %v548_v40  ;;  %v4550_v2 = vpop.f32.mrf.mxu0  ;;  %v986_v6 = vadd.f32 %v985_v57, %v984_v42  ;;  %v798_v34 = vld [vmem:[%s3937_s7 + $0x1218] sm:$0xff]  ;;  %v668_v40 = vld [vmem:[%s3937_s7 + $0xe08] sm:$0xff] }
 0x183   : > { %v2439_v3 = vsel %vm2394_vm4, %v2362_v52, %v2438_v47  ;;  %v1111_v7 = vadd.f32 %v1110_v58, %v368_v48  ;;  %v1240_v8 = vadd.f32 %v1239_v59, %v438_v49  ;;  %v2055_v9 = vpack.c.bf16 %v1975_v55, %v1975_v55  ;;  %v608_v45 = vld [vmem:[%s3937_s7 + $0xc28] sm:$0xff]  ;;  %v738_v46 = vld [vmem:[%s3937_s7 + $0x1038] sm:$0xff] }
 0x184   : > { %v2372_v10 = vunpack.c.l.b16 %v2045_v60  ;;  %v1369_v14 = vadd.f32 %v1368_v0, %v508_v54  ;;  %v1497_v15 = vadd.f32 %v1496_v1, %v568_v56  ;;  %v3383_v16 = vpop.f32.mrf.mxu0  ;;  %v987_v20 = vrot.slane %v986_v6, 1  ;;  %v808_v47 = vld [vmem:[%s3937_s7 + $0x1268] sm:$0xff]  ;;  %v678_v52 = vld [vmem:[%s3937_s7 + $0xe58] sm:$0xff] }
 0x185   : > { %v1112_v21 = vadd.f32 %v1111_v7, %v378_v53  ;;  %v1241_v22 = vadd.f32 %v1240_v8, %v448_v62  ;;  %v1626_v24 = vadd.f32 %v638_v63, %v628_v61  ;;  %v2382_v25 = vunpack.c.l.b16 %v2055_v9  ;;  %v618_v58 = vld [vmem:[%s3937_s7 + $0xc78] sm:$0xff]  ;;  %v748_v59 = vld [vmem:[%s3937_s7 + $0x1088] sm:$0xff] }
 0x186   : > { %v2440_v26 = vsel %vm2396_vm5, %v2372_v10, %v2439_v3  ;;  %v1370_v23 = vadd.f32 %v1369_v14, %v518_v4  ;;  %v1498_v30 = vadd.f32 %v1497_v15, %v578_v5  ;;  %v3384_v31 = vpop.f32.mrf.mxu0  ;;  %v988_v35 = vadd.f32 %v987_v20, %v986_v6  ;;  %v818_v55 = vld [vmem:[%s3937_s7 + $0x12b8] sm:$0xff]  ;;  %v688_v0 = vld [vmem:[%s3937_s7 + $0xea8] sm:$0xff] }
 0x187   : > { %v1113_v36 = vrot.slane %v1112_v21, 4  ;;  %v1242_v37 = vadd.f32 %v1241_v22, %v458_v11  ;;  %v1627_v38 = vadd.f32 %v1626_v24, %v648_v13  ;;  %v2441_v39 = vsel %vm2398_vm6, %v2382_v25, %v2440_v26  ;;  %v758_v6 = vld [vmem:[%s3937_s7 + $0x10d8] sm:$0xff]  ;;  %v828_v7 = vld [vmem:[%s3937_s7 + $0x1308] sm:$0xff] }
 0x188   : > { %v1371_v41 = vadd.f32 %v1370_v23, %v528_v12  ;;  %v1499_v42 = vadd.f32 %v1498_v30, %v588_v17  ;;  %v1756_v43 = vadd.f32 %v718_v19, %v708_v18  ;;  %v2469_v44 = vpack.c.b16 %v2441_v39, %v2441_v39  ;;  %v698_v12 = vld [vmem:[%s3937_s7 + $0xef8] sm:$0xff]  ;;  %v227_v17 = vld [vmem:[%s3937_s7 + $0x40] sm:$0xff]  ;;  %v237_v18 = vld [vmem:[%s3937_s7 + $0x90] sm:$0xff] }
 0x189   : > { %v1114_v48 = vadd.f32 %v1113_v36, %v1112_v21  ;;  %v1243_v49 = vrot.slane %v1242_v37, 4  ;;  %v1628_v50 = vadd.f32 %v1627_v38, %v658_v29  ;;  %v1886_v57 = vadd.f32 %v798_v34, %v788_v33  ;;  %v768_v19 = vld [vmem:[%s3937_s7 + $0x1128] sm:$0xff]  ;;  %v838_v20 = vld [vmem:[%s3937_s7 + $0x1358] sm:$0xff]  ;;  %v247_v23 = vld [vmem:[%s3937_s7 + $0xe0] sm:$0xff] }
 0x18a   : > { %v1372_v53 = vadd.f32 %v1371_v41, %v538_v27  ;;  %v1500_v54 = vadd.f32 %v1499_v42, %v598_v28  ;;  %v1757_v56 = vadd.f32 %v1756_v43, %v728_v32  ;;  %3116 = vmatmul.mubr.bf16.vlgmr.msra.gmra.mxu1 %v2469_v44  ;;  %v1908_v63 = vmul.f32 0.015625, %v988_v35  ;;  %v778_v30 = vld [vmem:[%s3937_s7 + $0x1178] sm:$0xff]  ;;  %v848_v31 = vld [vmem:[%s3937_s7 + $0x13a8] sm:$0xff] }
 0x18b   : > { %v1115_v60 = vrot.slane %v1114_v48, 2  ;;  %v1244_v62 = vadd.f32 %v1243_v49, %v1242_v37  ;;  %v1629_v61 = vadd.f32 %v1628_v50, %v668_v40  ;;  %v1887_v5 = vadd.f32 %v1886_v57, %v808_v47  ;;  %v257_v40 = vld [vmem:[%s3937_s7 + $0x130] sm:$0xff]  ;;  %v858_v41 = vld [vmem:[%s3937_s7 + $0x13f8] sm:$0xff]  ;;  %v267_v50 = vld [vmem:[%s3937_s7 + $0x180] sm:$0xff] }
 0x18c   : > { %v1373_v1 = vrot.slane %v1372_v53, 4  ;;  %v1501_v3 = vadd.f32 %v1500_v54, %v608_v45  ;;  %v1758_v4 = vadd.f32 %v1757_v56, %v738_v46  ;;  %v1988_v11 = vpack.c.bf16 %v1908_v63, %v1908_v63 }
 0x18d   : > { %v1116_v8 = vadd.f32 %v1115_v60, %v1114_v48  ;;  %v1245_v9 = vrot.slane %v1244_v62, 2  ;;  %v1630_v10 = vadd.f32 %v1629_v61, %v678_v52  ;;  %v1888_v16 = vadd.f32 %v1887_v5, %v818_v55  ;;  %v277_v60 = vld [vmem:[%s3937_s7 + $0x1d0] sm:$0xff] }
 0x18e   : > { %v1374_v13 = vadd.f32 %v1373_v1, %v1372_v53  ;;  %v1502_v14 = vadd.f32 %v1501_v3, %v618_v58  ;;  %v1759_v15 = vadd.f32 %v1758_v4, %v748_v59  ;;  %v2315_v25 = vunpack.c.l.b16 %v1988_v11 }
 0x18f   : > { %v1117_v21 = vrot.slane %v1116_v8, 1  ;;  %v1246_v22 = vadd.f32 %v1245_v9, %v1244_v62  ;;  %v1631_v24 = vadd.f32 %v1630_v10, %v688_v0  ;;  %v1889_v29 = vadd.f32 %v1888_v16, %v828_v7  ;;  %v307_v7 = vld [vmem:[%s3937_s7 + $0x2c0] sm:$0xff] }
 0x190   : > { %v1375_v26 = vrot.slane %v1374_v13, 2  ;;  %v1503_v27 = vrot.slane %v1502_v14, 4  ;;  %v1760_v28 = vadd.f32 %v1759_v15, %v758_v6  ;;  %v963_v35 = vadd.f32 %v237_v18, %v227_v17  ;;  %v287_v6 = vld [vmem:[%s3937_s7 + $0x220] sm:$0xff] }
 0x191   : > { %v1118_v32 = vadd.f32 %v1117_v21, %v1116_v8  ;;  %v1247_v33 = vrot.slane %v1246_v22, 1  ;;  %v1632_v34 = vadd.f32 %v1631_v24, %v698_v12  ;;  %v1890_v39 = vadd.f32 %v1889_v29, %v838_v20  ;;  %v317_v8 = vld [vmem:[%s3937_s7 + $0x310] sm:$0xff]  ;;  %v327_v18 = vld [vmem:[%s3937_s7 + $0x360] sm:$0xff] }
 0x192   : > { %v1376_v36 = vadd.f32 %v1375_v26, %v1374_v13  ;;  %v1504_v37 = vadd.f32 %v1503_v27, %v1502_v14  ;;  %v1761_v38 = vadd.f32 %v1760_v28, %v768_v19  ;;  %v964_v45 = vadd.f32 %v963_v35, %v247_v23  ;;  %v297_v12 = vld [vmem:[%s3937_s7 + $0x270] sm:$0xff]  ;;  %v387_v19 = vld [vmem:[%s3937_s7 + $0x540] sm:$0xff] }
 0x193   : > { %v1248_v42 = vadd.f32 %v1247_v33, %v1246_v22  ;;  %v1633_v43 = vrot.slane %v1632_v34, 4  ;;  %v1918_v44 = vmul.f32 0.015625, %v1118_v32  ;;  %v1891_v49 = vadd.f32 %v1890_v39, %v848_v31  ;;  %v397_v20 = vld [vmem:[%s3937_s7 + $0x590] sm:$0xff]  ;;  %v467_v32 = vld [vmem:[%s3937_s7 + $0x7c0] sm:$0xff] }
 0x194   : > { %v1377_v46 = vrot.slane %v1376_v36, 1  ;;  %v1505_v47 = vrot.slane %v1504_v37, 2  ;;  %v1762_v48 = vadd.f32 %v1761_v38, %v778_v30  ;;  %v965_v56 = vadd.f32 %v964_v45, %v257_v40  ;;  %v337_v23 = vld [vmem:[%s3937_s7 + $0x3b0] sm:$0xff]  ;;  %v407_v30 = vld [vmem:[%s3937_s7 + $0x5e0] sm:$0xff] }
 0x195   : > { %v1634_v52 = vadd.f32 %v1633_v43, %v1632_v34  ;;  %v1928_v53 = vmul.f32 0.015625, %v1248_v42  ;;  %v1998_v54 = vpack.c.bf16 %v1918_v44, %v1918_v44  ;;  %v1892_v55 = vadd.f32 %v1891_v49, %v858_v41  ;;  %v477_v33 = vld [vmem:[%s3937_s7 + $0x810] sm:$0xff]  ;;  %v347_v41 = vld [vmem:[%s3937_s7 + $0x400] sm:$0xff] }
 0x196   : > { %v1378_v57 = vadd.f32 %v1377_v46, %v1376_v36  ;;  %v1506_v58 = vadd.f32 %v1505_v47, %v1504_v37  ;;  %v1763_v59 = vrot.slane %v1762_v48, 4  ;;  %v966_v0 = vadd.f32 %v965_v56, %v267_v50  ;;  %v417_v42 = vld [vmem:[%s3937_s7 + $0x630] sm:$0xff]  ;;  %v487_v44 = vld [vmem:[%s3937_s7 + $0x860] sm:$0xff] }
 0x197   : > { %v1635_v62 = vrot.slane %v1634_v52, 2  ;;  %v2008_v61 = vpack.c.bf16 %v1928_v53, %v1928_v53  ;;  %v2325_v63 = vunpack.c.l.b16 %v1998_v54  ;;  %v1893_v4 = vrot.slane %v1892_v55, 4  ;;  %v427_v53 = vld [vmem:[%s3937_s7 + $0x680] sm:$0xff] }
 0x198   : > { %v1507_v1 = vrot.slane %v1506_v58, 1  ;;  %v1764_v3 = vadd.f32 %v1763_v59, %v1762_v48  ;;  %v1938_v5 = vmul.f32 0.015625, %v1378_v57  ;;  %v967_v13 = vadd.f32 %v966_v0, %v277_v60  ;;  %v497_v57 = vld [vmem:[%s3937_s7 + $0x8b0] sm:$0xff] }
 0x199   : > { %v1636_v9 = vadd.f32 %v1635_v62, %v1634_v52  ;;  %v2335_v10 = vunpack.c.l.b16 %v2008_v61  ;;  %v2456_v11 = vsel %vm2386_vm0, %v2325_v63, %v2315_v25  ;;  %v1894_v16 = vadd.f32 %v1893_v4, %v1892_v55  ;;  %v357_v52 = vld [vmem:[%s3937_s7 + $0x450] sm:$0xff] }
 0x19a   : > { %v1508_v14 = vadd.f32 %v1507_v1, %v1506_v58  ;;  %v1765_v15 = vrot.slane %v1764_v3, 2  ;;  %v2018_v17 = vpack.c.bf16 %v1938_v5, %v1938_v5  ;;  %v968_v24 = vadd.f32 %v967_v13, %v287_v6  ;;  %v547_v58 = vld [vmem:[%s3937_s7 + $0xa40] sm:$0xff]  ;;  %v557_v59 = vld [vmem:[%s3937_s7 + $0xa90] sm:$0xff] }
 0x19b   : > { %v1637_v21 = vrot.slane %v1636_v9, 1  ;;  %v2457_v22 = vsel %vm2388_vm1, %v2335_v10, %v2456_v11  ;;  %v1093_v26 = vadd.f32 %v317_v8, %v307_v7  ;;  %v1895_v25 = vrot.slane %v1894_v16, 2  ;;  %v367_v1 = vld [vmem:[%s3937_s7 + $0x4a0] sm:$0xff]  ;;  %v377_v6 = vld [vmem:[%s3937_s7 + $0x4f0] sm:$0xff] }
 0x19c   : > { %v1766_v27 = vadd.f32 %v1765_v15, %v1764_v3  ;;  %v1948_v28 = vmul.f32 0.015625, %v1508_v14  ;;  %v2345_v29 = vunpack.c.l.b16 %v2018_v17  ;;  %v969_v34 = vadd.f32 %v968_v24, %v297_v12  ;;  %v437_v3 = vld [vmem:[%s3937_s7 + $0x6d0] sm:$0xff]  ;;  %v507_v7 = vld [vmem:[%s3937_s7 + $0x900] sm:$0xff] }
 0x19d   : > { %v1638_v31 = vadd.f32 %v1637_v21, %v1636_v9  ;;  %v1094_v35 = vadd.f32 %v1093_v26, %v327_v18  ;;  %v1223_v36 = vadd.f32 %v397_v20, %v387_v19  ;;  %v1896_v38 = vadd.f32 %v1895_v25, %v1894_v16  ;;  %v567_v8 = vld [vmem:[%s3937_s7 + $0xae0] sm:$0xff]  ;;  %v637_v16 = vld [vmem:[%s3937_s7 + $0xd10] sm:$0xff] }
 0x19e   : > { %v1767_v37 = vrot.slane %v1766_v27, 1  ;;  %v2028_v39 = vpack.c.bf16 %v1948_v28, %v1948_v28  ;;  %v2458_v40 = vsel %vm2390_vm2, %v2345_v29, %v2457_v22  ;;  %v970_v45 = vrot.slane %v969_v34, 4  ;;  %v447_v14 = vld [vmem:[%s3937_s7 + $0x720] sm:$0xff]  ;;  %v517_v20 = vld [vmem:[%s3937_s7 + $0x950] sm:$0xff] }
 0x19f   : > { %v1958_v43 = vmul.f32 0.015625, %v1638_v31  ;;  %v1095_v46 = vadd.f32 %v1094_v35, %v337_v23  ;;  %v1224_v47 = vadd.f32 %v1223_v36, %v407_v30  ;;  %v1897_v49 = vrot.slane %v1896_v38, 1  ;;  %v627_v15 = vld [vmem:[%s3937_s7 + $0xcc0] sm:$0xff]  ;;  %v577_v21 = vld [vmem:[%s3937_s7 + $0xb30] sm:$0xff] }
 0x1a0   : > { %v1768_v48 = vadd.f32 %v1767_v37, %v1766_v27  ;;  %v2355_v50 = vunpack.c.l.b16 %v2028_v39  ;;  %v1353_v54 = vadd.f32 %v477_v33, %v467_v32  ;;  %v971_v55 = vadd.f32 %v970_v45, %v969_v34  ;;  %v457_v28 = vld [vmem:[%s3937_s7 + $0x770] sm:$0xff]  ;;  %v527_v29 = vld [vmem:[%s3937_s7 + $0x9a0] sm:$0xff] }
 0x1a1   : > { %v2038_v56 = vpack.c.bf16 %v1958_v43, %v1958_v43  ;;  %v1096_v60 = vadd.f32 %v1095_v46, %v347_v41  ;;  %v1225_v62 = vadd.f32 %v1224_v47, %v417_v42  ;;  %v1898_v61 = vadd.f32 %v1897_v49, %v1896_v38  ;;  %v647_v23 = vld [vmem:[%s3937_s7 + $0xd60] sm:$0xff]  ;;  %v717_v34 = vld [vmem:[%s3937_s7 + $0xf90] sm:$0xff] }
 0x1a2   : > { %v1968_v63 = vmul.f32 0.015625, %v1768_v48  ;;  %v2459_v0 = vsel %vm2392_vm3, %v2355_v50, %v2458_v40  ;;  %v1354_v4 = vadd.f32 %v1353_v54, %v487_v44  ;;  %v972_v9 = vrot.slane %v971_v55, 2  ;;  %v587_v32 = vld [vmem:[%s3937_s7 + $0xb80] sm:$0xff]  ;;  %v537_v41 = vld [vmem:[%s3937_s7 + $0x9f0] sm:$0xff] }
 0x1a3   : > { %v2365_v5 = vunpack.c.l.b16 %v2038_v56  ;;  %v1097_v10 = vadd.f32 %v1096_v60, %v357_v52  ;;  %v1226_v11 = vadd.f32 %v1225_v62, %v427_v53  ;;  %v1978_v12 = vmul.f32 0.015625, %v1898_v61  ;;  %v707_v33 = vld [vmem:[%s3937_s7 + $0xf40] sm:$0xff]  ;;  %v597_v42 = vld [vmem:[%s3937_s7 + $0xbd0] sm:$0xff] }
 0x1a4   : > { %v2048_v13 = vpack.c.bf16 %v1968_v63, %v1968_v63  ;;  %v1355_v17 = vadd.f32 %v1354_v4, %v497_v57  ;;  %v1483_v18 = vadd.f32 %v557_v59, %v547_v58  ;;  %v973_v22 = vadd.f32 %v972_v9, %v971_v55  ;;  %v657_v43 = vld [vmem:[%s3937_s7 + $0xdb0] sm:$0xff]  ;;  %v727_v46 = vld [vmem:[%s3937_s7 + $0xfe0] sm:$0xff] }
 0x1a5   : > { %v2460_v19 = vsel %vm2394_vm4, %v2365_v5, %v2459_v0  ;;  %v1098_v24 = vadd.f32 %v1097_v10, %v367_v1  ;;  %v1227_v26 = vadd.f32 %v1226_v11, %v437_v3  ;;  %v2058_v27 = vpack.c.bf16 %v1978_v12, %v1978_v12  ;;  %v787_v47 = vld [vmem:[%s3937_s7 + $0x11c0] sm:$0xff]  ;;  %v797_v48 = vld [vmem:[%s3937_s7 + $0x1210] sm:$0xff] }
 0x1a6   : > { %v2375_v25 = vunpack.c.l.b16 %v2048_v13  ;;  %v1356_v30 = vadd.f32 %v1355_v17, %v507_v7  ;;  %v1484_v31 = vadd.f32 %v1483_v18, %v567_v8  ;;  %v974_v35 = vrot.slane %v973_v22, 1  ;;  %v667_v56 = vld [vmem:[%s3937_s7 + $0xe00] sm:$0xff]  ;;  %v737_v62 = vld [vmem:[%s3937_s7 + $0x1030] sm:$0xff] }
 0x1a7   : > { %v1099_v36 = vadd.f32 %v1098_v24, %v377_v6  ;;  %v1228_v37 = vadd.f32 %v1227_v26, %v447_v14  ;;  %v1613_v38 = vadd.f32 %v637_v16, %v627_v15  ;;  %v2385_v39 = vunpack.c.l.b16 %v2058_v27  ;;  %v607_v60 = vld [vmem:[%s3937_s7 + $0xc20] sm:$0xff]  ;;  %v677_v3 = vld [vmem:[%s3937_s7 + $0xe50] sm:$0xff] }
 0x1a8   : > { %v2461_v40 = vsel %vm2396_vm5, %v2375_v25, %v2460_v19  ;;  %v1357_v44 = vadd.f32 %v1356_v30, %v517_v20  ;;  %v1485_v45 = vadd.f32 %v1484_v31, %v577_v21  ;;  %v975_v49 = vadd.f32 %v974_v35, %v973_v22  ;;  %v807_v61 = vld [vmem:[%s3937_s7 + $0x1260] sm:$0xff]  ;;  %v617_v8 = vld [vmem:[%s3937_s7 + $0xc70] sm:$0xff] }
 0x1a9   : > { %v1100_v50 = vrot.slane %v1099_v36, 4  ;;  %v1229_v52 = vadd.f32 %v1228_v37, %v457_v28  ;;  %v1614_v53 = vadd.f32 %v1613_v38, %v647_v23  ;;  %v2462_v54 = vsel %vm2398_vm6, %v2385_v39, %v2461_v40  ;;  %v747_v9 = vld [vmem:[%s3937_s7 + $0x1080] sm:$0xff]  ;;  %v817_v10 = vld [vmem:[%s3937_s7 + $0x12b0] sm:$0xff] }
 0x1aa   : > { %v1358_v57 = vadd.f32 %v1357_v44, %v527_v29  ;;  %v1486_v58 = vadd.f32 %v1485_v45, %v587_v32  ;;  %v1743_v59 = vadd.f32 %v717_v34, %v707_v33  ;;  %v2472_v55 = vpack.c.b16 %v2462_v54, %v2462_v54  ;;  %v687_v15 = vld [vmem:[%s3937_s7 + $0xea0] sm:$0xff]  ;;  %v757_v20 = vld [vmem:[%s3937_s7 + $0x10d0] sm:$0xff] }
 0x1ab   : > { %v1101_v63 = vadd.f32 %v1100_v50, %v1099_v36  ;;  %v1230_v0 = vrot.slane %v1229_v52, 4  ;;  %v1615_v1 = vadd.f32 %v1614_v53, %v657_v43  ;;  %v1873_v7 = vadd.f32 %v797_v48, %v787_v47  ;;  %v827_v21 = vld [vmem:[%s3937_s7 + $0x1300] sm:$0xff]  ;;  %v697_v27 = vld [vmem:[%s3937_s7 + $0xef0] sm:$0xff] }
 0x1ac   : > { %v1359_v4 = vadd.f32 %v1358_v57, %v537_v41  ;;  %v1487_v5 = vadd.f32 %v1486_v58, %v597_v42  ;;  %v1744_v6 = vadd.f32 %v1743_v59, %v727_v46  ;;  %3155 = vmatprep.mubr.bf16.mxu0 %v2472_v55  ;;  %v1907_v14 = vmul.f32 0.015625, %v975_v49  ;;  %v767_v30 = vld [vmem:[%s3937_s7 + $0x1120] sm:$0xff]  ;;  %v837_v31 = vld [vmem:[%s3937_s7 + $0x1350] sm:$0xff] }
 0x1ad   : > { %v1102_v11 = vrot.slane %v1101_v63, 2  ;;  %v1231_v12 = vadd.f32 %v1230_v0, %v1229_v52  ;;  %v1616_v13 = vadd.f32 %v1615_v1, %v667_v56  ;;  %v1874_v19 = vadd.f32 %v1873_v7, %v807_v61  ;;  %v777_v40 = vld [vmem:[%s3937_s7 + $0x1170] sm:$0xff]  ;;  %v847_v41 = vld [vmem:[%s3937_s7 + $0x13a0] sm:$0xff] }
 0x1ae   : > { %v1360_v16 = vrot.slane %v1359_v4, 4  ;;  %v1488_v17 = vadd.f32 %v1487_v5, %v607_v60  ;;  %v1745_v18 = vadd.f32 %v1744_v6, %v737_v62  ;;  %v1987_v35 = vpack.c.bf16 %v1907_v14, %v1907_v14  ;;  %v857_v50 = vld [vmem:[%s3937_s7 + $0x13f0] sm:$0xff] }
 0x1af   : > { %v1103_v22 = vadd.f32 %v1102_v11, %v1101_v63  ;;  %v1232_v24 = vrot.slane %v1231_v12, 2  ;;  %v1617_v26 = vadd.f32 %v1616_v13, %v677_v3  ;;  %v1875_v23 = vadd.f32 %v1874_v19, %v817_v10 }
 0x1b0   : > { %v1361_v25 = vadd.f32 %v1360_v16, %v1359_v4  ;;  %v1489_v28 = vadd.f32 %v1488_v17, %v617_v8  ;;  %v1746_v29 = vadd.f32 %v1745_v18, %v747_v9  ;;  %v3382_v45 = vadd.f32 %v4550_v2, %v4542_v51 }
 0x1b1   : > { %v1104_v32 = vrot.slane %v1103_v22, 1  ;;  %v1233_v33 = vadd.f32 %v1232_v24, %v1231_v12  ;;  %v1618_v34 = vadd.f32 %v1617_v26, %v687_v15  ;;  %v1876_v39 = vadd.f32 %v1875_v23, %v827_v21 }
 0x1b2   : > { %v1362_v36 = vrot.slane %v1361_v25, 2  ;;  %v1490_v37 = vrot.slane %v1489_v28, 4  ;;  %v1747_v38 = vadd.f32 %v1746_v29, %v757_v20  ;;  %v2314_v61 = vunpack.c.l.b16 %v1987_v35  ;;  %v3279_v29 = vld [vmem:[#allocation7] ss:$0 sm:$0xff] }
 0x1b3   : > { %v1105_v42 = vadd.f32 %v1104_v32, %v1103_v22  ;;  %v1234_v43 = vrot.slane %v1233_v33, 1  ;;  %v1619_v44 = vadd.f32 %v1618_v34, %v697_v27  ;;  %v1877_v49 = vadd.f32 %v1876_v39, %v837_v31 }
 0x1b4   : > { %v1363_v46 = vadd.f32 %v1362_v36, %v1361_v25  ;;  %v1491_v47 = vadd.f32 %v1490_v37, %v1489_v28  ;;  %v1748_v48 = vadd.f32 %v1747_v38, %v767_v30  ;;  %v2998_v37 = vadd.f32 %v3382_v45, %v3279_v29 }
 0x1b5   : > { %v1235_v52 = vadd.f32 %v1234_v43, %v1233_v33  ;;  %v1620_v53 = vrot.slane %v1619_v44, 4  ;;  %v1917_v54 = vmul.f32 0.015625, %v1105_v42  ;;  %v1878_v59 = vadd.f32 %v1877_v49, %v847_v41 }
 0x1b6   : > { %v1364_v56 = vrot.slane %v1363_v46, 1  ;;  %v1492_v57 = vrot.slane %v1491_v47, 2  ;;  %v1749_v58 = vadd.f32 %v1748_v48, %v777_v40 }
 0x1b7   : > { %v1621_v55 = vadd.f32 %v1620_v53, %v1619_v44  ;;  %v1927_v60 = vmul.f32 0.015625, %v1235_v52  ;;  %v1997_v62 = vpack.c.bf16 %v1917_v54, %v1917_v54  ;;  %v1879_v51 = vadd.f32 %v1878_v59, %v857_v50 }
 0x1b8   : > { %v1365_v63 = vadd.f32 %v1364_v56, %v1363_v46  ;;  %v1493_v0 = vadd.f32 %v1492_v57, %v1491_v47  ;;  %v1750_v1 = vrot.slane %v1749_v58, 4 }
 0x1b9   : > { %v1622_v2 = vrot.slane %v1621_v55, 2  ;;  %v2007_v3 = vpack.c.bf16 %v1927_v60, %v1927_v60  ;;  %v2324_v4 = vunpack.c.l.b16 %v1997_v62  ;;  %v1880_v7 = vrot.slane %v1879_v51, 4 }
 0x1ba   : > { %v1494_v5 = vrot.slane %v1493_v0, 1  ;;  %v1751_v6 = vadd.f32 %v1750_v1, %v1749_v58  ;;  %v1937_v8 = vmul.f32 0.015625, %v1365_v63 }
 0x1bb   : > { %v1623_v9 = vadd.f32 %v1622_v2, %v1621_v55  ;;  %v2334_v10 = vunpack.c.l.b16 %v2007_v3  ;;  %v2449_v11 = vsel %vm2386_vm0, %v2324_v4, %v2314_v61  ;;  %v1881_v14 = vadd.f32 %v1880_v7, %v1879_v51 }
 0x1bc   : > { %v1495_v12 = vadd.f32 %v1494_v5, %v1493_v0  ;;  %v1752_v13 = vrot.slane %v1751_v6, 2  ;;  %v2017_v15 = vpack.c.bf16 %v1937_v8, %v1937_v8 }
 0x1bd   : > { %v1624_v16 = vrot.slane %v1623_v9, 1  ;;  %v2450_v17 = vsel %vm2388_vm1, %v2334_v10, %v2449_v11  ;;  %v1882_v19 = vrot.slane %v1881_v14, 2 }
 0x1be   : > { %v1753_v18 = vadd.f32 %v1752_v13, %v1751_v6  ;;  %v1947_v20 = vmul.f32 0.015625, %v1495_v12  ;;  %v2344_v21 = vunpack.c.l.b16 %v2017_v15 }
 0x1bf   : > { %v1625_v22 = vadd.f32 %v1624_v16, %v1623_v9  ;;  %v1883_v26 = vadd.f32 %v1882_v19, %v1881_v14 }
 0x1c0   : > { %v1754_v24 = vrot.slane %v1753_v18, 1  ;;  %v2027_v27 = vpack.c.bf16 %v1947_v20, %v1947_v20  ;;  %v2451_v28 = vsel %vm2390_vm2, %v2344_v21, %v2450_v17 }
 0x1c1   : > { %v1957_v25 = vmul.f32 0.015625, %v1625_v22  ;;  %v1884_v30 = vrot.slane %v1883_v26, 1 }
 0x1c2   : > { %v1755_v23 = vadd.f32 %v1754_v24, %v1753_v18  ;;  %v2354_v31 = vunpack.c.l.b16 %v2027_v27 }
 0x1c3   : > { %v2037_v32 = vpack.c.bf16 %v1957_v25, %v1957_v25  ;;  %v3402_v33 = vpop.f32.mrf.mxu1  ;;  %v1885_v34 = vadd.f32 %v1884_v30, %v1883_v26 }
 0x1c4   : > { %v1967_v35 = vmul.f32 0.015625, %v1755_v23  ;;  %v2452_v36 = vsel %vm2392_vm3, %v2354_v31, %v2451_v28 }
 0x1c5   : > { %v2364_v38 = vunpack.c.l.b16 %v2037_v32  ;;  %v3403_v39 = vpop.f32.mrf.mxu1  ;;  %v1977_v40 = vmul.f32 0.015625, %v1885_v34 }
 0x1c6   : > { %v2047_v41 = vpack.c.bf16 %v1967_v35, %v1967_v35  ;;  %v3404_v42 = vadd.f32 %v3403_v39, %v3402_v33 }
 0x1c7   : > { %v2453_v43 = vsel %vm2394_vm4, %v2364_v38, %v2452_v36  ;;  %v3405_v44 = vpop.f32.mrf.mxu1  ;;  %v2057_v46 = vpack.c.bf16 %v1977_v40, %v1977_v40 }
 0x1c8   : > { %v2374_v47 = vunpack.c.l.b16 %v2047_v41  ;;  %v3038_v48 = vadd.f32 %v3404_v42, %v2998_v37 }
 0x1c9   : > { %v3406_v49 = vpop.f32.mrf.mxu1  ;;  %v2384_v50 = vunpack.c.l.b16 %v2057_v46 }
 0x1ca   : > { %v2454_v52 = vsel %vm2396_vm5, %v2374_v47, %v2453_v43 }
 0x1cb   : > { %v2455_v53 = vsel %vm2398_vm6, %v2384_v50, %v2454_v52 }
 0x1cc   : > { %v2471_v54 = vpack.c.b16 %v2455_v53, %v2455_v53 }
 0x1ce   : > { %3156 = vmatmul.mubr.bf16.vlgmr.msra.gmra.mxu0 %v2471_v54 }
 0x206   : > { %v3424_v45 = vpop.f32.mrf.mxu0 }
 0x208   : > { %v3425_v56 = vpop.f32.mrf.mxu0 }
 0x209   : > { %v3426_v57 = vadd.f32 %v3425_v56, %v3424_v45 }
 0x20a   : > { %v3427_v58 = vpop.f32.mrf.mxu0 }
 0x20b   : > { %v3078_v59 = vadd.f32 %v3426_v57, %v3038_v48 }
 0x20c   : > { %v3428_v55 = vpop.f32.mrf.mxu0 }
 0x24a   : > { %v3446_v60 = vpop.f32.mrf.mxu1 }
 0x24c   : > { %v3447_v62 = vpop.f32.mrf.mxu1 }
 0x24d   : > { %v3448_v61 = vadd.f32 %v3447_v62, %v3446_v60 }
 0x24e   : > { %v3449_v63 = vpop.f32.mrf.mxu1 }
 0x24f   : > { %v3118_v0 = vadd.f32 %v3448_v61, %v3078_v59 }
 0x250   : > { %v3450_v1 = vpop.f32.mrf.mxu1 }
 0x28e   : > { %v3468_v51 = vpop.f32.mrf.mxu0 }
 0x290   : > { %v3469_v2 = vpop.f32.mrf.mxu0 }
 0x291   : > { %v3470_v3 = vadd.f32 %v3469_v2, %v3468_v51 }
 0x292   : > { %v3471_v4 = vpop.f32.mrf.mxu0 }
 0x293   : > { %v3158_v5 = vadd.f32 %v3470_v3, %v3118_v0 }
 0x294   : > { %v3472_v6 = vpop.f32.mrf.mxu0 }
 0x295   : > { %3163 = vst [vmem:[%s216_s24] sm:$0xff] %v3158_v5 }
 0x296   : > { %3721 = shalt.err (!%p3718_p0)
}
 0x297   : > { %s3722_s25 = scalar_lea.hbm %s4671_s9, 128  ;;  %s3726_s4 = scalar_lea.hbm %s4711_s3, 256 }
 0x298   : > { %p3723_p5 = scmp.ne.s32.totalorder %s4671_s9, %s3722_s25  ;;  %p3727_p4 = scmp.lt.s32.totalorder %s4671_s9, %s4711_s3 }
 0x299   : > { %p3728_p6 = scmp.lt.s32.totalorder %s3726_s4, %s3722_s25 }
 0x29a   : > { %p3724_p3 = pnand %p3723_p5, %p4727_p11 }
 0x29b   : > { %p3729_p8 = por %p3728_p6, %p3727_p4 }
 0x29c   : > { %p3725_p10 = pneg %p3724_p3 }
 0x29e   : > { %p3730_p9 = pnand %p3729_p8, %p3725_p10 }
 0x2a0   : > { %3733 = shalt.err (!%p3730_p9)
}
 0x2a1   : > { %3487 = dma.vmem_to_hbm [thread:$0]  (%p4727_p11), %s3179_s27, 128, %s4671_s9, %s3165_s10  }
 0x2a2 PF: > { %s3190_s7 = sand.u32 1, %s3764_s12   ;;  %p4728_p1 = scmp.ne.s32.totalorder %s4717_s19, 0 }
 0x2a3   : > { %p4729_p2 = scmp.ge.s32.totalorder %s3776_s15, 2  ;;  %s3191_s18 = scalar_lea.sflag [#allocation4], %s3190_s7 }
 0x2a5   : > { %p3501_p12 = pnand %p4729_p2, %p4728_p1 }
 0x2a7   : > { %p3502_p7 = pneg %p3501_p12 }
 0x2a9   : > { %3759 = dma.done.wait (%p3502_p7), %s3191_s18, 128  }
 0x2aa   : > { %3761 = vsyncadd (%p3502_p7), %s3191_s18, 4294967168  ;;  %p17_p13 = scmp.ge.s32.totalorder %s3878_s8, 4   ;;  %s4730_s12 = smov %s3768_s13 }
 0x2ab   : > { %s4731_s13 = smov %s3772_s14  ;;  %s4732_s14 = smov %s3894_s17 }
 0x2ac   : > { %s4733_s15 = smov %s3878_s8  ;;  %19 = sbr.rel (!%p17_p13) target bundleno = 6 (0x6), region = 85 }
 0x2b1   :  { %3196 = vsyncpa [#allocation3], 1 }
 0x2b2   :  { %3198 = vsyncpa [#allocation3 + $0x1], 1 }
 0x2b3   :  { %3199 = vsyncpa [#allocation6], 1 }
 0x2b4   :  { %3200 = vsyncpa [#allocation4], 1 }
 0x2b5   :  { %3202 = vsyncpa [#allocation4 + $0x1], 1 }

</bundles_post_ra>
